<compile_context>
chip_gen: v6e
topology: v6e:2x2x1
jax: 0.10.0
libtpu: 0.0.40
codegen_flags: <defaults>
</compile_context>

<pallas_src>
import functools

import jax
import jax.numpy as jnp
from jax.experimental import pallas as pl
from jax.experimental.pallas import tpu as pltpu


def lstm_kernel(x_ref, w_ih_ref, w_hh_ref, b_ref, h_out_ref, xproj_scr,
                *, batch, seq):
    """Whole LSTM recurrence in one invocation.

    x_ref     : (seq*batch, input_size)  time-major, rows grouped per timestep
    w_ih_ref  : (input_size, 4H)         PyTorch gate order [i, f, g, o]
    w_hh_ref  : (H, 4H)
    b_ref     : (1, 4H)                  b_ih + b_hh
    h_out_ref : (batch, H)               final hidden state
    xproj_scr : (seq*batch, 4H)          VMEM scratch for hoisted input proj
    """
    H = w_hh_ref.shape[0]

    # Hoisted input projection + bias: one big lane-dense MXU matmul,
    # removed from the serial per-timestep critical path.
    xproj_scr[...] = (
        jnp.dot(x_ref[...], w_ih_ref[...], preferred_element_type=jnp.float32)
        + b_ref[...])

    w_hh = w_hh_ref[...]  # load once, stays in vregs/VMEM for the whole loop

    def step(t, carry):
        h, c = carry
        row = pl.multiple_of(t * batch, batch)  # sublane-aligned (batch == 8)
        gates = (xproj_scr[pl.ds(row, batch), :]
                 + jnp.dot(h, w_hh, preferred_element_type=jnp.float32))
        # Full-vreg nonlinearities: 2 EUP pushes per step (instead of 4),
        # then H-wide slices to pick out the gates (PyTorch order [i, f, g, o]).
        sg = jax.nn.sigmoid(gates)
        tg = jnp.tanh(gates)
        i_g = sg[:, 0:H]
        f_g = sg[:, H:2 * H]
        g_g = tg[:, 2 * H:3 * H]
        o_g = sg[:, 3 * H:4 * H]
        c_new = f_g * c + i_g * g_g
        h_new = o_g * jnp.tanh(c_new)
        return h_new, c_new

    h0 = jnp.zeros((batch, H), jnp.float32)
    c0 = jnp.zeros((batch, H), jnp.float32)
    # Fixed trip-count, fully unrolled -> LLO scheduler sees the whole chain.
    h_final, _ = jax.lax.fori_loop(0, seq, step, (h0, c0), unroll=True)
    h_out_ref[...] = h_final


def rnn_forward(x_ids, params):
    """Full RNN.forward: embedding (glue) + LSTM (Pallas) + linear (glue)."""
    emb_table = params["emb"]              # (vocab, emb_dim)
    batch, sent_len = x_ids.shape
    emb_dim = emb_table.shape[1]
    H = emb_dim
    input_size = sent_len
    seq = emb_dim                          # after transpose(1,2), emb_dim is seq axis

    # Kernel-layout weights: pre-transposed so matmuls are (rows, in) @ (in, 4H).
    w_ih_t = params["w_ih"].T.astype(jnp.float32)                 # (input, 4H)
    w_hh_t = params["w_hh"].T.astype(jnp.float32)                 # (H, 4H)
    b = (params["b_ih"] + params["b_hh"]).reshape(1, 4 * H).astype(jnp.float32)

    # Embedding lookup + single fused transpose to time-major (seq, batch, input),
    # flattened to (seq*batch, input) for the hoisted input-projection matmul.
    emb = jnp.take(emb_table, x_ids, axis=0)                      # (B, S, E)
    x_seq = jnp.transpose(emb, (2, 0, 1)).astype(jnp.float32)     # (seq, B, input)
    x_flat = x_seq.reshape(seq * batch, input_size)

    kernel = functools.partial(lstm_kernel, batch=batch, seq=seq)

    h = pl.pallas_call(
        kernel,
        out_shape=jax.ShapeDtypeStruct((batch, H), jnp.float32),
        grid=(1,),
        in_specs=[
            pl.BlockSpec((seq * batch, input_size), lambda i: (0, 0)),
            pl.BlockSpec((input_size, 4 * H), lambda i: (0, 0)),
            pl.BlockSpec((H, 4 * H), lambda i: (0, 0)),
            pl.BlockSpec((1, 4 * H), lambda i: (0, 0)),
        ],
        out_specs=pl.BlockSpec((batch, H), lambda i: (0, 0)),
        scratch_shapes=[
            pltpu.VMEM((seq * batch, 4 * H), jnp.float32),  # hoisted input proj
        ],
        compiler_params=pltpu.CompilerParams(
            dimension_semantics=("arbitrary",)),
    )(x_flat, w_ih_t, w_hh_t, b)

    # Final tiny linear (B,H)@(H,2) done in the wrapper (degenerate MXU shape /
    # 2-lane-wide store would be masked inside the kernel).
    return h @ params["w_lin"].T.astype(jnp.float32) + \
        params["b_lin"].reshape(1, 2).astype(jnp.float32)


def rnn_forward_ref(x_ids, params):
    """Pure-JAX reference of the same forward pass (for correctness check)."""
    emb = jnp.take(params["emb"], x_ids, axis=0)            # (B, S, E)
    x = jnp.transpose(emb, (0, 2, 1)).astype(jnp.float32)   # (B, seq=E, in=S)
    H = params["emb"].shape[1]
    w_ih_t = params["w_ih"].T
    w_hh_t = params["w_hh"].T
    b = (params["b_ih"] + params["b_hh"]).reshape(1, 4 * H)

    def step(carry, x_t):
        h, c = carry
        gates = x_t @ w_ih_t + h @ w_hh_t + b
        i = jax.nn.sigmoid(gates[:, :H])
        f = jax.nn.sigmoid(gates[:, H:2 * H])
        g = jnp.tanh(gates[:, 2 * H:3 * H])
        o = jax.nn.sigmoid(gates[:, 3 * H:])
        c = f * c + i * g
        h = o * jnp.tanh(c)
        return (h, c), None

    B = x.shape[0]
    h0 = jnp.zeros((B, H), jnp.float32)
    c0 = jnp.zeros((B, H), jnp.float32)
    (h, _), _ = jax.lax.scan(step, (h0, c0), jnp.transpose(x, (1, 0, 2)))
    return h @ params["w_lin"].T + params["b_lin"].reshape(1, 2)


def make_params(key, vocab_size, sent_len, emb_dim):
    """Deterministic synthetic parameters in PyTorch layout (per module __init__)."""
    H = emb_dim
    k = jax.random.split(key, 7)
    s = 0.1
    emb = jax.random.normal(k[0], (vocab_size, emb_dim), jnp.float32) * s
    emb = emb.at[0].set(0.0)  # padding_idx=0 convention
    w_ih = jax.random.normal(k[1], (4 * H, sent_len), jnp.float32) * s
    w_hh = jax.random.normal(k[2], (4 * H, H), jnp.float32) * s
    b_ih = jax.random.normal(k[3], (4 * H,), jnp.float32) * s
    b_hh = jax.random.normal(k[4], (4 * H,), jnp.float32) * s
    w_lin = jax.random.normal(k[5], (2, H), jnp.float32) * s
    b_lin = jax.random.normal(k[6], (2,), jnp.float32) * s
    return {"emb": emb, "w_ih": w_ih, "w_hh": w_hh, "b_ih": b_ih,
            "b_hh": b_hh, "w_lin": w_lin, "b_lin": b_lin}


if __name__ == "__main__":
    # small shapes: batch=8, max_sentence_len=16, emb_dim(hidden)=32, vocab=50
    batch, sent_len, emb_dim, vocab = 8, 16, 32, 50

    key = jax.random.PRNGKey(0)
    k_ids, k_par = jax.random.split(key)
    params = make_params(k_par, vocab, sent_len, emb_dim)
    x_ids = jax.random.randint(k_ids, (batch, sent_len), 0, vocab, dtype=jnp.int32)

    fwd = jax.jit(rnn_forward)
    out = jax.block_until_ready(fwd(x_ids, params))

    ref = rnn_forward_ref(x_ids, params)
    assert out.shape == (batch, 2)
    assert jnp.allclose(out, ref, atol=1e-4, rtol=1e-4), "mismatch vs JAX reference"

    print("KERNEL_OK")
</pallas_src>

<mosaic_0001>
module attributes {stable_mosaic.version = 11 : i64} {
  func.func @lstm_kernel(%arg0: i32, %arg1: memref<256x16xf32, #tpu.memory_space<vmem>>, %arg2: memref<16x128xf32, #tpu.memory_space<vmem>>, %arg3: memref<32x128xf32, #tpu.memory_space<vmem>>, %arg4: memref<1x128xf32, #tpu.memory_space<vmem>>, %arg5: memref<8x32xf32, #tpu.memory_space<vmem>>, %arg6: memref<256x128xf32, #tpu.memory_space<vmem>>) attributes {dimension_semantics = [#tpu.dimension_semantics<arbitrary>], iteration_bounds = array<i64: 1>, scalar_prefetch = 0 : i64, scratch_operands = 1 : i64, tpu.core_type = #tpu.core_type<tc>, window_params = [{pipeline_mode = #tpu.pipeline_mode<synchronous>, transform_indices = @transform_0, window_bounds = array<i64: 256, 16>}, {pipeline_mode = #tpu.pipeline_mode<synchronous>, transform_indices = @transform_1, window_bounds = array<i64: 16, 128>}, {pipeline_mode = #tpu.pipeline_mode<synchronous>, transform_indices = @transform_2, window_bounds = array<i64: 32, 128>}, {pipeline_mode = #tpu.pipeline_mode<synchronous>, transform_indices = @transform_3, window_bounds = array<i64: 1, 128>}, {pipeline_mode = #tpu.pipeline_mode<synchronous>, transform_indices = @transform_4, window_bounds = array<i64: 8, 32>}]} {
    %c0 = arith.constant 0 : index
    %c0_0 = arith.constant 0 : index
    %0 = vector.load %arg1[%c0, %c0_0] : memref<256x16xf32, #tpu.memory_space<vmem>>, vector<256x16xf32>
    %c0_1 = arith.constant 0 : index
    %c0_2 = arith.constant 0 : index
    %1 = vector.load %arg2[%c0_1, %c0_2] : memref<16x128xf32, #tpu.memory_space<vmem>>, vector<16x128xf32>
    %cst = arith.constant dense<0.000000e+00> : vector<256x128xf32>
    %2 = tpu.matmul %0, %1, %cst {dimension_numbers = #tpu.dot_dimension_numbers<[1], [0], [0], [1], [0, 0, 1, 1], [], []>} : vector<256x16xf32>, vector<16x128xf32>, vector<256x128xf32> -> vector<256x128xf32>
    %c0_3 = arith.constant 0 : index
    %c0_4 = arith.constant 0 : index
    %3 = vector.load %arg4[%c0_3, %c0_4] : memref<1x128xf32, #tpu.memory_space<vmem>>, vector<1x128xf32>
    %4 = vector.broadcast %3 : vector<1x128xf32> to vector<256x128xf32>
    %5 = arith.addf %2, %4 : vector<256x128xf32>
    %c0_5 = arith.constant 0 : index
    %c0_6 = arith.constant 0 : index
    %6 = vector.load %arg6[%c0_5, %c0_6] : memref<256x128xf32, #tpu.memory_space<vmem>>, vector<256x128xf32>
    tpu.vector_store %arg6[%c0_5, %c0_6], %5 {strides = array<i32>} : memref<256x128xf32, #tpu.memory_space<vmem>>, vector<256x128xf32>,
    %c0_7 = arith.constant 0 : index
    %c0_8 = arith.constant 0 : index
    %7 = vector.load %arg3[%c0_7, %c0_8] : memref<32x128xf32, #tpu.memory_space<vmem>>, vector<32x128xf32>
    %cst_9 = arith.constant 0.000000e+00 : f32
    %8 = vector.broadcast %cst_9 : f32 to vector<8x32xf32>
    %cst_10 = arith.constant 0.000000e+00 : f32
    %9 = vector.broadcast %cst_10 : f32 to vector<8x32xf32>
    %c0_i32 = arith.constant 0 : i32
    %c8_i32 = arith.constant 8 : i32
    %10 = arith.muli %c0_i32, %c8_i32 : i32
    %11 = tpu.assume_multiple %10, 8 : i32
    %12 = arith.index_cast %11 : i32 to index
    %c0_11 = arith.constant 0 : index
    %13 = vector.load %arg6[%12, %c0_11] : memref<256x128xf32, #tpu.memory_space<vmem>>, vector<8x128xf32>
    %cst_12 = arith.constant dense<0.000000e+00> : vector<8x128xf32>
    %14 = tpu.matmul %8, %7, %cst_12 {dimension_numbers = #tpu.dot_dimension_numbers<[1], [0], [0], [1], [0, 0, 1, 1], [], []>} : vector<8x32xf32>, vector<32x128xf32>, vector<8x128xf32> -> vector<8x128xf32>
    %15 = arith.addf %13, %14 : vector<8x128xf32>
    %16 = arith.negf %15 : vector<8x128xf32>
    %17 = math.exp %16 : vector<8x128xf32>
    %cst_13 = arith.constant 1.000000e+00 : f32
    %18 = vector.broadcast %cst_13 : f32 to vector<8x128xf32>
    %19 = arith.addf %18, %17 : vector<8x128xf32>
    %20 = arith.divf %18, %19 : vector<8x128xf32>
    %21 = math.tanh %15 : vector<8x128xf32>
    %22 = vector.extract_strided_slice %20 {offsets = [0, 0], sizes = [8, 32], strides = [1, 1]} : vector<8x128xf32> to vector<8x32xf32>
    %23 = vector.extract_strided_slice %20 {offsets = [0, 32], sizes = [8, 32], strides = [1, 1]} : vector<8x128xf32> to vector<8x32xf32>
    %24 = vector.extract_strided_slice %21 {offsets = [0, 64], sizes = [8, 32], strides = [1, 1]} : vector<8x128xf32> to vector<8x32xf32>
    %25 = vector.extract_strided_slice %20 {offsets = [0, 96], sizes = [8, 32], strides = [1, 1]} : vector<8x128xf32> to vector<8x32xf32>
    %26 = arith.mulf %23, %9 : vector<8x32xf32>
    %27 = arith.mulf %22, %24 : vector<8x32xf32>
    %28 = arith.addf %26, %27 : vector<8x32xf32>
    %29 = math.tanh %28 : vector<8x32xf32>
    %30 = arith.mulf %25, %29 : vector<8x32xf32>
    %c1_i32 = arith.constant 1 : i32
    %c8_i32_14 = arith.constant 8 : i32
    %31 = arith.muli %c1_i32, %c8_i32_14 : i32
    %32 = tpu.assume_multiple %31, 8 : i32
    %33 = arith.index_cast %32 : i32 to index
    %c0_15 = arith.constant 0 : index
    %34 = vector.load %arg6[%33, %c0_15] : memref<256x128xf32, #tpu.memory_space<vmem>>, vector<8x128xf32>
    %cst_16 = arith.constant dense<0.000000e+00> : vector<8x128xf32>
    %35 = tpu.matmul %30, %7, %cst_16 {dimension_numbers = #tpu.dot_dimension_numbers<[1], [0], [0], [1], [0, 0, 1, 1], [], []>} : vector<8x32xf32>, vector<32x128xf32>, vector<8x128xf32> -> vector<8x128xf32>
    %36 = arith.addf %34, %35 : vector<8x128xf32>
    %37 = arith.negf %36 : vector<8x128xf32>
    %38 = math.exp %37 : vector<8x128xf32>
    %cst_17 = arith.constant 1.000000e+00 : f32
    %39 = vector.broadcast %cst_17 : f32 to vector<8x128xf32>
    %40 = arith.addf %39, %38 : vector<8x128xf32>
    %41 = arith.divf %39, %40 : vector<8x128xf32>
    %42 = math.tanh %36 : vector<8x128xf32>
    %43 = vector.extract_strided_slice %41 {offsets = [0, 0], sizes = [8, 32], strides = [1, 1]} : vector<8x128xf32> to vector<8x32xf32>
    %44 = vector.extract_strided_slice %41 {offsets = [0, 32], sizes = [8, 32], strides = [1, 1]} : vector<8x128xf32> to vector<8x32xf32>
    %45 = vector.extract_strided_slice %42 {offsets = [0, 64], sizes = [8, 32], strides = [1, 1]} : vector<8x128xf32> to vector<8x32xf32>
    %46 = vector.extract_strided_slice %41 {offsets = [0, 96], sizes = [8, 32], strides = [1, 1]} : vector<8x128xf32> to vector<8x32xf32>
    %47 = arith.mulf %44, %28 : vector<8x32xf32>
    %48 = arith.mulf %43, %45 : vector<8x32xf32>
    %49 = arith.addf %47, %48 : vector<8x32xf32>
    %50 = math.tanh %49 : vector<8x32xf32>
    %51 = arith.mulf %46, %50 : vector<8x32xf32>
    %c2_i32 = arith.constant 2 : i32
    %c8_i32_18 = arith.constant 8 : i32
    %52 = arith.muli %c2_i32, %c8_i32_18 : i32
    %53 = tpu.assume_multiple %52, 8 : i32
    %54 = arith.index_cast %53 : i32 to index
    %c0_19 = arith.constant 0 : index
    %55 = vector.load %arg6[%54, %c0_19] : memref<256x128xf32, #tpu.memory_space<vmem>>, vector<8x128xf32>
    %cst_20 = arith.constant dense<0.000000e+00> : vector<8x128xf32>
    %56 = tpu.matmul %51, %7, %cst_20 {dimension_numbers = #tpu.dot_dimension_numbers<[1], [0], [0], [1], [0, 0, 1, 1], [], []>} : vector<8x32xf32>, vector<32x128xf32>, vector<8x128xf32> -> vector<8x128xf32>
    %57 = arith.addf %55, %56 : vector<8x128xf32>
    %58 = arith.negf %57 : vector<8x128xf32>
    %59 = math.exp %58 : vector<8x128xf32>
    %cst_21 = arith.constant 1.000000e+00 : f32
    %60 = vector.broadcast %cst_21 : f32 to vector<8x128xf32>
    %61 = arith.addf %60, %59 : vector<8x128xf32>
    %62 = arith.divf %60, %61 : vector<8x128xf32>
    %63 = math.tanh %57 : vector<8x128xf32>
    %64 = vector.extract_strided_slice %62 {offsets = [0, 0], sizes = [8, 32], strides = [1, 1]} : vector<8x128xf32> to vector<8x32xf32>
    %65 = vector.extract_strided_slice %62 {offsets = [0, 32], sizes = [8, 32], strides = [1, 1]} : vector<8x128xf32> to vector<8x32xf32>
    %66 = vector.extract_strided_slice %63 {offsets = [0, 64], sizes = [8, 32], strides = [1, 1]} : vector<8x128xf32> to vector<8x32xf32>
    %67 = vector.extract_strided_slice %62 {offsets = [0, 96], sizes = [8, 32], strides = [1, 1]} : vector<8x128xf32> to vector<8x32xf32>
    %68 = arith.mulf %65, %49 : vector<8x32xf32>
    %69 = arith.mulf %64, %66 : vector<8x32xf32>
    %70 = arith.addf %68, %69 : vector<8x32xf32>
    %71 = math.tanh %70 : vector<8x32xf32>
    %72 = arith.mulf %67, %71 : vector<8x32xf32>
    %c3_i32 = arith.constant 3 : i32
    %c8_i32_22 = arith.constant 8 : i32
    %73 = arith.muli %c3_i32, %c8_i32_22 : i32
    %74 = tpu.assume_multiple %73, 8 : i32
    %75 = arith.index_cast %74 : i32 to index
    %c0_23 = arith.constant 0 : index
    %76 = vector.load %arg6[%75, %c0_23] : memref<256x128xf32, #tpu.memory_space<vmem>>, vector<8x128xf32>
    %cst_24 = arith.constant dense<0.000000e+00> : vector<8x128xf32>
    %77 = tpu.matmul %72, %7, %cst_24 {dimension_numbers = #tpu.dot_dimension_numbers<[1], [0], [0], [1], [0, 0, 1, 1], [], []>} : vector<8x32xf32>, vector<32x128xf32>, vector<8x128xf32> -> vector<8x128xf32>
    %78 = arith.addf %76, %77 : vector<8x128xf32>
    %79 = arith.negf %78 : vector<8x128xf32>
    %80 = math.exp %79 : vector<8x128xf32>
    %cst_25 = arith.constant 1.000000e+00 : f32
    %81 = vector.broadcast %cst_25 : f32 to vector<8x128xf32>
    %82 = arith.addf %81, %80 : vector<8x128xf32>
    %83 = arith.divf %81, %82 : vector<8x128xf32>
    %84 = math.tanh %78 : vector<8x128xf32>
    %85 = vector.extract_strided_slice %83 {offsets = [0, 0], sizes = [8, 32], strides = [1, 1]} : vector<8x128xf32> to vector<8x32xf32>
    %86 = vector.extract_strided_slice %83 {offsets = [0, 32], sizes = [8, 32], strides = [1, 1]} : vector<8x128xf32> to vector<8x32xf32>
    %87 = vector.extract_strided_slice %84 {offsets = [0, 64], sizes = [8, 32], strides = [1, 1]} : vector<8x128xf32> to vector<8x32xf32>
    %88 = vector.extract_strided_slice %83 {offsets = [0, 96], sizes = [8, 32], strides = [1, 1]} : vector<8x128xf32> to vector<8x32xf32>
    %89 = arith.mulf %86, %70 : vector<8x32xf32>
    %90 = arith.mulf %85, %87 : vector<8x32xf32>
    %91 = arith.addf %89, %90 : vector<8x32xf32>
    %92 = math.tanh %91 : vector<8x32xf32>
    %93 = arith.mulf %88, %92 : vector<8x32xf32>
    %c4_i32 = arith.constant 4 : i32
    %c8_i32_26 = arith.constant 8 : i32
    %94 = arith.muli %c4_i32, %c8_i32_26 : i32
    %95 = tpu.assume_multiple %94, 8 : i32
    %96 = arith.index_cast %95 : i32 to index
    %c0_27 = arith.constant 0 : index
    %97 = vector.load %arg6[%96, %c0_27] : memref<256x128xf32, #tpu.memory_space<vmem>>, vector<8x128xf32>
    %cst_28 = arith.constant dense<0.000000e+00> : vector<8x128xf32>
    %98 = tpu.matmul %93, %7, %cst_28 {dimension_numbers = #tpu.dot_dimension_numbers<[1], [0], [0], [1], [0, 0, 1, 1], [], []>} : vector<8x32xf32>, vector<32x128xf32>, vector<8x128xf32> -> vector<8x128xf32>
    %99 = arith.addf %97, %98 : vector<8x128xf32>
    %100 = arith.negf %99 : vector<8x128xf32>
    %101 = math.exp %100 : vector<8x128xf32>
    %cst_29 = arith.constant 1.000000e+00 : f32
    %102 = vector.broadcast %cst_29 : f32 to vector<8x128xf32>
    %103 = arith.addf %102, %101 : vector<8x128xf32>
    %104 = arith.divf %102, %103 : vector<8x128xf32>
    %105 = math.tanh %99 : vector<8x128xf32>
    %106 = vector.extract_strided_slice %104 {offsets = [0, 0], sizes = [8, 32], strides = [1, 1]} : vector<8x128xf32> to vector<8x32xf32>
    %107 = vector.extract_strided_slice %104 {offsets = [0, 32], sizes = [8, 32], strides = [1, 1]} : vector<8x128xf32> to vector<8x32xf32>
    %108 = vector.extract_strided_slice %105 {offsets = [0, 64], sizes = [8, 32], strides = [1, 1]} : vector<8x128xf32> to vector<8x32xf32>
    %109 = vector.extract_strided_slice %104 {offsets = [0, 96], sizes = [8, 32], strides = [1, 1]} : vector<8x128xf32> to vector<8x32xf32>
    %110 = arith.mulf %107, %91 : vector<8x32xf32>
    %111 = arith.mulf %106, %108 : vector<8x32xf32>
    %112 = arith.addf %110, %111 : vector<8x32xf32>
    %113 = math.tanh %112 : vector<8x32xf32>
    %114 = arith.mulf %109, %113 : vector<8x32xf32>
    %c5_i32 = arith.constant 5 : i32
    %c8_i32_30 = arith.constant 8 : i32
    %115 = arith.muli %c5_i32, %c8_i32_30 : i32
    %116 = tpu.assume_multiple %115, 8 : i32
    %117 = arith.index_cast %116 : i32 to index
    %c0_31 = arith.constant 0 : index
    %118 = vector.load %arg6[%117, %c0_31] : memref<256x128xf32, #tpu.memory_space<vmem>>, vector<8x128xf32>
    %cst_32 = arith.constant dense<0.000000e+00> : vector<8x128xf32>
    %119 = tpu.matmul %114, %7, %cst_32 {dimension_numbers = #tpu.dot_dimension_numbers<[1], [0], [0], [1], [0, 0, 1, 1], [], []>} : vector<8x32xf32>, vector<32x128xf32>, vector<8x128xf32> -> vector<8x128xf32>
    %120 = arith.addf %118, %119 : vector<8x128xf32>
    %121 = arith.negf %120 : vector<8x128xf32>
    %122 = math.exp %121 : vector<8x128xf32>
    %cst_33 = arith.constant 1.000000e+00 : f32
    %123 = vector.broadcast %cst_33 : f32 to vector<8x128xf32>
    %124 = arith.addf %123, %122 : vector<8x128xf32>
    %125 = arith.divf %123, %124 : vector<8x128xf32>
    %126 = math.tanh %120 : vector<8x128xf32>
    %127 = vector.extract_strided_slice %125 {offsets = [0, 0], sizes = [8, 32], strides = [1, 1]} : vector<8x128xf32> to vector<8x32xf32>
    %128 = vector.extract_strided_slice %125 {offsets = [0, 32], sizes = [8, 32], strides = [1, 1]} : vector<8x128xf32> to vector<8x32xf32>
    %129 = vector.extract_strided_slice %126 {offsets = [0, 64], sizes = [8, 32], strides = [1, 1]} : vector<8x128xf32> to vector<8x32xf32>
    %130 = vector.extract_strided_slice %125 {offsets = [0, 96], sizes = [8, 32], strides = [1, 1]} : vector<8x128xf32> to vector<8x32xf32>
    %131 = arith.mulf %128, %112 : vector<8x32xf32>
    %132 = arith.mulf %127, %129 : vector<8x32xf32>
    %133 = arith.addf %131, %132 : vector<8x32xf32>
    %134 = math.tanh %133 : vector<8x32xf32>
    %135 = arith.mulf %130, %134 : vector<8x32xf32>
    %c6_i32 = arith.constant 6 : i32
    %c8_i32_34 = arith.constant 8 : i32
    %136 = arith.muli %c6_i32, %c8_i32_34 : i32
    %137 = tpu.assume_multiple %136, 8 : i32
    %138 = arith.index_cast %137 : i32 to index
    %c0_35 = arith.constant 0 : index
    %139 = vector.load %arg6[%138, %c0_35] : memref<256x128xf32, #tpu.memory_space<vmem>>, vector<8x128xf32>
    %cst_36 = arith.constant dense<0.000000e+00> : vector<8x128xf32>
    %140 = tpu.matmul %135, %7, %cst_36 {dimension_numbers = #tpu.dot_dimension_numbers<[1], [0], [0], [1], [0, 0, 1, 1], [], []>} : vector<8x32xf32>, vector<32x128xf32>, vector<8x128xf32> -> vector<8x128xf32>
    %141 = arith.addf %139, %140 : vector<8x128xf32>
    %142 = arith.negf %141 : vector<8x128xf32>
    %143 = math.exp %142 : vector<8x128xf32>
    %cst_37 = arith.constant 1.000000e+00 : f32
    %144 = vector.broadcast %cst_37 : f32 to vector<8x128xf32>
    %145 = arith.addf %144, %143 : vector<8x128xf32>
    %146 = arith.divf %144, %145 : vector<8x128xf32>
    %147 = math.tanh %141 : vector<8x128xf32>
    %148 = vector.extract_strided_slice %146 {offsets = [0, 0], sizes = [8, 32], strides = [1, 1]} : vector<8x128xf32> to vector<8x32xf32>
    %149 = vector.extract_strided_slice %146 {offsets = [0, 32], sizes = [8, 32], strides = [1, 1]} : vector<8x128xf32> to vector<8x32xf32>
    %150 = vector.extract_strided_slice %147 {offsets = [0, 64], sizes = [8, 32], strides = [1, 1]} : vector<8x128xf32> to vector<8x32xf32>
    %151 = vector.extract_strided_slice %146 {offsets = [0, 96], sizes = [8, 32], strides = [1, 1]} : vector<8x128xf32> to vector<8x32xf32>
    %152 = arith.mulf %149, %133 : vector<8x32xf32>
    %153 = arith.mulf %148, %150 : vector<8x32xf32>
    %154 = arith.addf %152, %153 : vector<8x32xf32>
    %155 = math.tanh %154 : vector<8x32xf32>
    %156 = arith.mulf %151, %155 : vector<8x32xf32>
    %c7_i32 = arith.constant 7 : i32
    %c8_i32_38 = arith.constant 8 : i32
    %157 = arith.muli %c7_i32, %c8_i32_38 : i32
    %158 = tpu.assume_multiple %157, 8 : i32
    %159 = arith.index_cast %158 : i32 to index
    %c0_39 = arith.constant 0 : index
    %160 = vector.load %arg6[%159, %c0_39] : memref<256x128xf32, #tpu.memory_space<vmem>>, vector<8x128xf32>
    %cst_40 = arith.constant dense<0.000000e+00> : vector<8x128xf32>
    %161 = tpu.matmul %156, %7, %cst_40 {dimension_numbers = #tpu.dot_dimension_numbers<[1], [0], [0], [1], [0, 0, 1, 1], [], []>} : vector<8x32xf32>, vector<32x128xf32>, vector<8x128xf32> -> vector<8x128xf32>
    %162 = arith.addf %160, %161 : vector<8x128xf32>
    %163 = arith.negf %162 : vector<8x128xf32>
    %164 = math.exp %163 : vector<8x128xf32>
    %cst_41 = arith.constant 1.000000e+00 : f32
    %165 = vector.broadcast %cst_41 : f32 to vector<8x128xf32>
    %166 = arith.addf %165, %164 : vector<8x128xf32>
    %167 = arith.divf %165, %166 : vector<8x128xf32>
    %168 = math.tanh %162 : vector<8x128xf32>
    %169 = vector.extract_strided_slice %167 {offsets = [0, 0], sizes = [8, 32], strides = [1, 1]} : vector<8x128xf32> to vector<8x32xf32>
    %170 = vector.extract_strided_slice %167 {offsets = [0, 32], sizes = [8, 32], strides = [1, 1]} : vector<8x128xf32> to vector<8x32xf32>
    %171 = vector.extract_strided_slice %168 {offsets = [0, 64], sizes = [8, 32], strides = [1, 1]} : vector<8x128xf32> to vector<8x32xf32>
    %172 = vector.extract_strided_slice %167 {offsets = [0, 96], sizes = [8, 32], strides = [1, 1]} : vector<8x128xf32> to vector<8x32xf32>
    %173 = arith.mulf %170, %154 : vector<8x32xf32>
    %174 = arith.mulf %169, %171 : vector<8x32xf32>
    %175 = arith.addf %173, %174 : vector<8x32xf32>
    %176 = math.tanh %175 : vector<8x32xf32>
    %177 = arith.mulf %172, %176 : vector<8x32xf32>
    %c8_i32_42 = arith.constant 8 : i32
    %c8_i32_43 = arith.constant 8 : i32
    %178 = arith.muli %c8_i32_42, %c8_i32_43 : i32
    %179 = tpu.assume_multiple %178, 8 : i32
    %180 = arith.index_cast %179 : i32 to index
    %c0_44 = arith.constant 0 : index
    %181 = vector.load %arg6[%180, %c0_44] : memref<256x128xf32, #tpu.memory_space<vmem>>, vector<8x128xf32>
    %cst_45 = arith.constant dense<0.000000e+00> : vector<8x128xf32>
    %182 = tpu.matmul %177, %7, %cst_45 {dimension_numbers = #tpu.dot_dimension_numbers<[1], [0], [0], [1], [0, 0, 1, 1], [], []>} : vector<8x32xf32>, vector<32x128xf32>, vector<8x128xf32> -> vector<8x128xf32>
    %183 = arith.addf %181, %182 : vector<8x128xf32>
    %184 = arith.negf %183 : vector<8x128xf32>
    %185 = math.exp %184 : vector<8x128xf32>
    %cst_46 = arith.constant 1.000000e+00 : f32
    %186 = vector.broadcast %cst_46 : f32 to vector<8x128xf32>
    %187 = arith.addf %186, %185 : vector<8x128xf32>
    %188 = arith.divf %186, %187 : vector<8x128xf32>
    %189 = math.tanh %183 : vector<8x128xf32>
    %190 = vector.extract_strided_slice %188 {offsets = [0, 0], sizes = [8, 32], strides = [1, 1]} : vector<8x128xf32> to vector<8x32xf32>
    %191 = vector.extract_strided_slice %188 {offsets = [0, 32], sizes = [8, 32], strides = [1, 1]} : vector<8x128xf32> to vector<8x32xf32>
    %192 = vector.extract_strided_slice %189 {offsets = [0, 64], sizes = [8, 32], strides = [1, 1]} : vector<8x128xf32> to vector<8x32xf32>
    %193 = vector.extract_strided_slice %188 {offsets = [0, 96], sizes = [8, 32], strides = [1, 1]} : vector<8x128xf32> to vector<8x32xf32>
    %194 = arith.mulf %191, %175 : vector<8x32xf32>
    %195 = arith.mulf %190, %192 : vector<8x32xf32>
    %196 = arith.addf %194, %195 : vector<8x32xf32>
    %197 = math.tanh %196 : vector<8x32xf32>
    %198 = arith.mulf %193, %197 : vector<8x32xf32>
    %c9_i32 = arith.constant 9 : i32
    %c8_i32_47 = arith.constant 8 : i32
    %199 = arith.muli %c9_i32, %c8_i32_47 : i32
    %200 = tpu.assume_multiple %199, 8 : i32
    %201 = arith.index_cast %200 : i32 to index
    %c0_48 = arith.constant 0 : index
    %202 = vector.load %arg6[%201, %c0_48] : memref<256x128xf32, #tpu.memory_space<vmem>>, vector<8x128xf32>
    %cst_49 = arith.constant dense<0.000000e+00> : vector<8x128xf32>
    %203 = tpu.matmul %198, %7, %cst_49 {dimension_numbers = #tpu.dot_dimension_numbers<[1], [0], [0], [1], [0, 0, 1, 1], [], []>} : vector<8x32xf32>, vector<32x128xf32>, vector<8x128xf32> -> vector<8x128xf32>
    %204 = arith.addf %202, %203 : vector<8x128xf32>
    %205 = arith.negf %204 : vector<8x128xf32>
    %206 = math.exp %205 : vector<8x128xf32>
    %cst_50 = arith.constant 1.000000e+00 : f32
    %207 = vector.broadcast %cst_50 : f32 to vector<8x128xf32>
    %208 = arith.addf %207, %206 : vector<8x128xf32>
    %209 = arith.divf %207, %208 : vector<8x128xf32>
    %210 = math.tanh %204 : vector<8x128xf32>
    %211 = vector.extract_strided_slice %209 {offsets = [0, 0], sizes = [8, 32], strides = [1, 1]} : vector<8x128xf32> to vector<8x32xf32>
    %212 = vector.extract_strided_slice %209 {offsets = [0, 32], sizes = [8, 32], strides = [1, 1]} : vector<8x128xf32> to vector<8x32xf32>
    %213 = vector.extract_strided_slice %210 {offsets = [0, 64], sizes = [8, 32], strides = [1, 1]} : vector<8x128xf32> to vector<8x32xf32>
    %214 = vector.extract_strided_slice %209 {offsets = [0, 96], sizes = [8, 32], strides = [1, 1]} : vector<8x128xf32> to vector<8x32xf32>
    %215 = arith.mulf %212, %196 : vector<8x32xf32>
    %216 = arith.mulf %211, %213 : vector<8x32xf32>
    %217 = arith.addf %215, %216 : vector<8x32xf32>
    %218 = math.tanh %217 : vector<8x32xf32>
    %219 = arith.mulf %214, %218 : vector<8x32xf32>
    %c10_i32 = arith.constant 10 : i32
    %c8_i32_51 = arith.constant 8 : i32
    %220 = arith.muli %c10_i32, %c8_i32_51 : i32
    %221 = tpu.assume_multiple %220, 8 : i32
    %222 = arith.index_cast %221 : i32 to index
    %c0_52 = arith.constant 0 : index
    %223 = vector.load %arg6[%222, %c0_52] : memref<256x128xf32, #tpu.memory_space<vmem>>, vector<8x128xf32>
    %cst_53 = arith.constant dense<0.000000e+00> : vector<8x128xf32>
    %224 = tpu.matmul %219, %7, %cst_53 {dimension_numbers = #tpu.dot_dimension_numbers<[1], [0], [0], [1], [0, 0, 1, 1], [], []>} : vector<8x32xf32>, vector<32x128xf32>, vector<8x128xf32> -> vector<8x128xf32>
    %225 = arith.addf %223, %224 : vector<8x128xf32>
    %226 = arith.negf %225 : vector<8x128xf32>
    %227 = math.exp %226 : vector<8x128xf32>
    %cst_54 = arith.constant 1.000000e+00 : f32
    %228 = vector.broadcast %cst_54 : f32 to vector<8x128xf32>
    %229 = arith.addf %228, %227 : vector<8x128xf32>
    %230 = arith.divf %228, %229 : vector<8x128xf32>
    %231 = math.tanh %225 : vector<8x128xf32>
    %232 = vector.extract_strided_slice %230 {offsets = [0, 0], sizes = [8, 32], strides = [1, 1]} : vector<8x128xf32> to vector<8x32xf32>
    %233 = vector.extract_strided_slice %230 {offsets = [0, 32], sizes = [8, 32], strides = [1, 1]} : vector<8x128xf32> to vector<8x32xf32>
    %234 = vector.extract_strided_slice %231 {offsets = [0, 64], sizes = [8, 32], strides = [1, 1]} : vector<8x128xf32> to vector<8x32xf32>
    %235 = vector.extract_strided_slice %230 {offsets = [0, 96], sizes = [8, 32], strides = [1, 1]} : vector<8x128xf32> to vector<8x32xf32>
    %236 = arith.mulf %233, %217 : vector<8x32xf32>
    %237 = arith.mulf %232, %234 : vector<8x32xf32>
    %238 = arith.addf %236, %237 : vector<8x32xf32>
    %239 = math.tanh %238 : vector<8x32xf32>
    %240 = arith.mulf %235, %239 : vector<8x32xf32>
    %c11_i32 = arith.constant 11 : i32
    %c8_i32_55 = arith.constant 8 : i32
    %241 = arith.muli %c11_i32, %c8_i32_55 : i32
    %242 = tpu.assume_multiple %241, 8 : i32
    %243 = arith.index_cast %242 : i32 to index
    %c0_56 = arith.constant 0 : index
    %244 = vector.load %arg6[%243, %c0_56] : memref<256x128xf32, #tpu.memory_space<vmem>>, vector<8x128xf32>
    %cst_57 = arith.constant dense<0.000000e+00> : vector<8x128xf32>
    %245 = tpu.matmul %240, %7, %cst_57 {dimension_numbers = #tpu.dot_dimension_numbers<[1], [0], [0], [1], [0, 0, 1, 1], [], []>} : vector<8x32xf32>, vector<32x128xf32>, vector<8x128xf32> -> vector<8x128xf32>
    %246 = arith.addf %244, %245 : vector<8x128xf32>
    %247 = arith.negf %246 : vector<8x128xf32>
    %248 = math.exp %247 : vector<8x128xf32>
    %cst_58 = arith.constant 1.000000e+00 : f32
    %249 = vector.broadcast %cst_58 : f32 to vector<8x128xf32>
    %250 = arith.addf %249, %248 : vector<8x128xf32>
    %251 = arith.divf %249, %250 : vector<8x128xf32>
    %252 = math.tanh %246 : vector<8x128xf32>
    %253 = vector.extract_strided_slice %251 {offsets = [0, 0], sizes = [8, 32], strides = [1, 1]} : vector<8x128xf32> to vector<8x32xf32>
    %254 = vector.extract_strided_slice %251 {offsets = [0, 32], sizes = [8, 32], strides = [1, 1]} : vector<8x128xf32> to vector<8x32xf32>
    %255 = vector.extract_strided_slice %252 {offsets = [0, 64], sizes = [8, 32], strides = [1, 1]} : vector<8x128xf32> to vector<8x32xf32>
    %256 = vector.extract_strided_slice %251 {offsets = [0, 96], sizes = [8, 32], strides = [1, 1]} : vector<8x128xf32> to vector<8x32xf32>
    %257 = arith.mulf %254, %238 : vector<8x32xf32>
    %258 = arith.mulf %253, %255 : vector<8x32xf32>
    %259 = arith.addf %257, %258 : vector<8x32xf32>
    %260 = math.tanh %259 : vector<8x32xf32>
    %261 = arith.mulf %256, %260 : vector<8x32xf32>
    %c12_i32 = arith.constant 12 : i32
    %c8_i32_59 = arith.constant 8 : i32
    %262 = arith.muli %c12_i32, %c8_i32_59 : i32
    %263 = tpu.assume_multiple %262, 8 : i32
    %264 = arith.index_cast %263 : i32 to index
    %c0_60 = arith.constant 0 : index
    %265 = vector.load %arg6[%264, %c0_60] : memref<256x128xf32, #tpu.memory_space<vmem>>, vector<8x128xf32>
    %cst_61 = arith.constant dense<0.000000e+00> : vector<8x128xf32>
    %266 = tpu.matmul %261, %7, %cst_61 {dimension_numbers = #tpu.dot_dimension_numbers<[1], [0], [0], [1], [0, 0, 1, 1], [], []>} : vector<8x32xf32>, vector<32x128xf32>, vector<8x128xf32> -> vector<8x128xf32>
    %267 = arith.addf %265, %266 : vector<8x128xf32>
    %268 = arith.negf %267 : vector<8x128xf32>
    %269 = math.exp %268 : vector<8x128xf32>
    %cst_62 = arith.constant 1.000000e+00 : f32
    %270 = vector.broadcast %cst_62 : f32 to vector<8x128xf32>
    %271 = arith.addf %270, %269 : vector<8x128xf32>
    %272 = arith.divf %270, %271 : vector<8x128xf32>
    %273 = math.tanh %267 : vector<8x128xf32>
    %274 = vector.extract_strided_slice %272 {offsets = [0, 0], sizes = [8, 32], strides = [1, 1]} : vector<8x128xf32> to vector<8x32xf32>
    %275 = vector.extract_strided_slice %272 {offsets = [0, 32], sizes = [8, 32], strides = [1, 1]} : vector<8x128xf32> to vector<8x32xf32>
    %276 = vector.extract_strided_slice %273 {offsets = [0, 64], sizes = [8, 32], strides = [1, 1]} : vector<8x128xf32> to vector<8x32xf32>
    %277 = vector.extract_strided_slice %272 {offsets = [0, 96], sizes = [8, 32], strides = [1, 1]} : vector<8x128xf32> to vector<8x32xf32>
    %278 = arith.mulf %275, %259 : vector<8x32xf32>
    %279 = arith.mulf %274, %276 : vector<8x32xf32>
    %280 = arith.addf %278, %279 : vector<8x32xf32>
    %281 = math.tanh %280 : vector<8x32xf32>
    %282 = arith.mulf %277, %281 : vector<8x32xf32>
    %c13_i32 = arith.constant 13 : i32
    %c8_i32_63 = arith.constant 8 : i32
    %283 = arith.muli %c13_i32, %c8_i32_63 : i32
    %284 = tpu.assume_multiple %283, 8 : i32
    %285 = arith.index_cast %284 : i32 to index
    %c0_64 = arith.constant 0 : index
    %286 = vector.load %arg6[%285, %c0_64] : memref<256x128xf32, #tpu.memory_space<vmem>>, vector<8x128xf32>
    %cst_65 = arith.constant dense<0.000000e+00> : vector<8x128xf32>
    %287 = tpu.matmul %282, %7, %cst_65 {dimension_numbers = #tpu.dot_dimension_numbers<[1], [0], [0], [1], [0, 0, 1, 1], [], []>} : vector<8x32xf32>, vector<32x128xf32>, vector<8x128xf32> -> vector<8x128xf32>
    %288 = arith.addf %286, %287 : vector<8x128xf32>
    %289 = arith.negf %288 : vector<8x128xf32>
    %290 = math.exp %289 : vector<8x128xf32>
    %cst_66 = arith.constant 1.000000e+00 : f32
    %291 = vector.broadcast %cst_66 : f32 to vector<8x128xf32>
    %292 = arith.addf %291, %290 : vector<8x128xf32>
    %293 = arith.divf %291, %292 : vector<8x128xf32>
    %294 = math.tanh %288 : vector<8x128xf32>
    %295 = vector.extract_strided_slice %293 {offsets = [0, 0], sizes = [8, 32], strides = [1, 1]} : vector<8x128xf32> to vector<8x32xf32>
    %296 = vector.extract_strided_slice %293 {offsets = [0, 32], sizes = [8, 32], strides = [1, 1]} : vector<8x128xf32> to vector<8x32xf32>
    %297 = vector.extract_strided_slice %294 {offsets = [0, 64], sizes = [8, 32], strides = [1, 1]} : vector<8x128xf32> to vector<8x32xf32>
    %298 = vector.extract_strided_slice %293 {offsets = [0, 96], sizes = [8, 32], strides = [1, 1]} : vector<8x128xf32> to vector<8x32xf32>
    %299 = arith.mulf %296, %280 : vector<8x32xf32>
    %300 = arith.mulf %295, %297 : vector<8x32xf32>
    %301 = arith.addf %299, %300 : vector<8x32xf32>
    %302 = math.tanh %301 : vector<8x32xf32>
    %303 = arith.mulf %298, %302 : vector<8x32xf32>
    %c14_i32 = arith.constant 14 : i32
    %c8_i32_67 = arith.constant 8 : i32
    %304 = arith.muli %c14_i32, %c8_i32_67 : i32
    %305 = tpu.assume_multiple %304, 8 : i32
    %306 = arith.index_cast %305 : i32 to index
    %c0_68 = arith.constant 0 : index
    %307 = vector.load %arg6[%306, %c0_68] : memref<256x128xf32, #tpu.memory_space<vmem>>, vector<8x128xf32>
    %cst_69 = arith.constant dense<0.000000e+00> : vector<8x128xf32>
    %308 = tpu.matmul %303, %7, %cst_69 {dimension_numbers = #tpu.dot_dimension_numbers<[1], [0], [0], [1], [0, 0, 1, 1], [], []>} : vector<8x32xf32>, vector<32x128xf32>, vector<8x128xf32> -> vector<8x128xf32>
    %309 = arith.addf %307, %308 : vector<8x128xf32>
    %310 = arith.negf %309 : vector<8x128xf32>
    %311 = math.exp %310 : vector<8x128xf32>
    %cst_70 = arith.constant 1.000000e+00 : f32
    %312 = vector.broadcast %cst_70 : f32 to vector<8x128xf32>
    %313 = arith.addf %312, %311 : vector<8x128xf32>
    %314 = arith.divf %312, %313 : vector<8x128xf32>
    %315 = math.tanh %309 : vector<8x128xf32>
    %316 = vector.extract_strided_slice %314 {offsets = [0, 0], sizes = [8, 32], strides = [1, 1]} : vector<8x128xf32> to vector<8x32xf32>
    %317 = vector.extract_strided_slice %314 {offsets = [0, 32], sizes = [8, 32], strides = [1, 1]} : vector<8x128xf32> to vector<8x32xf32>
    %318 = vector.extract_strided_slice %315 {offsets = [0, 64], sizes = [8, 32], strides = [1, 1]} : vector<8x128xf32> to vector<8x32xf32>
    %319 = vector.extract_strided_slice %314 {offsets = [0, 96], sizes = [8, 32], strides = [1, 1]} : vector<8x128xf32> to vector<8x32xf32>
    %320 = arith.mulf %317, %301 : vector<8x32xf32>
    %321 = arith.mulf %316, %318 : vector<8x32xf32>
    %322 = arith.addf %320, %321 : vector<8x32xf32>
    %323 = math.tanh %322 : vector<8x32xf32>
    %324 = arith.mulf %319, %323 : vector<8x32xf32>
    %c15_i32 = arith.constant 15 : i32
    %c8_i32_71 = arith.constant 8 : i32
    %325 = arith.muli %c15_i32, %c8_i32_71 : i32
    %326 = tpu.assume_multiple %325, 8 : i32
    %327 = arith.index_cast %326 : i32 to index
    %c0_72 = arith.constant 0 : index
    %328 = vector.load %arg6[%327, %c0_72] : memref<256x128xf32, #tpu.memory_space<vmem>>, vector<8x128xf32>
    %cst_73 = arith.constant dense<0.000000e+00> : vector<8x128xf32>
    %329 = tpu.matmul %324, %7, %cst_73 {dimension_numbers = #tpu.dot_dimension_numbers<[1], [0], [0], [1], [0, 0, 1, 1], [], []>} : vector<8x32xf32>, vector<32x128xf32>, vector<8x128xf32> -> vector<8x128xf32>
    %330 = arith.addf %328, %329 : vector<8x128xf32>
    %331 = arith.negf %330 : vector<8x128xf32>
    %332 = math.exp %331 : vector<8x128xf32>
    %cst_74 = arith.constant 1.000000e+00 : f32
    %333 = vector.broadcast %cst_74 : f32 to vector<8x128xf32>
    %334 = arith.addf %333, %332 : vector<8x128xf32>
    %335 = arith.divf %333, %334 : vector<8x128xf32>
    %336 = math.tanh %330 : vector<8x128xf32>
    %337 = vector.extract_strided_slice %335 {offsets = [0, 0], sizes = [8, 32], strides = [1, 1]} : vector<8x128xf32> to vector<8x32xf32>
    %338 = vector.extract_strided_slice %335 {offsets = [0, 32], sizes = [8, 32], strides = [1, 1]} : vector<8x128xf32> to vector<8x32xf32>
    %339 = vector.extract_strided_slice %336 {offsets = [0, 64], sizes = [8, 32], strides = [1, 1]} : vector<8x128xf32> to vector<8x32xf32>
    %340 = vector.extract_strided_slice %335 {offsets = [0, 96], sizes = [8, 32], strides = [1, 1]} : vector<8x128xf32> to vector<8x32xf32>
    %341 = arith.mulf %338, %322 : vector<8x32xf32>
    %342 = arith.mulf %337, %339 : vector<8x32xf32>
    %343 = arith.addf %341, %342 : vector<8x32xf32>
    %344 = math.tanh %343 : vector<8x32xf32>
    %345 = arith.mulf %340, %344 : vector<8x32xf32>
    %c16_i32 = arith.constant 16 : i32
    %c8_i32_75 = arith.constant 8 : i32
    %346 = arith.muli %c16_i32, %c8_i32_75 : i32
    %347 = tpu.assume_multiple %346, 8 : i32
    %348 = arith.index_cast %347 : i32 to index
    %c0_76 = arith.constant 0 : index
    %349 = vector.load %arg6[%348, %c0_76] : memref<256x128xf32, #tpu.memory_space<vmem>>, vector<8x128xf32>
    %cst_77 = arith.constant dense<0.000000e+00> : vector<8x128xf32>
    %350 = tpu.matmul %345, %7, %cst_77 {dimension_numbers = #tpu.dot_dimension_numbers<[1], [0], [0], [1], [0, 0, 1, 1], [], []>} : vector<8x32xf32>, vector<32x128xf32>, vector<8x128xf32> -> vector<8x128xf32>
    %351 = arith.addf %349, %350 : vector<8x128xf32>
    %352 = arith.negf %351 : vector<8x128xf32>
    %353 = math.exp %352 : vector<8x128xf32>
    %cst_78 = arith.constant 1.000000e+00 : f32
    %354 = vector.broadcast %cst_78 : f32 to vector<8x128xf32>
    %355 = arith.addf %354, %353 : vector<8x128xf32>
    %356 = arith.divf %354, %355 : vector<8x128xf32>
    %357 = math.tanh %351 : vector<8x128xf32>
    %358 = vector.extract_strided_slice %356 {offsets = [0, 0], sizes = [8, 32], strides = [1, 1]} : vector<8x128xf32> to vector<8x32xf32>
    %359 = vector.extract_strided_slice %356 {offsets = [0, 32], sizes = [8, 32], strides = [1, 1]} : vector<8x128xf32> to vector<8x32xf32>
    %360 = vector.extract_strided_slice %357 {offsets = [0, 64], sizes = [8, 32], strides = [1, 1]} : vector<8x128xf32> to vector<8x32xf32>
    %361 = vector.extract_strided_slice %356 {offsets = [0, 96], sizes = [8, 32], strides = [1, 1]} : vector<8x128xf32> to vector<8x32xf32>
    %362 = arith.mulf %359, %343 : vector<8x32xf32>
    %363 = arith.mulf %358, %360 : vector<8x32xf32>
    %364 = arith.addf %362, %363 : vector<8x32xf32>
    %365 = math.tanh %364 : vector<8x32xf32>
    %366 = arith.mulf %361, %365 : vector<8x32xf32>
    %c17_i32 = arith.constant 17 : i32
    %c8_i32_79 = arith.constant 8 : i32
    %367 = arith.muli %c17_i32, %c8_i32_79 : i32
    %368 = tpu.assume_multiple %367, 8 : i32
    %369 = arith.index_cast %368 : i32 to index
    %c0_80 = arith.constant 0 : index
    %370 = vector.load %arg6[%369, %c0_80] : memref<256x128xf32, #tpu.memory_space<vmem>>, vector<8x128xf32>
    %cst_81 = arith.constant dense<0.000000e+00> : vector<8x128xf32>
    %371 = tpu.matmul %366, %7, %cst_81 {dimension_numbers = #tpu.dot_dimension_numbers<[1], [0], [0], [1], [0, 0, 1, 1], [], []>} : vector<8x32xf32>, vector<32x128xf32>, vector<8x128xf32> -> vector<8x128xf32>
    %372 = arith.addf %370, %371 : vector<8x128xf32>
    %373 = arith.negf %372 : vector<8x128xf32>
    %374 = math.exp %373 : vector<8x128xf32>
    %cst_82 = arith.constant 1.000000e+00 : f32
    %375 = vector.broadcast %cst_82 : f32 to vector<8x128xf32>
    %376 = arith.addf %375, %374 : vector<8x128xf32>
    %377 = arith.divf %375, %376 : vector<8x128xf32>
    %378 = math.tanh %372 : vector<8x128xf32>
    %379 = vector.extract_strided_slice %377 {offsets = [0, 0], sizes = [8, 32], strides = [1, 1]} : vector<8x128xf32> to vector<8x32xf32>
    %380 = vector.extract_strided_slice %377 {offsets = [0, 32], sizes = [8, 32], strides = [1, 1]} : vector<8x128xf32> to vector<8x32xf32>
    %381 = vector.extract_strided_slice %378 {offsets = [0, 64], sizes = [8, 32], strides = [1, 1]} : vector<8x128xf32> to vector<8x32xf32>
    %382 = vector.extract_strided_slice %377 {offsets = [0, 96], sizes = [8, 32], strides = [1, 1]} : vector<8x128xf32> to vector<8x32xf32>
    %383 = arith.mulf %380, %364 : vector<8x32xf32>
    %384 = arith.mulf %379, %381 : vector<8x32xf32>
    %385 = arith.addf %383, %384 : vector<8x32xf32>
    %386 = math.tanh %385 : vector<8x32xf32>
    %387 = arith.mulf %382, %386 : vector<8x32xf32>
    %c18_i32 = arith.constant 18 : i32
    %c8_i32_83 = arith.constant 8 : i32
    %388 = arith.muli %c18_i32, %c8_i32_83 : i32
    %389 = tpu.assume_multiple %388, 8 : i32
    %390 = arith.index_cast %389 : i32 to index
    %c0_84 = arith.constant 0 : index
    %391 = vector.load %arg6[%390, %c0_84] : memref<256x128xf32, #tpu.memory_space<vmem>>, vector<8x128xf32>
    %cst_85 = arith.constant dense<0.000000e+00> : vector<8x128xf32>
    %392 = tpu.matmul %387, %7, %cst_85 {dimension_numbers = #tpu.dot_dimension_numbers<[1], [0], [0], [1], [0, 0, 1, 1], [], []>} : vector<8x32xf32>, vector<32x128xf32>, vector<8x128xf32> -> vector<8x128xf32>
    %393 = arith.addf %391, %392 : vector<8x128xf32>
    %394 = arith.negf %393 : vector<8x128xf32>
    %395 = math.exp %394 : vector<8x128xf32>
    %cst_86 = arith.constant 1.000000e+00 : f32
    %396 = vector.broadcast %cst_86 : f32 to vector<8x128xf32>
    %397 = arith.addf %396, %395 : vector<8x128xf32>
    %398 = arith.divf %396, %397 : vector<8x128xf32>
    %399 = math.tanh %393 : vector<8x128xf32>
    %400 = vector.extract_strided_slice %398 {offsets = [0, 0], sizes = [8, 32], strides = [1, 1]} : vector<8x128xf32> to vector<8x32xf32>
    %401 = vector.extract_strided_slice %398 {offsets = [0, 32], sizes = [8, 32], strides = [1, 1]} : vector<8x128xf32> to vector<8x32xf32>
    %402 = vector.extract_strided_slice %399 {offsets = [0, 64], sizes = [8, 32], strides = [1, 1]} : vector<8x128xf32> to vector<8x32xf32>
    %403 = vector.extract_strided_slice %398 {offsets = [0, 96], sizes = [8, 32], strides = [1, 1]} : vector<8x128xf32> to vector<8x32xf32>
    %404 = arith.mulf %401, %385 : vector<8x32xf32>
    %405 = arith.mulf %400, %402 : vector<8x32xf32>
    %406 = arith.addf %404, %405 : vector<8x32xf32>
    %407 = math.tanh %406 : vector<8x32xf32>
    %408 = arith.mulf %403, %407 : vector<8x32xf32>
    %c19_i32 = arith.constant 19 : i32
    %c8_i32_87 = arith.constant 8 : i32
    %409 = arith.muli %c19_i32, %c8_i32_87 : i32
    %410 = tpu.assume_multiple %409, 8 : i32
    %411 = arith.index_cast %410 : i32 to index
    %c0_88 = arith.constant 0 : index
    %412 = vector.load %arg6[%411, %c0_88] : memref<256x128xf32, #tpu.memory_space<vmem>>, vector<8x128xf32>
    %cst_89 = arith.constant dense<0.000000e+00> : vector<8x128xf32>
    %413 = tpu.matmul %408, %7, %cst_89 {dimension_numbers = #tpu.dot_dimension_numbers<[1], [0], [0], [1], [0, 0, 1, 1], [], []>} : vector<8x32xf32>, vector<32x128xf32>, vector<8x128xf32> -> vector<8x128xf32>
    %414 = arith.addf %412, %413 : vector<8x128xf32>
    %415 = arith.negf %414 : vector<8x128xf32>
    %416 = math.exp %415 : vector<8x128xf32>
    %cst_90 = arith.constant 1.000000e+00 : f32
    %417 = vector.broadcast %cst_90 : f32 to vector<8x128xf32>
    %418 = arith.addf %417, %416 : vector<8x128xf32>
    %419 = arith.divf %417, %418 : vector<8x128xf32>
    %420 = math.tanh %414 : vector<8x128xf32>
    %421 = vector.extract_strided_slice %419 {offsets = [0, 0], sizes = [8, 32], strides = [1, 1]} : vector<8x128xf32> to vector<8x32xf32>
    %422 = vector.extract_strided_slice %419 {offsets = [0, 32], sizes = [8, 32], strides = [1, 1]} : vector<8x128xf32> to vector<8x32xf32>
    %423 = vector.extract_strided_slice %420 {offsets = [0, 64], sizes = [8, 32], strides = [1, 1]} : vector<8x128xf32> to vector<8x32xf32>
    %424 = vector.extract_strided_slice %419 {offsets = [0, 96], sizes = [8, 32], strides = [1, 1]} : vector<8x128xf32> to vector<8x32xf32>
    %425 = arith.mulf %422, %406 : vector<8x32xf32>
    %426 = arith.mulf %421, %423 : vector<8x32xf32>
    %427 = arith.addf %425, %426 : vector<8x32xf32>
    %428 = math.tanh %427 : vector<8x32xf32>
    %429 = arith.mulf %424, %428 : vector<8x32xf32>
    %c20_i32 = arith.constant 20 : i32
    %c8_i32_91 = arith.constant 8 : i32
    %430 = arith.muli %c20_i32, %c8_i32_91 : i32
    %431 = tpu.assume_multiple %430, 8 : i32
    %432 = arith.index_cast %431 : i32 to index
    %c0_92 = arith.constant 0 : index
    %433 = vector.load %arg6[%432, %c0_92] : memref<256x128xf32, #tpu.memory_space<vmem>>, vector<8x128xf32>
    %cst_93 = arith.constant dense<0.000000e+00> : vector<8x128xf32>
    %434 = tpu.matmul %429, %7, %cst_93 {dimension_numbers = #tpu.dot_dimension_numbers<[1], [0], [0], [1], [0, 0, 1, 1], [], []>} : vector<8x32xf32>, vector<32x128xf32>, vector<8x128xf32> -> vector<8x128xf32>
    %435 = arith.addf %433, %434 : vector<8x128xf32>
    %436 = arith.negf %435 : vector<8x128xf32>
    %437 = math.exp %436 : vector<8x128xf32>
    %cst_94 = arith.constant 1.000000e+00 : f32
    %438 = vector.broadcast %cst_94 : f32 to vector<8x128xf32>
    %439 = arith.addf %438, %437 : vector<8x128xf32>
    %440 = arith.divf %438, %439 : vector<8x128xf32>
    %441 = math.tanh %435 : vector<8x128xf32>
    %442 = vector.extract_strided_slice %440 {offsets = [0, 0], sizes = [8, 32], strides = [1, 1]} : vector<8x128xf32> to vector<8x32xf32>
    %443 = vector.extract_strided_slice %440 {offsets = [0, 32], sizes = [8, 32], strides = [1, 1]} : vector<8x128xf32> to vector<8x32xf32>
    %444 = vector.extract_strided_slice %441 {offsets = [0, 64], sizes = [8, 32], strides = [1, 1]} : vector<8x128xf32> to vector<8x32xf32>
    %445 = vector.extract_strided_slice %440 {offsets = [0, 96], sizes = [8, 32], strides = [1, 1]} : vector<8x128xf32> to vector<8x32xf32>
    %446 = arith.mulf %443, %427 : vector<8x32xf32>
    %447 = arith.mulf %442, %444 : vector<8x32xf32>
    %448 = arith.addf %446, %447 : vector<8x32xf32>
    %449 = math.tanh %448 : vector<8x32xf32>
    %450 = arith.mulf %445, %449 : vector<8x32xf32>
    %c21_i32 = arith.constant 21 : i32
    %c8_i32_95 = arith.constant 8 : i32
    %451 = arith.muli %c21_i32, %c8_i32_95 : i32
    %452 = tpu.assume_multiple %451, 8 : i32
    %453 = arith.index_cast %452 : i32 to index
    %c0_96 = arith.constant 0 : index
    %454 = vector.load %arg6[%453, %c0_96] : memref<256x128xf32, #tpu.memory_space<vmem>>, vector<8x128xf32>
    %cst_97 = arith.constant dense<0.000000e+00> : vector<8x128xf32>
    %455 = tpu.matmul %450, %7, %cst_97 {dimension_numbers = #tpu.dot_dimension_numbers<[1], [0], [0], [1], [0, 0, 1, 1], [], []>} : vector<8x32xf32>, vector<32x128xf32>, vector<8x128xf32> -> vector<8x128xf32>
    %456 = arith.addf %454, %455 : vector<8x128xf32>
    %457 = arith.negf %456 : vector<8x128xf32>
    %458 = math.exp %457 : vector<8x128xf32>
    %cst_98 = arith.constant 1.000000e+00 : f32
    %459 = vector.broadcast %cst_98 : f32 to vector<8x128xf32>
    %460 = arith.addf %459, %458 : vector<8x128xf32>
    %461 = arith.divf %459, %460 : vector<8x128xf32>
    %462 = math.tanh %456 : vector<8x128xf32>
    %463 = vector.extract_strided_slice %461 {offsets = [0, 0], sizes = [8, 32], strides = [1, 1]} : vector<8x128xf32> to vector<8x32xf32>
    %464 = vector.extract_strided_slice %461 {offsets = [0, 32], sizes = [8, 32], strides = [1, 1]} : vector<8x128xf32> to vector<8x32xf32>
    %465 = vector.extract_strided_slice %462 {offsets = [0, 64], sizes = [8, 32], strides = [1, 1]} : vector<8x128xf32> to vector<8x32xf32>
    %466 = vector.extract_strided_slice %461 {offsets = [0, 96], sizes = [8, 32], strides = [1, 1]} : vector<8x128xf32> to vector<8x32xf32>
    %467 = arith.mulf %464, %448 : vector<8x32xf32>
    %468 = arith.mulf %463, %465 : vector<8x32xf32>
    %469 = arith.addf %467, %468 : vector<8x32xf32>
    %470 = math.tanh %469 : vector<8x32xf32>
    %471 = arith.mulf %466, %470 : vector<8x32xf32>
    %c22_i32 = arith.constant 22 : i32
    %c8_i32_99 = arith.constant 8 : i32
    %472 = arith.muli %c22_i32, %c8_i32_99 : i32
    %473 = tpu.assume_multiple %472, 8 : i32
    %474 = arith.index_cast %473 : i32 to index
    %c0_100 = arith.constant 0 : index
    %475 = vector.load %arg6[%474, %c0_100] : memref<256x128xf32, #tpu.memory_space<vmem>>, vector<8x128xf32>
    %cst_101 = arith.constant dense<0.000000e+00> : vector<8x128xf32>
    %476 = tpu.matmul %471, %7, %cst_101 {dimension_numbers = #tpu.dot_dimension_numbers<[1], [0], [0], [1], [0, 0, 1, 1], [], []>} : vector<8x32xf32>, vector<32x128xf32>, vector<8x128xf32> -> vector<8x128xf32>
    %477 = arith.addf %475, %476 : vector<8x128xf32>
    %478 = arith.negf %477 : vector<8x128xf32>
    %479 = math.exp %478 : vector<8x128xf32>
    %cst_102 = arith.constant 1.000000e+00 : f32
    %480 = vector.broadcast %cst_102 : f32 to vector<8x128xf32>
    %481 = arith.addf %480, %479 : vector<8x128xf32>
    %482 = arith.divf %480, %481 : vector<8x128xf32>
    %483 = math.tanh %477 : vector<8x128xf32>
    %484 = vector.extract_strided_slice %482 {offsets = [0, 0], sizes = [8, 32], strides = [1, 1]} : vector<8x128xf32> to vector<8x32xf32>
    %485 = vector.extract_strided_slice %482 {offsets = [0, 32], sizes = [8, 32], strides = [1, 1]} : vector<8x128xf32> to vector<8x32xf32>
    %486 = vector.extract_strided_slice %483 {offsets = [0, 64], sizes = [8, 32], strides = [1, 1]} : vector<8x128xf32> to vector<8x32xf32>
    %487 = vector.extract_strided_slice %482 {offsets = [0, 96], sizes = [8, 32], strides = [1, 1]} : vector<8x128xf32> to vector<8x32xf32>
    %488 = arith.mulf %485, %469 : vector<8x32xf32>
    %489 = arith.mulf %484, %486 : vector<8x32xf32>
    %490 = arith.addf %488, %489 : vector<8x32xf32>
    %491 = math.tanh %490 : vector<8x32xf32>
    %492 = arith.mulf %487, %491 : vector<8x32xf32>
    %c23_i32 = arith.constant 23 : i32
    %c8_i32_103 = arith.constant 8 : i32
    %493 = arith.muli %c23_i32, %c8_i32_103 : i32
    %494 = tpu.assume_multiple %493, 8 : i32
    %495 = arith.index_cast %494 : i32 to index
    %c0_104 = arith.constant 0 : index
    %496 = vector.load %arg6[%495, %c0_104] : memref<256x128xf32, #tpu.memory_space<vmem>>, vector<8x128xf32>
    %cst_105 = arith.constant dense<0.000000e+00> : vector<8x128xf32>
    %497 = tpu.matmul %492, %7, %cst_105 {dimension_numbers = #tpu.dot_dimension_numbers<[1], [0], [0], [1], [0, 0, 1, 1], [], []>} : vector<8x32xf32>, vector<32x128xf32>, vector<8x128xf32> -> vector<8x128xf32>
    %498 = arith.addf %496, %497 : vector<8x128xf32>
    %499 = arith.negf %498 : vector<8x128xf32>
    %500 = math.exp %499 : vector<8x128xf32>
    %cst_106 = arith.constant 1.000000e+00 : f32
    %501 = vector.broadcast %cst_106 : f32 to vector<8x128xf32>
    %502 = arith.addf %501, %500 : vector<8x128xf32>
    %503 = arith.divf %501, %502 : vector<8x128xf32>
    %504 = math.tanh %498 : vector<8x128xf32>
    %505 = vector.extract_strided_slice %503 {offsets = [0, 0], sizes = [8, 32], strides = [1, 1]} : vector<8x128xf32> to vector<8x32xf32>
    %506 = vector.extract_strided_slice %503 {offsets = [0, 32], sizes = [8, 32], strides = [1, 1]} : vector<8x128xf32> to vector<8x32xf32>
    %507 = vector.extract_strided_slice %504 {offsets = [0, 64], sizes = [8, 32], strides = [1, 1]} : vector<8x128xf32> to vector<8x32xf32>
    %508 = vector.extract_strided_slice %503 {offsets = [0, 96], sizes = [8, 32], strides = [1, 1]} : vector<8x128xf32> to vector<8x32xf32>
    %509 = arith.mulf %506, %490 : vector<8x32xf32>
    %510 = arith.mulf %505, %507 : vector<8x32xf32>
    %511 = arith.addf %509, %510 : vector<8x32xf32>
    %512 = math.tanh %511 : vector<8x32xf32>
    %513 = arith.mulf %508, %512 : vector<8x32xf32>
    %c24_i32 = arith.constant 24 : i32
    %c8_i32_107 = arith.constant 8 : i32
    %514 = arith.muli %c24_i32, %c8_i32_107 : i32
    %515 = tpu.assume_multiple %514, 8 : i32
    %516 = arith.index_cast %515 : i32 to index
    %c0_108 = arith.constant 0 : index
    %517 = vector.load %arg6[%516, %c0_108] : memref<256x128xf32, #tpu.memory_space<vmem>>, vector<8x128xf32>
    %cst_109 = arith.constant dense<0.000000e+00> : vector<8x128xf32>
    %518 = tpu.matmul %513, %7, %cst_109 {dimension_numbers = #tpu.dot_dimension_numbers<[1], [0], [0], [1], [0, 0, 1, 1], [], []>} : vector<8x32xf32>, vector<32x128xf32>, vector<8x128xf32> -> vector<8x128xf32>
    %519 = arith.addf %517, %518 : vector<8x128xf32>
    %520 = arith.negf %519 : vector<8x128xf32>
    %521 = math.exp %520 : vector<8x128xf32>
    %cst_110 = arith.constant 1.000000e+00 : f32
    %522 = vector.broadcast %cst_110 : f32 to vector<8x128xf32>
    %523 = arith.addf %522, %521 : vector<8x128xf32>
    %524 = arith.divf %522, %523 : vector<8x128xf32>
    %525 = math.tanh %519 : vector<8x128xf32>
    %526 = vector.extract_strided_slice %524 {offsets = [0, 0], sizes = [8, 32], strides = [1, 1]} : vector<8x128xf32> to vector<8x32xf32>
    %527 = vector.extract_strided_slice %524 {offsets = [0, 32], sizes = [8, 32], strides = [1, 1]} : vector<8x128xf32> to vector<8x32xf32>
    %528 = vector.extract_strided_slice %525 {offsets = [0, 64], sizes = [8, 32], strides = [1, 1]} : vector<8x128xf32> to vector<8x32xf32>
    %529 = vector.extract_strided_slice %524 {offsets = [0, 96], sizes = [8, 32], strides = [1, 1]} : vector<8x128xf32> to vector<8x32xf32>
    %530 = arith.mulf %527, %511 : vector<8x32xf32>
    %531 = arith.mulf %526, %528 : vector<8x32xf32>
    %532 = arith.addf %530, %531 : vector<8x32xf32>
    %533 = math.tanh %532 : vector<8x32xf32>
    %534 = arith.mulf %529, %533 : vector<8x32xf32>
    %c25_i32 = arith.constant 25 : i32
    %c8_i32_111 = arith.constant 8 : i32
    %535 = arith.muli %c25_i32, %c8_i32_111 : i32
    %536 = tpu.assume_multiple %535, 8 : i32
    %537 = arith.index_cast %536 : i32 to index
    %c0_112 = arith.constant 0 : index
    %538 = vector.load %arg6[%537, %c0_112] : memref<256x128xf32, #tpu.memory_space<vmem>>, vector<8x128xf32>
    %cst_113 = arith.constant dense<0.000000e+00> : vector<8x128xf32>
    %539 = tpu.matmul %534, %7, %cst_113 {dimension_numbers = #tpu.dot_dimension_numbers<[1], [0], [0], [1], [0, 0, 1, 1], [], []>} : vector<8x32xf32>, vector<32x128xf32>, vector<8x128xf32> -> vector<8x128xf32>
    %540 = arith.addf %538, %539 : vector<8x128xf32>
    %541 = arith.negf %540 : vector<8x128xf32>
    %542 = math.exp %541 : vector<8x128xf32>
    %cst_114 = arith.constant 1.000000e+00 : f32
    %543 = vector.broadcast %cst_114 : f32 to vector<8x128xf32>
    %544 = arith.addf %543, %542 : vector<8x128xf32>
    %545 = arith.divf %543, %544 : vector<8x128xf32>
    %546 = math.tanh %540 : vector<8x128xf32>
    %547 = vector.extract_strided_slice %545 {offsets = [0, 0], sizes = [8, 32], strides = [1, 1]} : vector<8x128xf32> to vector<8x32xf32>
    %548 = vector.extract_strided_slice %545 {offsets = [0, 32], sizes = [8, 32], strides = [1, 1]} : vector<8x128xf32> to vector<8x32xf32>
    %549 = vector.extract_strided_slice %546 {offsets = [0, 64], sizes = [8, 32], strides = [1, 1]} : vector<8x128xf32> to vector<8x32xf32>
    %550 = vector.extract_strided_slice %545 {offsets = [0, 96], sizes = [8, 32], strides = [1, 1]} : vector<8x128xf32> to vector<8x32xf32>
    %551 = arith.mulf %548, %532 : vector<8x32xf32>
    %552 = arith.mulf %547, %549 : vector<8x32xf32>
    %553 = arith.addf %551, %552 : vector<8x32xf32>
    %554 = math.tanh %553 : vector<8x32xf32>
    %555 = arith.mulf %550, %554 : vector<8x32xf32>
    %c26_i32 = arith.constant 26 : i32
    %c8_i32_115 = arith.constant 8 : i32
    %556 = arith.muli %c26_i32, %c8_i32_115 : i32
    %557 = tpu.assume_multiple %556, 8 : i32
    %558 = arith.index_cast %557 : i32 to index
    %c0_116 = arith.constant 0 : index
    %559 = vector.load %arg6[%558, %c0_116] : memref<256x128xf32, #tpu.memory_space<vmem>>, vector<8x128xf32>
    %cst_117 = arith.constant dense<0.000000e+00> : vector<8x128xf32>
    %560 = tpu.matmul %555, %7, %cst_117 {dimension_numbers = #tpu.dot_dimension_numbers<[1], [0], [0], [1], [0, 0, 1, 1], [], []>} : vector<8x32xf32>, vector<32x128xf32>, vector<8x128xf32> -> vector<8x128xf32>
    %561 = arith.addf %559, %560 : vector<8x128xf32>
    %562 = arith.negf %561 : vector<8x128xf32>
    %563 = math.exp %562 : vector<8x128xf32>
    %cst_118 = arith.constant 1.000000e+00 : f32
    %564 = vector.broadcast %cst_118 : f32 to vector<8x128xf32>
    %565 = arith.addf %564, %563 : vector<8x128xf32>
    %566 = arith.divf %564, %565 : vector<8x128xf32>
    %567 = math.tanh %561 : vector<8x128xf32>
    %568 = vector.extract_strided_slice %566 {offsets = [0, 0], sizes = [8, 32], strides = [1, 1]} : vector<8x128xf32> to vector<8x32xf32>
    %569 = vector.extract_strided_slice %566 {offsets = [0, 32], sizes = [8, 32], strides = [1, 1]} : vector<8x128xf32> to vector<8x32xf32>
    %570 = vector.extract_strided_slice %567 {offsets = [0, 64], sizes = [8, 32], strides = [1, 1]} : vector<8x128xf32> to vector<8x32xf32>
    %571 = vector.extract_strided_slice %566 {offsets = [0, 96], sizes = [8, 32], strides = [1, 1]} : vector<8x128xf32> to vector<8x32xf32>
    %572 = arith.mulf %569, %553 : vector<8x32xf32>
    %573 = arith.mulf %568, %570 : vector<8x32xf32>
    %574 = arith.addf %572, %573 : vector<8x32xf32>
    %575 = math.tanh %574 : vector<8x32xf32>
    %576 = arith.mulf %571, %575 : vector<8x32xf32>
    %c27_i32 = arith.constant 27 : i32
    %c8_i32_119 = arith.constant 8 : i32
    %577 = arith.muli %c27_i32, %c8_i32_119 : i32
    %578 = tpu.assume_multiple %577, 8 : i32
    %579 = arith.index_cast %578 : i32 to index
    %c0_120 = arith.constant 0 : index
    %580 = vector.load %arg6[%579, %c0_120] : memref<256x128xf32, #tpu.memory_space<vmem>>, vector<8x128xf32>
    %cst_121 = arith.constant dense<0.000000e+00> : vector<8x128xf32>
    %581 = tpu.matmul %576, %7, %cst_121 {dimension_numbers = #tpu.dot_dimension_numbers<[1], [0], [0], [1], [0, 0, 1, 1], [], []>} : vector<8x32xf32>, vector<32x128xf32>, vector<8x128xf32> -> vector<8x128xf32>
    %582 = arith.addf %580, %581 : vector<8x128xf32>
    %583 = arith.negf %582 : vector<8x128xf32>
    %584 = math.exp %583 : vector<8x128xf32>
    %cst_122 = arith.constant 1.000000e+00 : f32
    %585 = vector.broadcast %cst_122 : f32 to vector<8x128xf32>
    %586 = arith.addf %585, %584 : vector<8x128xf32>
    %587 = arith.divf %585, %586 : vector<8x128xf32>
    %588 = math.tanh %582 : vector<8x128xf32>
    %589 = vector.extract_strided_slice %587 {offsets = [0, 0], sizes = [8, 32], strides = [1, 1]} : vector<8x128xf32> to vector<8x32xf32>
    %590 = vector.extract_strided_slice %587 {offsets = [0, 32], sizes = [8, 32], strides = [1, 1]} : vector<8x128xf32> to vector<8x32xf32>
    %591 = vector.extract_strided_slice %588 {offsets = [0, 64], sizes = [8, 32], strides = [1, 1]} : vector<8x128xf32> to vector<8x32xf32>
    %592 = vector.extract_strided_slice %587 {offsets = [0, 96], sizes = [8, 32], strides = [1, 1]} : vector<8x128xf32> to vector<8x32xf32>
    %593 = arith.mulf %590, %574 : vector<8x32xf32>
    %594 = arith.mulf %589, %591 : vector<8x32xf32>
    %595 = arith.addf %593, %594 : vector<8x32xf32>
    %596 = math.tanh %595 : vector<8x32xf32>
    %597 = arith.mulf %592, %596 : vector<8x32xf32>
    %c28_i32 = arith.constant 28 : i32
    %c8_i32_123 = arith.constant 8 : i32
    %598 = arith.muli %c28_i32, %c8_i32_123 : i32
    %599 = tpu.assume_multiple %598, 8 : i32
    %600 = arith.index_cast %599 : i32 to index
    %c0_124 = arith.constant 0 : index
    %601 = vector.load %arg6[%600, %c0_124] : memref<256x128xf32, #tpu.memory_space<vmem>>, vector<8x128xf32>
    %cst_125 = arith.constant dense<0.000000e+00> : vector<8x128xf32>
    %602 = tpu.matmul %597, %7, %cst_125 {dimension_numbers = #tpu.dot_dimension_numbers<[1], [0], [0], [1], [0, 0, 1, 1], [], []>} : vector<8x32xf32>, vector<32x128xf32>, vector<8x128xf32> -> vector<8x128xf32>
    %603 = arith.addf %601, %602 : vector<8x128xf32>
    %604 = arith.negf %603 : vector<8x128xf32>
    %605 = math.exp %604 : vector<8x128xf32>
    %cst_126 = arith.constant 1.000000e+00 : f32
    %606 = vector.broadcast %cst_126 : f32 to vector<8x128xf32>
    %607 = arith.addf %606, %605 : vector<8x128xf32>
    %608 = arith.divf %606, %607 : vector<8x128xf32>
    %609 = math.tanh %603 : vector<8x128xf32>
    %610 = vector.extract_strided_slice %608 {offsets = [0, 0], sizes = [8, 32], strides = [1, 1]} : vector<8x128xf32> to vector<8x32xf32>
    %611 = vector.extract_strided_slice %608 {offsets = [0, 32], sizes = [8, 32], strides = [1, 1]} : vector<8x128xf32> to vector<8x32xf32>
    %612 = vector.extract_strided_slice %609 {offsets = [0, 64], sizes = [8, 32], strides = [1, 1]} : vector<8x128xf32> to vector<8x32xf32>
    %613 = vector.extract_strided_slice %608 {offsets = [0, 96], sizes = [8, 32], strides = [1, 1]} : vector<8x128xf32> to vector<8x32xf32>
    %614 = arith.mulf %611, %595 : vector<8x32xf32>
    %615 = arith.mulf %610, %612 : vector<8x32xf32>
    %616 = arith.addf %614, %615 : vector<8x32xf32>
    %617 = math.tanh %616 : vector<8x32xf32>
    %618 = arith.mulf %613, %617 : vector<8x32xf32>
    %c29_i32 = arith.constant 29 : i32
    %c8_i32_127 = arith.constant 8 : i32
    %619 = arith.muli %c29_i32, %c8_i32_127 : i32
    %620 = tpu.assume_multiple %619, 8 : i32
    %621 = arith.index_cast %620 : i32 to index
    %c0_128 = arith.constant 0 : index
    %622 = vector.load %arg6[%621, %c0_128] : memref<256x128xf32, #tpu.memory_space<vmem>>, vector<8x128xf32>
    %cst_129 = arith.constant dense<0.000000e+00> : vector<8x128xf32>
    %623 = tpu.matmul %618, %7, %cst_129 {dimension_numbers = #tpu.dot_dimension_numbers<[1], [0], [0], [1], [0, 0, 1, 1], [], []>} : vector<8x32xf32>, vector<32x128xf32>, vector<8x128xf32> -> vector<8x128xf32>
    %624 = arith.addf %622, %623 : vector<8x128xf32>
    %625 = arith.negf %624 : vector<8x128xf32>
    %626 = math.exp %625 : vector<8x128xf32>
    %cst_130 = arith.constant 1.000000e+00 : f32
    %627 = vector.broadcast %cst_130 : f32 to vector<8x128xf32>
    %628 = arith.addf %627, %626 : vector<8x128xf32>
    %629 = arith.divf %627, %628 : vector<8x128xf32>
    %630 = math.tanh %624 : vector<8x128xf32>
    %631 = vector.extract_strided_slice %629 {offsets = [0, 0], sizes = [8, 32], strides = [1, 1]} : vector<8x128xf32> to vector<8x32xf32>
    %632 = vector.extract_strided_slice %629 {offsets = [0, 32], sizes = [8, 32], strides = [1, 1]} : vector<8x128xf32> to vector<8x32xf32>
    %633 = vector.extract_strided_slice %630 {offsets = [0, 64], sizes = [8, 32], strides = [1, 1]} : vector<8x128xf32> to vector<8x32xf32>
    %634 = vector.extract_strided_slice %629 {offsets = [0, 96], sizes = [8, 32], strides = [1, 1]} : vector<8x128xf32> to vector<8x32xf32>
    %635 = arith.mulf %632, %616 : vector<8x32xf32>
    %636 = arith.mulf %631, %633 : vector<8x32xf32>
    %637 = arith.addf %635, %636 : vector<8x32xf32>
    %638 = math.tanh %637 : vector<8x32xf32>
    %639 = arith.mulf %634, %638 : vector<8x32xf32>
    %c30_i32 = arith.constant 30 : i32
    %c8_i32_131 = arith.constant 8 : i32
    %640 = arith.muli %c30_i32, %c8_i32_131 : i32
    %641 = tpu.assume_multiple %640, 8 : i32
    %642 = arith.index_cast %641 : i32 to index
    %c0_132 = arith.constant 0 : index
    %643 = vector.load %arg6[%642, %c0_132] : memref<256x128xf32, #tpu.memory_space<vmem>>, vector<8x128xf32>
    %cst_133 = arith.constant dense<0.000000e+00> : vector<8x128xf32>
    %644 = tpu.matmul %639, %7, %cst_133 {dimension_numbers = #tpu.dot_dimension_numbers<[1], [0], [0], [1], [0, 0, 1, 1], [], []>} : vector<8x32xf32>, vector<32x128xf32>, vector<8x128xf32> -> vector<8x128xf32>
    %645 = arith.addf %643, %644 : vector<8x128xf32>
    %646 = arith.negf %645 : vector<8x128xf32>
    %647 = math.exp %646 : vector<8x128xf32>
    %cst_134 = arith.constant 1.000000e+00 : f32
    %648 = vector.broadcast %cst_134 : f32 to vector<8x128xf32>
    %649 = arith.addf %648, %647 : vector<8x128xf32>
    %650 = arith.divf %648, %649 : vector<8x128xf32>
    %651 = math.tanh %645 : vector<8x128xf32>
    %652 = vector.extract_strided_slice %650 {offsets = [0, 0], sizes = [8, 32], strides = [1, 1]} : vector<8x128xf32> to vector<8x32xf32>
    %653 = vector.extract_strided_slice %650 {offsets = [0, 32], sizes = [8, 32], strides = [1, 1]} : vector<8x128xf32> to vector<8x32xf32>
    %654 = vector.extract_strided_slice %651 {offsets = [0, 64], sizes = [8, 32], strides = [1, 1]} : vector<8x128xf32> to vector<8x32xf32>
    %655 = vector.extract_strided_slice %650 {offsets = [0, 96], sizes = [8, 32], strides = [1, 1]} : vector<8x128xf32> to vector<8x32xf32>
    %656 = arith.mulf %653, %637 : vector<8x32xf32>
    %657 = arith.mulf %652, %654 : vector<8x32xf32>
    %658 = arith.addf %656, %657 : vector<8x32xf32>
    %659 = math.tanh %658 : vector<8x32xf32>
    %660 = arith.mulf %655, %659 : vector<8x32xf32>
    %c31_i32 = arith.constant 31 : i32
    %c8_i32_135 = arith.constant 8 : i32
    %661 = arith.muli %c31_i32, %c8_i32_135 : i32
    %662 = tpu.assume_multiple %661, 8 : i32
    %663 = arith.index_cast %662 : i32 to index
    %c0_136 = arith.constant 0 : index
    %664 = vector.load %arg6[%663, %c0_136] : memref<256x128xf32, #tpu.memory_space<vmem>>, vector<8x128xf32>
    %cst_137 = arith.constant dense<0.000000e+00> : vector<8x128xf32>
    %665 = tpu.matmul %660, %7, %cst_137 {dimension_numbers = #tpu.dot_dimension_numbers<[1], [0], [0], [1], [0, 0, 1, 1], [], []>} : vector<8x32xf32>, vector<32x128xf32>, vector<8x128xf32> -> vector<8x128xf32>
    %666 = arith.addf %664, %665 : vector<8x128xf32>
    %667 = arith.negf %666 : vector<8x128xf32>
    %668 = math.exp %667 : vector<8x128xf32>
    %cst_138 = arith.constant 1.000000e+00 : f32
    %669 = vector.broadcast %cst_138 : f32 to vector<8x128xf32>
    %670 = arith.addf %669, %668 : vector<8x128xf32>
    %671 = arith.divf %669, %670 : vector<8x128xf32>
    %672 = math.tanh %666 : vector<8x128xf32>
    %673 = vector.extract_strided_slice %671 {offsets = [0, 0], sizes = [8, 32], strides = [1, 1]} : vector<8x128xf32> to vector<8x32xf32>
    %674 = vector.extract_strided_slice %671 {offsets = [0, 32], sizes = [8, 32], strides = [1, 1]} : vector<8x128xf32> to vector<8x32xf32>
    %675 = vector.extract_strided_slice %672 {offsets = [0, 64], sizes = [8, 32], strides = [1, 1]} : vector<8x128xf32> to vector<8x32xf32>
    %676 = vector.extract_strided_slice %671 {offsets = [0, 96], sizes = [8, 32], strides = [1, 1]} : vector<8x128xf32> to vector<8x32xf32>
    %677 = arith.mulf %674, %658 : vector<8x32xf32>
    %678 = arith.mulf %673, %675 : vector<8x32xf32>
    %679 = arith.addf %677, %678 : vector<8x32xf32>
    %680 = math.tanh %679 : vector<8x32xf32>
    %681 = arith.mulf %676, %680 : vector<8x32xf32>
    %c32_i32 = arith.constant 32 : i32
    %c0_139 = arith.constant 0 : index
    %c0_140 = arith.constant 0 : index
    %682 = vector.load %arg5[%c0_139, %c0_140] : memref<8x32xf32, #tpu.memory_space<vmem>>, vector<8x32xf32>
    tpu.vector_store %arg5[%c0_139, %c0_140], %681 {strides = array<i32>} : memref<8x32xf32, #tpu.memory_space<vmem>>, vector<8x32xf32>,
    return
  }
  func.func @transform_0(%arg0: i32) -> (i32, i32) {
    %c0_i32 = arith.constant 0 : i32
    %c0_i32_0 = arith.constant 0 : i32
    %c0_i32_1 = arith.constant 0 : i32
    return %c0_i32, %c0_i32_0 : i32, i32
  }
  func.func @transform_1(%arg0: i32) -> (i32, i32) {
    %c0_i32 = arith.constant 0 : i32
    %c0_i32_0 = arith.constant 0 : i32
    %c0_i32_1 = arith.constant 0 : i32
    return %c0_i32, %c0_i32_0 : i32, i32
  }
  func.func @transform_2(%arg0: i32) -> (i32, i32) {
    %c0_i32 = arith.constant 0 : i32
    %c0_i32_0 = arith.constant 0 : i32
    %c0_i32_1 = arith.constant 0 : i32
    return %c0_i32, %c0_i32_0 : i32, i32
  }
  func.func @transform_3(%arg0: i32) -> (i32, i32) {
    %c0_i32 = arith.constant 0 : i32
    %c0_i32_0 = arith.constant 0 : i32
    %c0_i32_1 = arith.constant 0 : i32
    return %c0_i32, %c0_i32_0 : i32, i32
  }
  func.func @transform_4(%arg0: i32) -> (i32, i32) {
    %c0_i32 = arith.constant 0 : i32
    %c0_i32_0 = arith.constant 0 : i32
    %c0_i32_1 = arith.constant 0 : i32
    return %c0_i32, %c0_i32_0 : i32, i32
  }
}

</mosaic_0001>

<bundles_post_ra>
// kernel: rnn_forward.1
= control target key start
LH: loop header
LB: loop body
LE: loop exit
PB: predicated region body
PF: predicated region fallthrough
CT: control target
= control target key end

     0   :  { %v4651_v0 = vmov 0.0   ;;  %vm4652_vm0 = vmmov 0   ;;  %vm58_vm1 = vcmask 130048   ;;  %s4653_s6 = smov 64   ;;  %s4654_s7 = smov 32   ;;  %vm417_vm2 = vcmask 261120   ;;  %s5475_s1 = inlined_call_operand.vmem [shape: f32[16,128], index: 1, kind: input, shape index: {}]   ;;  %s5476_s2 = inlined_call_operand.vmem [shape: f32[32,128], index: 2, kind: input, shape index: {}]   ;;  %s5477_s0 = inlined_call_operand.vmem [shape: f32[256,16], index: 0, kind: input, shape index: {}]   ;;  %s5478_s3 = inlined_call_operand.vmem [shape: f32[1,128], index: 3, kind: input, shape index: {}]   ;;  %s5479_s4 = inlined_call_operand.vmem [shape: f32[8,32], index: 4, kind: output, shape index: {}]  }
   0x1   :  { %4029 = vmatprep.subr.mxu1 %v4651_v0  ;;  %v50_v1 = vld [vmem:[%s5475_s1 + $0x8] sm:$0xff]  ;;  %v4687_v2 = vld [vmem:[%s5476_s2 + $0x18] sm:$0xff]  ;;  %v49_v3 = vld [vmem:[%s5475_s1] sm:$0xff]  ;;  %4037 = vmatprep.mubr.msk.f32.mxu1 %vm4652_vm0, %v4651_v0 }
   0x2   :  { %3977 = vmatprep.subr.mxu0 %v50_v1  ;;  %4030 = vmatpush3.msra.mxu1 %v4687_v2  ;;  %v4698_v4 = vld [vmem:[%s5476_s2 + $0x10] sm:$0xff]  ;;  %v17_v5 = vld [vmem:[%s5477_s0] sm:$0xff]  ;;  %v18_v6 = vld [vmem:[%s5477_s0 + $0x8] sm:$0xff] }
   0x3   :  { %3978 = vmatpush3.msra.mxu0 %v50_v1  ;;  %4031 = vmatprep.subr.mxu1 %v4651_v0  ;;  %v4711_v7 = vld [vmem:[%s5476_s2 + $0x8] sm:$0xff]  ;;  %v4719_v8 = vld [vmem:[%s5476_s2] sm:$0xff]  ;;  %v19_v44 = vld [vmem:[%s5477_s0 + $0x10] sm:$0xff] }
   0x4   :  { %3979 = vmatprep.subr.mxu0 %v49_v3  ;;  %4032 = vmatpush3.msra.mxu1 %v4698_v4  ;;  %v4748_v10 = vld [vmem:[%s5478_s3] ss:$0 sm:$0xff]  ;;  %v20_v45 = vld [vmem:[%s5477_s0 + $0x18] sm:$0xff] }
   0x5   :  { %3980 = vmatpush3.msra.mxu0 %v49_v3  ;;  %3981 = vmatprep.mubr.msk.f32.mxu0 %vm58_vm1, %v17_v5 }
   0x6   :  { %4033 = vmatprep.subr.mxu1 %v4651_v0  ;;  %3982 = vmatmul.mubr.msk.f32.vlgmr.msra.gmra.mxu0 %vm58_vm1, %v18_v6 }
   0x7   :  { %4034 = vmatpush3.msra.mxu1 %v4711_v7  ;;  %4117 = vmatprep.subr.mxu0 %v4651_v0 }
   0x8   :  { %4035 = vmatprep.subr.mxu1 %v4651_v0  ;;  %4118 = vmatpush3.msra.mxu0 %v4687_v2 }
   0x9   :  { %4036 = vmatpush3.msra.mxu1 %v4719_v8  ;;  %4119 = vmatprep.subr.mxu0 %v4651_v0 }
   0xa   :  { %4038 = vmatmul.mubr.f32.vlgmr.msra.gmra.mxu1 %v4651_v0  ;;  %4040 = vmatprep.subr.mxu1 %v4651_v0 }
   0xb   :  { %4041 = vmatpush3.msra.mxu1 %v4687_v2  ;;  %4048 = vmatprep.mubr.msk.f32.mxu1 %vm4652_vm0, %v4651_v0 }
   0xc   :  { %4042 = vmatprep.subr.mxu1 %v4651_v0  ;;  %4120 = vmatpush3.msra.mxu0 %v4698_v4 }
   0xd   :  { %4043 = vmatpush3.msra.mxu1 %v4698_v4  ;;  %4121 = vmatprep.subr.mxu0 %v4651_v0 }
   0xe   :  { %4044 = vmatprep.subr.mxu1 %v4651_v0  ;;  %4122 = vmatpush3.msra.mxu0 %v4711_v7 }
   0xf   :  { %4045 = vmatpush3.msra.mxu1 %v4711_v7  ;;  %4123 = vmatprep.subr.mxu0 %v4651_v0 }
  0x10   :  { %4046 = vmatprep.subr.mxu1 %v4651_v0  ;;  %4124 = vmatpush3.msra.mxu0 %v4719_v8 }
  0x11   :  { %4047 = vmatpush3.msra.mxu1 %v4719_v8  ;;  %4139 = vmatprep.subr.mxu0 %v4651_v0 }
  0x12   :  { %4051 = vmatprep.subr.mxu1 %v4651_v0  ;;  %3984 = vmatprep.mubr.msk.f32.mxu0 %vm58_vm1, %v19_v44 }
  0x13   :  { %3985 = vmatmul.mubr.msk.f32.gmra.mxu0 %vm58_vm1, %v20_v45 }
  0xc6   :  { %v3983_v9 = vpop.f32.mrf.mxu0 }
  0xc7   :  { %v227_v30 = vadd.f32 %v3983_v9, %v4748_v10 }
  0xc8   :  { %v221_v11 = vpop.f32.mrf.mxu0 }
  0xc9   :  { %v222_v12 = vadd.f32 %v4748_v10, %v221_v11 }
  0xca   :  { %v487_v13 = vpop.f32.mrf.mxu1 }
  0xcb   :  { %v491_v14 = vadd.f32 %v487_v13, %v222_v12 }
  0xcc   :  { %v4039_v15 = vpop.f32.mrf.mxu1 }
  0xcd   :  { %4385 = vtanh.f32 %v491_v14  ;;  %v3720_v17 = vmul.f32 -1.442695, %v491_v14 }
  0xcf   :  { %4387 = vpow2.f32 %v3720_v17 }
  0xd3   :  { %v3986_v50 = vpop.f32.mrf.mxu0 }
  0xd4   :  { %v237_v12 = vadd.f32 %v3986_v50, %v4748_v10 }
  0xd5   :  { %v231_v51 = vpop.f32.mrf.mxu0 }
  0xd6   :  { %v232_v52 = vadd.f32 %v4748_v10, %v231_v51 }
  0xda   :  { %v4386_v16 = vpop.eup %4385 }
  0xdb   :  { %501 = vrot.lane.b32.xlu0 %v4386_v16, %s4653_s6 }
  0xdc   :  { %v4388_v18 = vpop.eup %4387 }
  0xdd   :  { %v495_v19 = vadd.f32 1.0, %v4388_v18 }
  0xdf   :  { %4389 = vrcp.f32 %v495_v19 }
  0xec   :  { %v4390_v20 = vpop.eup %4389 }
  0xed   :  { %v499_v23 = vmul.f32 0.0, %v4390_v20 }
 0x14d   :  { %v502_v21 = vpop.permute.xlu0 %501 }
 0x14e   :  { %v504_v22 = vmul.f32 %v4390_v20, %v502_v21 }
 0x150   :  { %506 = vrot.lane.b32.xlu0 %v504_v22, %s4654_s7 }
 0x1c2   :  { %v507_v24 = vpop.permute.xlu0 %506 }
 0x1c3   :  { %v509_v25 = vadd.f32 %v507_v24, %v499_v23 }
 0x1c5   :  { %4391 = vtanh.f32 %v509_v25 }
 0x1d2   :  { %v4392_v26 = vpop.eup %4391 }
 0x1d3   :  { %512 = vrot.lane.b32.xlu1 %v4392_v26, %s4653_s6  ;;  %v21_v26 = vld [vmem:[%s5477_s0 + $0x20] sm:$0xff] }
 0x1d4   :  { %3987 = vmatprep.mubr.msk.f32.mxu0 %vm58_vm1, %v21_v26 }
 0x245   :  { %v513_v27 = vpop.permute.xlu1 %512 }
 0x246   :  { %v515_v28 = vmul.f32 %v4390_v20, %v513_v27  ;;  %v22_v27 = vld [vmem:[%s5477_s0 + $0x28] sm:$0xff] }
 0x247   :  { %3988 = vmatmul.mubr.msk.f32.gmra.mxu0 %vm58_vm1, %v22_v27 }
 0x248   :  { %519 = vrot.lane.b32.xlu1 %v515_v28, %s4654_s7 }
 0x2ba   :  { %v520_v29 = vpop.permute.xlu1 %519 }
 0x2bb   :  { %4049 = vmatmul.mubr.msk.f32.vlgmr.msra.gmra.mxu1 %vm417_vm2, %v520_v29 }
 0x2bc   :  { %4052 = vmatpush3.msra.mxu1 %v4687_v2  ;;  %4059 = vmatprep.mubr.msk.f32.mxu1 %vm4652_vm0, %v4651_v0 }
 0x2bd   :  { %4053 = vmatprep.subr.mxu1 %v4651_v0 }
 0x2be   :  { %4054 = vmatpush3.msra.mxu1 %v4698_v4 }
 0x2bf   :  { %4055 = vmatprep.subr.mxu1 %v4651_v0 }
 0x2c0   :  { %4056 = vmatpush3.msra.mxu1 %v4711_v7 }
 0x2c1   :  { %4057 = vmatprep.subr.mxu1 %v4651_v0 }
 0x2c2   :  { %4058 = vmatpush3.msra.mxu1 %v4719_v8 }
 0x2c3   :  { %4062 = vmatprep.subr.mxu1 %v4651_v0 }
 0x37b   :  { %v589_v31 = vpop.f32.mrf.mxu1 }
 0x37c   :  { %v593_v32 = vadd.f32 %v589_v31, %v227_v30 }
 0x37d   :  { %v4050_v33 = vpop.f32.mrf.mxu1 }
 0x37e   :  { %4393 = vtanh.f32 %v593_v32  ;;  %v3722_v35 = vmul.f32 -1.442695, %v593_v32  ;;  %v3989_v32 = vpop.f32.mrf.mxu0 }
 0x380   :  { %4395 = vpow2.f32 %v3722_v35  ;;  %v241_v33 = vpop.f32.mrf.mxu0 }
 0x38b   :  { %v4394_v34 = vpop.eup %4393 }
 0x38c   :  { %603 = vrot.lane.b32.xlu0 %v4394_v34, %s4653_s6  ;;  %v242_v34 = vadd.f32 %v4748_v10, %v241_v33 }
 0x38d   :  { %v4396_v36 = vpop.eup %4395 }
 0x38e   :  { %v597_v37 = vadd.f32 1.0, %v4396_v36 }
 0x390   :  { %4397 = vrcp.f32 %v597_v37 }
 0x39d   :  { %v4398_v38 = vpop.eup %4397 }
 0x39e   :  { %v601_v41 = vmul.f32 %v4398_v38, %v509_v25 }
 0x3fe   :  { %v604_v39 = vpop.permute.xlu0 %603 }
 0x3ff   :  { %v606_v40 = vmul.f32 %v4398_v38, %v604_v39 }
 0x401   :  { %608 = vrot.lane.b32.xlu1 %v606_v40, %s4654_s7 }
 0x473   :  { %v609_v42 = vpop.permute.xlu1 %608 }
 0x474   :  { %v611_v43 = vadd.f32 %v609_v42, %v601_v41 }
 0x476   :  { %4399 = vtanh.f32 %v611_v43 }
 0x483   :  { %v4400_v46 = vpop.eup %4399 }
 0x484   :  { %614 = vrot.lane.b32.xlu0 %v4400_v46, %s4653_s6 }
 0x4f6   :  { %v615_v47 = vpop.permute.xlu0 %614 }
 0x4f7   :  { %v617_v48 = vmul.f32 %v4398_v38, %v615_v47 }
 0x4f9   :  { %621 = vrot.lane.b32.xlu1 %v617_v48, %s4654_s7 }
 0x56b   :  { %v622_v49 = vpop.permute.xlu1 %621 }
 0x56c   :  { %4060 = vmatmul.mubr.msk.f32.vlgmr.msra.gmra.mxu1 %vm417_vm2, %v622_v49 }
 0x56d   :  { %4063 = vmatpush3.msra.mxu1 %v4687_v2  ;;  %4070 = vmatprep.mubr.msk.f32.mxu1 %vm4652_vm0, %v4651_v0 }
 0x56e   :  { %4064 = vmatprep.subr.mxu1 %v4651_v0 }
 0x56f   :  { %4065 = vmatpush3.msra.mxu1 %v4698_v4 }
 0x570   :  { %4066 = vmatprep.subr.mxu1 %v4651_v0 }
 0x571   :  { %4067 = vmatpush3.msra.mxu1 %v4711_v7 }
 0x572   :  { %4068 = vmatprep.subr.mxu1 %v4651_v0 }
 0x573   :  { %4069 = vmatpush3.msra.mxu1 %v4719_v8 }
 0x574   :  { %4073 = vmatprep.subr.mxu1 %v4651_v0 }
 0x62c   :  { %v691_v53 = vpop.f32.mrf.mxu1 }
 0x62d   :  { %v695_v54 = vadd.f32 %v691_v53, %v232_v52  ;;  %v247_v52 = vadd.f32 %v3989_v32, %v4748_v10 }
 0x62e   :  { %v4061_v55 = vpop.f32.mrf.mxu1 }
 0x62f   :  { %4401 = vtanh.f32 %v695_v54  ;;  %v3724_v57 = vmul.f32 -1.442695, %v695_v54 }
 0x631   :  { %4403 = vpow2.f32 %v3724_v57 }
 0x63c   :  { %v4402_v56 = vpop.eup %4401 }
 0x63d   :  { %705 = vrot.lane.b32.xlu0 %v4402_v56, %s4653_s6 }
 0x63e   :  { %v4404_v58 = vpop.eup %4403 }
 0x63f   :  { %v699_v59 = vadd.f32 1.0, %v4404_v58 }
 0x641   :  { %4405 = vrcp.f32 %v699_v59 }
 0x64e   :  { %v4406_v60 = vpop.eup %4405 }
 0x64f   :  { %v703_v63 = vmul.f32 %v4406_v60, %v611_v43 }
 0x6af   :  { %v706_v61 = vpop.permute.xlu0 %705 }
 0x6b0   :  { %v708_v62 = vmul.f32 %v4406_v60, %v706_v61 }
 0x6b2   :  { %710 = vrot.lane.b32.xlu1 %v708_v62, %s4654_s7 }
 0x724   :  { %v711_v1 = vpop.permute.xlu1 %710 }
 0x725   :  { %v713_v3 = vadd.f32 %v711_v1, %v703_v63 }
 0x727   :  { %4407 = vtanh.f32 %v713_v3 }
 0x734   :  { %v4408_v5 = vpop.eup %4407 }
 0x735   :  { %716 = vrot.lane.b32.xlu0 %v4408_v5, %s4653_s6  ;;  %v23_v5 = vld [vmem:[%s5477_s0 + $0x30] sm:$0xff] }
 0x736   :  { %3990 = vmatprep.mubr.msk.f32.mxu0 %vm58_vm1, %v23_v5  ;;  %v42_v5 = vld [vmem:[%s5477_s0 + $0xc8] sm:$0xff] }
 0x7a7   :  { %v717_v6 = vpop.permute.xlu0 %716 }
 0x7a8   :  { %v719_v9 = vmul.f32 %v4406_v60, %v717_v6  ;;  %v24_v6 = vld [vmem:[%s5477_s0 + $0x38] sm:$0xff] }
 0x7a9   :  { %3991 = vmatmul.mubr.msk.f32.gmra.mxu0 %vm58_vm1, %v24_v6  ;;  %v43_v6 = vld [vmem:[%s5477_s0 + $0xd0] sm:$0xff] }
 0x7aa   :  { %723 = vrot.lane.b32.xlu1 %v719_v9, %s4654_s7 }
 0x81c   :  { %v724_v11 = vpop.permute.xlu1 %723 }
 0x81d   :  { %4071 = vmatmul.mubr.msk.f32.vlgmr.msra.gmra.mxu1 %vm417_vm2, %v724_v11 }
 0x81e   :  { %4074 = vmatpush3.msra.mxu1 %v4687_v2  ;;  %4081 = vmatprep.mubr.msk.f32.mxu1 %vm4652_vm0, %v4651_v0 }
 0x81f   :  { %4075 = vmatprep.subr.mxu1 %v4651_v0 }
 0x820   :  { %4076 = vmatpush3.msra.mxu1 %v4698_v4 }
 0x821   :  { %4077 = vmatprep.subr.mxu1 %v4651_v0 }
 0x822   :  { %4078 = vmatpush3.msra.mxu1 %v4711_v7 }
 0x823   :  { %4079 = vmatprep.subr.mxu1 %v4651_v0 }
 0x824   :  { %4080 = vmatpush3.msra.mxu1 %v4719_v8 }
 0x825   :  { %4084 = vmatprep.subr.mxu1 %v4651_v0 }
 0x8dd   :  { %v793_v13 = vpop.f32.mrf.mxu1 }
 0x8de   :  { %v797_v14 = vadd.f32 %v793_v13, %v237_v12 }
 0x8df   :  { %v4072_v15 = vpop.f32.mrf.mxu1 }
 0x8e0   :  { %4409 = vtanh.f32 %v797_v14  ;;  %v3726_v17 = vmul.f32 -1.442695, %v797_v14  ;;  %v3992_v14 = vpop.f32.mrf.mxu0 }
 0x8e2   :  { %4411 = vpow2.f32 %v3726_v17  ;;  %v251_v15 = vpop.f32.mrf.mxu0 }
 0x8ed   :  { %v4410_v16 = vpop.eup %4409 }
 0x8ee   :  { %807 = vrot.lane.b32.xlu0 %v4410_v16, %s4653_s6  ;;  %v252_v16 = vadd.f32 %v4748_v10, %v251_v15 }
 0x8ef   :  { %v4412_v18 = vpop.eup %4411 }
 0x8f0   :  { %v801_v19 = vadd.f32 1.0, %v4412_v18 }
 0x8f2   :  { %4413 = vrcp.f32 %v801_v19 }
 0x8ff   :  { %v4414_v20 = vpop.eup %4413 }
 0x900   :  { %v805_v23 = vmul.f32 %v4414_v20, %v713_v3 }
 0x960   :  { %v808_v21 = vpop.permute.xlu0 %807 }
 0x961   :  { %v810_v22 = vmul.f32 %v4414_v20, %v808_v21 }
 0x963   :  { %812 = vrot.lane.b32.xlu1 %v810_v22, %s4654_s7 }
 0x9d5   :  { %v813_v24 = vpop.permute.xlu1 %812 }
 0x9d6   :  { %v815_v25 = vadd.f32 %v813_v24, %v805_v23 }
 0x9d8   :  { %4415 = vtanh.f32 %v815_v25 }
 0x9e5   :  { %v4416_v28 = vpop.eup %4415 }
 0x9e6   :  { %818 = vrot.lane.b32.xlu0 %v4416_v28, %s4653_s6 }
 0xa58   :  { %v819_v29 = vpop.permute.xlu0 %818 }
 0xa59   :  { %v821_v30 = vmul.f32 %v4414_v20, %v819_v29 }
 0xa5b   :  { %825 = vrot.lane.b32.xlu1 %v821_v30, %s4654_s7 }
 0xacd   :  { %v826_v31 = vpop.permute.xlu1 %825 }
 0xace   :  { %4082 = vmatmul.mubr.msk.f32.vlgmr.msra.gmra.mxu1 %vm417_vm2, %v826_v31 }
 0xacf   :  { %4085 = vmatpush3.msra.mxu1 %v4687_v2  ;;  %4092 = vmatprep.mubr.msk.f32.mxu1 %vm4652_vm0, %v4651_v0 }
 0xad0   :  { %4086 = vmatprep.subr.mxu1 %v4651_v0 }
 0xad1   :  { %4087 = vmatpush3.msra.mxu1 %v4698_v4 }
 0xad2   :  { %4088 = vmatprep.subr.mxu1 %v4651_v0 }
 0xad3   :  { %4089 = vmatpush3.msra.mxu1 %v4711_v7 }
 0xad4   :  { %4090 = vmatprep.subr.mxu1 %v4651_v0 }
 0xad5   :  { %4091 = vmatpush3.msra.mxu1 %v4719_v8 }
 0xad6   :  { %4095 = vmatprep.subr.mxu1 %v4651_v0 }
 0xb8e   :  { %v895_v35 = vpop.f32.mrf.mxu1 }
 0xb8f   :  { %v899_v36 = vadd.f32 %v895_v35, %v242_v34  ;;  %v257_v34 = vadd.f32 %v3992_v14, %v4748_v10  ;;  %v48_v14 = vld [vmem:[%s5477_s0 + $0xf8] sm:$0xff] }
 0xb90   :  { %v4083_v37 = vpop.f32.mrf.mxu1 }
 0xb91   :  { %4417 = vtanh.f32 %v899_v36  ;;  %v3728_v39 = vmul.f32 -1.442695, %v899_v36 }
 0xb93   :  { %4419 = vpow2.f32 %v3728_v39 }
 0xb9e   :  { %v4418_v38 = vpop.eup %4417 }
 0xb9f   :  { %909 = vrot.lane.b32.xlu0 %v4418_v38, %s4653_s6 }
 0xba0   :  { %v4420_v40 = vpop.eup %4419 }
 0xba1   :  { %v903_v41 = vadd.f32 1.0, %v4420_v40 }
 0xba3   :  { %4421 = vrcp.f32 %v903_v41 }
 0xbb0   :  { %v4422_v42 = vpop.eup %4421 }
 0xbb1   :  { %v907_v45 = vmul.f32 %v4422_v42, %v815_v25 }
 0xc11   :  { %v910_v43 = vpop.permute.xlu0 %909 }
 0xc12   :  { %v912_v44 = vmul.f32 %v4422_v42, %v910_v43 }
 0xc14   :  { %914 = vrot.lane.b32.xlu1 %v912_v44, %s4654_s7 }
 0xc86   :  { %v915_v46 = vpop.permute.xlu1 %914 }
 0xc87   :  { %v917_v47 = vadd.f32 %v915_v46, %v907_v45 }
 0xc89   :  { %4423 = vtanh.f32 %v917_v47 }
 0xc96   :  { %v4424_v48 = vpop.eup %4423 }
 0xc97   :  { %920 = vrot.lane.b32.xlu0 %v4424_v48, %s4653_s6  ;;  %v25_v48 = vld [vmem:[%s5477_s0 + $0x40] sm:$0xff] }
 0xc98   :  { %3993 = vmatprep.mubr.msk.f32.mxu0 %vm58_vm1, %v25_v48 }
 0xd09   :  { %v921_v49 = vpop.permute.xlu0 %920 }
 0xd0a   :  { %v923_v50 = vmul.f32 %v4422_v42, %v921_v49  ;;  %v26_v49 = vld [vmem:[%s5477_s0 + $0x48] sm:$0xff] }
 0xd0b   :  { %3994 = vmatmul.mubr.msk.f32.gmra.mxu0 %vm58_vm1, %v26_v49 }
 0xd0c   :  { %927 = vrot.lane.b32.xlu1 %v923_v50, %s4654_s7  ;;  %v27_v50 = vld [vmem:[%s5477_s0 + $0x50] sm:$0xff] }
 0xd0d   :  { %3996 = vmatprep.mubr.msk.f32.mxu0 %vm58_vm1, %v27_v50 }
 0xd7e   :  { %v928_v51 = vpop.permute.xlu1 %927 }
 0xd7f   :  { %4093 = vmatmul.mubr.msk.f32.vlgmr.msra.gmra.mxu1 %vm417_vm2, %v928_v51  ;;  %v28_v51 = vld [vmem:[%s5477_s0 + $0x58] sm:$0xff] }
 0xd80   :  { %4096 = vmatpush3.msra.mxu1 %v4687_v2  ;;  %4103 = vmatprep.mubr.msk.f32.mxu1 %vm4652_vm0, %v4651_v0 }
 0xd81   :  { %4097 = vmatprep.subr.mxu1 %v4651_v0  ;;  %3997 = vmatmul.mubr.msk.f32.gmra.mxu0 %vm58_vm1, %v28_v51 }
 0xd82   :  { %4098 = vmatpush3.msra.mxu1 %v4698_v4 }
 0xd83   :  { %4099 = vmatprep.subr.mxu1 %v4651_v0 }
 0xd84   :  { %4100 = vmatpush3.msra.mxu1 %v4711_v7 }
 0xd85   :  { %4101 = vmatprep.subr.mxu1 %v4651_v0 }
 0xd86   :  { %4102 = vmatpush3.msra.mxu1 %v4719_v8 }
 0xd87   :  { %4106 = vmatprep.subr.mxu1 %v4651_v0 }
 0xe3f   :  { %v997_v53 = vpop.f32.mrf.mxu1 }
 0xe40   :  { %v1001_v54 = vadd.f32 %v997_v53, %v247_v52  ;;  %v29_v52 = vld [vmem:[%s5477_s0 + $0x60] sm:$0xff]  ;;  %v30_v53 = vld [vmem:[%s5477_s0 + $0x68] sm:$0xff] }
 0xe41   :  { %v4094_v55 = vpop.f32.mrf.mxu1  ;;  %3999 = vmatprep.mubr.msk.f32.mxu0 %vm58_vm1, %v29_v52 }
 0xe42   :  { %4425 = vtanh.f32 %v1001_v54  ;;  %v3730_v57 = vmul.f32 -1.442695, %v1001_v54  ;;  %v31_v54 = vld [vmem:[%s5477_s0 + $0x70] sm:$0xff]  ;;  %4000 = vmatmul.mubr.msk.f32.gmra.mxu0 %vm58_vm1, %v30_v53 }
 0xe43   :  { %4002 = vmatprep.mubr.msk.f32.mxu0 %vm58_vm1, %v31_v54 }
 0xe44   :  { %4427 = vpow2.f32 %v3730_v57  ;;  %v33_v57 = vld [vmem:[%s5477_s0 + $0x80] sm:$0xff] }
 0xe4f   :  { %v4426_v56 = vpop.eup %4425 }
 0xe50   :  { %1011 = vrot.lane.b32.xlu0 %v4426_v56, %s4653_s6  ;;  %v32_v56 = vld [vmem:[%s5477_s0 + $0x78] sm:$0xff] }
 0xe51   :  { %v4428_v58 = vpop.eup %4427  ;;  %4003 = vmatmul.mubr.msk.f32.gmra.mxu0 %vm58_vm1, %v32_v56 }
 0xe52   :  { %v1005_v59 = vadd.f32 1.0, %v4428_v58  ;;  %4005 = vmatprep.mubr.msk.f32.mxu0 %vm58_vm1, %v33_v57  ;;  %v34_v58 = vld [vmem:[%s5477_s0 + $0x88] sm:$0xff] }
 0xe54   :  { %4429 = vrcp.f32 %v1005_v59  ;;  %v35_v59 = vld [vmem:[%s5477_s0 + $0x90] sm:$0xff] }
 0xe55   :  { %4006 = vmatmul.mubr.msk.f32.gmra.mxu0 %vm58_vm1, %v34_v58 }
 0xe56   :  { %4008 = vmatprep.mubr.msk.f32.mxu0 %vm58_vm1, %v35_v59 }
 0xe61   :  { %v4430_v60 = vpop.eup %4429 }
 0xe62   :  { %v1009_v63 = vmul.f32 %v4430_v60, %v917_v47 }
 0xec2   :  { %v1012_v61 = vpop.permute.xlu0 %1011 }
 0xec3   :  { %v1014_v62 = vmul.f32 %v4430_v60, %v1012_v61  ;;  %v37_v61 = vld [vmem:[%s5477_s0 + $0xa0] sm:$0xff] }
 0xec5   :  { %1016 = vrot.lane.b32.xlu1 %v1014_v62, %s4654_s7  ;;  %v38_v62 = vld [vmem:[%s5477_s0 + $0xa8] sm:$0xff] }
 0xf37   :  { %v1017_v1 = vpop.permute.xlu1 %1016 }
 0xf38   :  { %v1019_v3 = vadd.f32 %v1017_v1, %v1009_v63  ;;  %v39_v63 = vld [vmem:[%s5477_s0 + $0xb0] sm:$0xff]  ;;  %v40_v1 = vld [vmem:[%s5477_s0 + $0xb8] sm:$0xff] }
 0xf3a   :  { %4431 = vtanh.f32 %v1019_v3 }
 0xf47   :  { %v4432_v9 = vpop.eup %4431 }
 0xf48   :  { %1022 = vrot.lane.b32.xlu0 %v4432_v9, %s4653_s6  ;;  %v44_v9 = vld [vmem:[%s5477_s0 + $0xd8] sm:$0xff] }
 0xfba   :  { %v1023_v11 = vpop.permute.xlu0 %1022 }
 0xfbb   :  { %v1025_v12 = vmul.f32 %v4430_v60, %v1023_v11  ;;  %v36_v60 = vld [vmem:[%s5477_s0 + $0x98] sm:$0xff]  ;;  %v45_v11 = vld [vmem:[%s5477_s0 + $0xe0] sm:$0xff] }
 0xfbc   :  { %4009 = vmatmul.mubr.msk.f32.gmra.mxu0 %vm58_vm1, %v36_v60 }
 0xfbd   :  { %1029 = vrot.lane.b32.xlu1 %v1025_v12, %s4654_s7  ;;  %4011 = vmatprep.mubr.msk.f32.mxu0 %vm58_vm1, %v37_v61  ;;  %v46_v12 = vld [vmem:[%s5477_s0 + $0xe8] sm:$0xff] }
 0xfc0   :  { %4012 = vmatmul.mubr.msk.f32.gmra.mxu0 %vm58_vm1, %v38_v62 }
 0xfc1   :  { %4014 = vmatprep.mubr.msk.f32.mxu0 %vm58_vm1, %v39_v63 }
 0xfc4   :  { %4015 = vmatmul.mubr.msk.f32.gmra.mxu0 %vm58_vm1, %v40_v1 }
0x102f   :  { %v1030_v13 = vpop.permute.xlu1 %1029 }
0x1030   :  { %4104 = vmatmul.mubr.msk.f32.vlgmr.msra.gmra.mxu1 %vm417_vm2, %v1030_v13  ;;  %v47_v13 = vld [vmem:[%s5477_s0 + $0xf0] sm:$0xff] }
0x1031   :  { %4107 = vmatpush3.msra.mxu1 %v4687_v2  ;;  %4114 = vmatprep.mubr.msk.f32.mxu1 %vm4652_vm0, %v4651_v0 }
0x1032   :  { %4108 = vmatprep.subr.mxu1 %v4651_v0 }
0x1033   :  { %4109 = vmatpush3.msra.mxu1 %v4698_v4 }
0x1034   :  { %4110 = vmatprep.subr.mxu1 %v4651_v0 }
0x1035   :  { %4111 = vmatpush3.msra.mxu1 %v4711_v7 }
0x1036   :  { %4112 = vmatprep.subr.mxu1 %v4651_v0 }
0x1037   :  { %4113 = vmatpush3.msra.mxu1 %v4719_v8 }
0x1038   :  { %4128 = vmatprep.subr.mxu1 %v4651_v0 }
0x10f0   :  { %v1099_v17 = vpop.f32.mrf.mxu1 }
0x10f1   :  { %v1103_v18 = vadd.f32 %v1099_v17, %v252_v16 }
0x10f2   :  { %v4105_v19 = vpop.f32.mrf.mxu1 }
0x10f3   :  { %4433 = vtanh.f32 %v1103_v18  ;;  %v3732_v21 = vmul.f32 -1.442695, %v1103_v18  ;;  %v3995_v18 = vpop.f32.mrf.mxu0 }
0x10f5   :  { %4435 = vpow2.f32 %v3732_v21  ;;  %v261_v19 = vpop.f32.mrf.mxu0 }
0x1100   :  { %v4434_v20 = vpop.eup %4433 }
0x1101   :  { %1113 = vrot.lane.b32.xlu0 %v4434_v20, %s4653_s6  ;;  %v5003_v20 = vpop.f32.mrf.mxu0 }
0x1102   :  { %v4436_v22 = vpop.eup %4435 }
0x1103   :  { %v1107_v23 = vadd.f32 1.0, %v4436_v22  ;;  %v5005_v21 = vpop.f32.mrf.mxu0 }
0x1105   :  { %4437 = vrcp.f32 %v1107_v23  ;;  %v5007_v22 = vpop.f32.mrf.mxu0 }
0x1107   :  { %v5009_v23 = vpop.f32.mrf.mxu0 }
0x1112   :  { %v4438_v24 = vpop.eup %4437 }
0x1113   :  { %v1111_v27 = vmul.f32 %v4438_v24, %v1019_v3  ;;  %v41_v3 = vld [vmem:[%s5477_s0 + $0xc0] sm:$0xff] }
0x1114   :  { %4017 = vmatprep.mubr.msk.f32.mxu0 %vm58_vm1, %v41_v3 }
0x1115   :  { %4018 = vmatmul.mubr.msk.f32.gmra.mxu0 %vm58_vm1, %v42_v5 }
0x1116   :  { %4020 = vmatprep.mubr.msk.f32.mxu0 %vm58_vm1, %v43_v6 }
0x1119   :  { %4021 = vmatmul.mubr.msk.f32.gmra.mxu0 %vm58_vm1, %v44_v9 }
0x111a   :  { %4023 = vmatprep.mubr.msk.f32.mxu0 %vm58_vm1, %v45_v11 }
0x111d   :  { %4024 = vmatmul.mubr.msk.f32.gmra.mxu0 %vm58_vm1, %v46_v12 }
0x111e   :  { %4026 = vmatprep.mubr.msk.f32.mxu0 %vm58_vm1, %v47_v13 }
0x1121   :  { %4027 = vmatmul.mubr.msk.f32.gmra.mxu0 %vm58_vm1, %v48_v14 }
0x1122   :  { %4125 = vmatprep.mubr.msk.f32.mxu0 %vm4652_vm0, %v4651_v0 }
0x1173   :  { %v1114_v25 = vpop.permute.xlu0 %1113 }
0x1174   :  { %v1116_v26 = vmul.f32 %v4438_v24, %v1114_v25 }
0x1176   :  { %1118 = vrot.lane.b32.xlu1 %v1116_v26, %s4654_s7 }
0x11e8   :  { %v1119_v28 = vpop.permute.xlu1 %1118 }
0x11e9   :  { %v1121_v29 = vadd.f32 %v1119_v28, %v1111_v27 }
0x11eb   :  { %4439 = vtanh.f32 %v1121_v29 }
0x11f8   :  { %v4440_v30 = vpop.eup %4439 }
0x11f9   :  { %1124 = vrot.lane.b32.xlu0 %v4440_v30, %s4653_s6 }
0x126b   :  { %v1125_v31 = vpop.permute.xlu0 %1124 }
0x126c   :  { %v1127_v32 = vmul.f32 %v4438_v24, %v1125_v31  ;;  %v5011_v24 = vpop.f32.mrf.mxu0 }
0x126e   :  { %1131 = vrot.lane.b32.xlu1 %v1127_v32, %s4654_s7  ;;  %v5013_v25 = vpop.f32.mrf.mxu0 }
0x1270   :  { %v5015_v26 = vpop.f32.mrf.mxu0 }
0x1272   :  { %v5017_v27 = vpop.f32.mrf.mxu0 }
0x1274   :  { %v5019_v28 = vpop.f32.mrf.mxu0 }
0x12e0   :  { %v1132_v33 = vpop.permute.xlu1 %1131 }
0x12e1   :  { %4115 = vmatmul.mubr.msk.f32.vlgmr.msra.gmra.mxu1 %vm417_vm2, %v1132_v33 }
0x12e2   :  { %4129 = vmatpush3.msra.mxu1 %v4687_v2  ;;  %4136 = vmatprep.mubr.msk.f32.mxu1 %vm4652_vm0, %v4651_v0 }
0x12e3   :  { %4130 = vmatprep.subr.mxu1 %v4651_v0 }
0x12e4   :  { %4131 = vmatpush3.msra.mxu1 %v4698_v4 }
0x12e5   :  { %4132 = vmatprep.subr.mxu1 %v4651_v0 }
0x12e6   :  { %4133 = vmatpush3.msra.mxu1 %v4711_v7 }
0x12e7   :  { %4134 = vmatprep.subr.mxu1 %v4651_v0 }
0x12e8   :  { %4135 = vmatpush3.msra.mxu1 %v4719_v8 }
0x12e9   :  { %4150 = vmatprep.subr.mxu1 %v4651_v0 }
0x13a1   :  { %v1201_v35 = vpop.f32.mrf.mxu1 }
0x13a2   :  { %v1205_v36 = vadd.f32 %v1201_v35, %v257_v34 }
0x13a3   :  { %v4116_v37 = vpop.f32.mrf.mxu1 }
0x13a4   :  { %4441 = vtanh.f32 %v1205_v36  ;;  %v3734_v39 = vmul.f32 -1.442695, %v1205_v36 }
0x13a6   :  { %4443 = vpow2.f32 %v3734_v39 }
0x13b1   :  { %v4442_v38 = vpop.eup %4441 }
0x13b2   :  { %1215 = vrot.lane.b32.xlu0 %v4442_v38, %s4653_s6 }
0x13b3   :  { %v4444_v40 = vpop.eup %4443 }
0x13b4   :  { %v1209_v41 = vadd.f32 1.0, %v4444_v40 }
0x13b6   :  { %4445 = vrcp.f32 %v1209_v41 }
0x13c3   :  { %v4446_v42 = vpop.eup %4445 }
0x13c4   :  { %v1213_v45 = vmul.f32 %v4446_v42, %v1121_v29  ;;  %v5021_v29 = vpop.f32.mrf.mxu0 }
0x13c6   :  { %v5023_v30 = vpop.f32.mrf.mxu0 }
0x13c8   :  { %v5025_v31 = vpop.f32.mrf.mxu0 }
0x13ca   :  { %v5027_v32 = vpop.f32.mrf.mxu0 }
0x13cc   :  { %v5029_v33 = vpop.f32.mrf.mxu0 }
0x13ce   :  { %v5031_v34 = vpop.f32.mrf.mxu0 }
0x13d0   :  { %v5033_v35 = vpop.f32.mrf.mxu0 }
0x13d2   :  { %v5035_v36 = vpop.f32.mrf.mxu0 }
0x13d4   :  { %v5037_v37 = vpop.f32.mrf.mxu0 }
0x13d6   :  { %v5039_v38 = vpop.f32.mrf.mxu0 }
0x13d8   :  { %v5041_v39 = vpop.f32.mrf.mxu0 }
0x13da   :  { %v5043_v40 = vpop.f32.mrf.mxu0 }
0x13dc   :  { %v5045_v41 = vpop.f32.mrf.mxu0 }
0x1424   :  { %v1216_v43 = vpop.permute.xlu0 %1215 }
0x1425   :  { %v1218_v44 = vmul.f32 %v4446_v42, %v1216_v43 }
0x1427   :  { %1220 = vrot.lane.b32.xlu1 %v1218_v44, %s4654_s7 }
0x1499   :  { %v1221_v46 = vpop.permute.xlu1 %1220 }
0x149a   :  { %v4889_v47 = vadd.f32 %v1221_v46, %v1213_v45 }
0x149c   :  { %4447 = vtanh.f32 %v4889_v47 }
0x14a9   :  { %v4448_v55 = vpop.eup %4447 }
0x14aa   :  { %1226 = vrot.lane.b32.xlu0 %v4448_v55, %s4653_s6 }
0x151c   :  { %v1227_v15 = vpop.permute.xlu0 %1226 }
0x151d   :  { %v1229_v16 = vmul.f32 %v4446_v42, %v1227_v15  ;;  %v262_v42 = vadd.f32 %v4748_v10, %v261_v19 }
0x151f   :  { %1233 = vrot.lane.b32.xlu1 %v1229_v16, %s4654_s7 }
0x1591   :  { %v1234_v17 = vpop.permute.xlu1 %1233 }
0x1592   :  { %4126 = vmatmul.mubr.msk.f32.vlgmr.msra.gmra.mxu0 %vm417_vm2, %v1234_v17 }
0x1593   :  { %4140 = vmatpush3.msra.mxu0 %v4687_v2  ;;  %4147 = vmatprep.mubr.msk.f32.mxu0 %vm4652_vm0, %v4651_v0 }
0x1594   :  { %4141 = vmatprep.subr.mxu0 %v4651_v0 }
0x1595   :  { %4142 = vmatpush3.msra.mxu0 %v4698_v4 }
0x1596   :  { %4143 = vmatprep.subr.mxu0 %v4651_v0 }
0x1597   :  { %4144 = vmatpush3.msra.mxu0 %v4711_v7 }
0x1598   :  { %4145 = vmatprep.subr.mxu0 %v4651_v0 }
0x1599   :  { %4146 = vmatpush3.msra.mxu0 %v4719_v8 }
0x159a   :  { %4161 = vmatprep.subr.mxu0 %v4651_v0 }
0x1652   :  { %v1303_v43 = vpop.f32.mrf.mxu0 }
0x1653   :  { %v1307_v44 = vadd.f32 %v1303_v43, %v262_v42 }
0x1654   :  { %v4127_v45 = vpop.f32.mrf.mxu0 }
0x1655   :  { %4449 = vtanh.f32 %v1307_v44  ;;  %v3736_v48 = vmul.f32 -1.442695, %v1307_v44 }
0x1657   :  { %4451 = vpow2.f32 %v3736_v48 }
0x1662   :  { %v4450_v46 = vpop.eup %4449 }
0x1663   :  { %1317 = vrot.lane.b32.xlu0 %v4450_v46, %s4653_s6 }
0x1664   :  { %v4452_v49 = vpop.eup %4451 }
0x1665   :  { %v1311_v50 = vadd.f32 1.0, %v4452_v49 }
0x1667   :  { %4453 = vrcp.f32 %v1311_v50 }
0x1674   :  { %v4454_v51 = vpop.eup %4453 }
0x1675   :  { %v1315_v54 = vmul.f32 %v4454_v51, %v4889_v47  ;;  %v267_v47 = vadd.f32 %v3995_v18, %v4748_v10 }
0x16d5   :  { %v1318_v52 = vpop.permute.xlu0 %1317 }
0x16d6   :  { %v1320_v53 = vmul.f32 %v4454_v51, %v1318_v52 }
0x16d8   :  { %1322 = vrot.lane.b32.xlu1 %v1320_v53, %s4654_s7 }
0x174a   :  { %v1323_v55 = vpop.permute.xlu1 %1322 }
0x174b   :  { %v1325_v56 = vadd.f32 %v1323_v55, %v1315_v54 }
0x174d   :  { %4455 = vtanh.f32 %v1325_v56 }
0x175a   :  { %v4456_v57 = vpop.eup %4455 }
0x175b   :  { %1328 = vrot.lane.b32.xlu0 %v4456_v57, %s4653_s6  ;;  %v5099_v57 = vld [vmem:[%s5476_s2 + $0x10] sm:$0xff] }
0x17cd   :  { %v1329_v58 = vpop.permute.xlu0 %1328 }
0x17ce   :  { %v1331_v59 = vmul.f32 %v4454_v51, %v1329_v58  ;;  %v5106_v58 = vld [vmem:[%s5476_s2 + $0x8] sm:$0xff] }
0x17d0   :  { %1335 = vrot.lane.b32.xlu1 %v1331_v59, %s4654_s7  ;;  %v5113_v59 = vld [vmem:[%s5476_s2] sm:$0xff] }
0x1842   :  { %v1336_v60 = vpop.permute.xlu1 %1335 }
0x1843   :  { %4137 = vmatmul.mubr.msk.f32.vlgmr.msra.gmra.mxu1 %vm417_vm2, %v1336_v60  ;;  %v277_v60 = vadd.f32 %v5003_v20, %v4748_v10 }
0x1844   :  { %4151 = vmatpush3.msra.mxu1 %v4687_v2  ;;  %4158 = vmatprep.mubr.msk.f32.mxu1 %vm4652_vm0, %v4651_v0 }
0x1845   :  { %4152 = vmatprep.subr.mxu1 %v4651_v0 }
0x1846   :  { %4153 = vmatpush3.msra.mxu1 %v4698_v4 }
0x1847   :  { %4154 = vmatprep.subr.mxu1 %v4651_v0 }
0x1848   :  { %4155 = vmatpush3.msra.mxu1 %v4711_v7 }
0x1849   :  { %4156 = vmatprep.subr.mxu1 %v4651_v0 }
0x184a   :  { %4157 = vmatpush3.msra.mxu1 %v4719_v8 }
0x184b   :  { %4172 = vmatprep.subr.mxu1 %v4651_v0 }
0x1903   :  { %v1405_v61 = vpop.f32.mrf.mxu1 }
0x1904   :  { %v1409_v62 = vadd.f32 %v1405_v61, %v267_v47 }
0x1905   :  { %v4138_v63 = vpop.f32.mrf.mxu1 }
0x1906   :  { %4457 = vtanh.f32 %v1409_v62  ;;  %v3738_v3 = vmul.f32 -1.442695, %v1409_v62 }
0x1908   :  { %4459 = vpow2.f32 %v3738_v3 }
0x1913   :  { %v4458_v1 = vpop.eup %4457 }
0x1914   :  { %1419 = vrot.lane.b32.xlu0 %v4458_v1, %s4653_s6 }
0x1915   :  { %v4460_v5 = vpop.eup %4459 }
0x1916   :  { %v1413_v6 = vadd.f32 1.0, %v4460_v5 }
0x1918   :  { %4461 = vrcp.f32 %v1413_v6 }
0x1925   :  { %v4462_v9 = vpop.eup %4461 }
0x1926   :  { %v1417_v13 = vmul.f32 %v4462_v9, %v1325_v56  ;;  %v5090_v56 = vld [vmem:[%s5476_s2 + $0x18] sm:$0xff] }
0x1986   :  { %v1420_v11 = vpop.permute.xlu0 %1419 }
0x1987   :  { %v1422_v12 = vmul.f32 %v4462_v9, %v1420_v11 }
0x1989   :  { %1424 = vrot.lane.b32.xlu1 %v1422_v12, %s4654_s7 }
0x19fb   :  { %v1425_v14 = vpop.permute.xlu1 %1424 }
0x19fc   :  { %v1427_v15 = vadd.f32 %v1425_v14, %v1417_v13 }
0x19fe   :  { %4463 = vtanh.f32 %v1427_v15 }
0x1a0b   :  { %v4464_v16 = vpop.eup %4463 }
0x1a0c   :  { %1430 = vrot.lane.b32.xlu0 %v4464_v16, %s4653_s6 }
0x1a7e   :  { %v1431_v17 = vpop.permute.xlu0 %1430 }
0x1a7f   :  { %v1433_v18 = vmul.f32 %v4462_v9, %v1431_v17  ;;  %v5137_v17 = vld [vmem:[%s5478_s3] ss:$0 sm:$0xff] }
0x1a81   :  { %1437 = vrot.lane.b32.xlu1 %v1433_v18, %s4654_s7  ;;  %v282_v18 = vadd.f32 %v5137_v17, %v5009_v23 }
0x1af3   :  { %v1438_v19 = vpop.permute.xlu1 %1437 }
0x1af4   :  { %4148 = vmatmul.mubr.msk.f32.vlgmr.msra.gmra.mxu0 %vm417_vm2, %v1438_v19 }
0x1af5   :  { %4162 = vmatpush3.msra.mxu0 %v4687_v2  ;;  %4169 = vmatprep.mubr.msk.f32.mxu0 %vm4652_vm0, %v4651_v0  ;;  %v272_v2 = vadd.f32 %v4748_v10, %v5005_v21 }
0x1af6   :  { %4163 = vmatprep.subr.mxu0 %v4651_v0 }
0x1af7   :  { %4164 = vmatpush3.msra.mxu0 %v4698_v4 }
0x1af8   :  { %4165 = vmatprep.subr.mxu0 %v4651_v0 }
0x1af9   :  { %4166 = vmatpush3.msra.mxu0 %v4711_v7 }
0x1afa   :  { %4167 = vmatprep.subr.mxu0 %v4651_v0 }
0x1afb   :  { %4168 = vmatpush3.msra.mxu0 %v4719_v8 }
0x1afc   :  { %4183 = vmatprep.subr.mxu0 %v4651_v0 }
0x1bb4   :  { %v1507_v42 = vpop.f32.mrf.mxu0 }
0x1bb5   :  { %v1511_v43 = vadd.f32 %v1507_v42, %v272_v2 }
0x1bb6   :  { %v4149_v44 = vpop.f32.mrf.mxu0 }
0x1bb7   :  { %4465 = vtanh.f32 %v1511_v43  ;;  %v3740_v4 = vmul.f32 -1.442695, %v1511_v43 }
0x1bb9   :  { %4467 = vpow2.f32 %v3740_v4 }
0x1bc4   :  { %v4466_v45 = vpop.eup %4465 }
0x1bc5   :  { %1521 = vrot.lane.b32.xlu0 %v4466_v45, %s4653_s6 }
0x1bc6   :  { %v4468_v46 = vpop.eup %4467 }
0x1bc7   :  { %v1515_v7 = vadd.f32 1.0, %v4468_v46 }
0x1bc9   :  { %4469 = vrcp.f32 %v1515_v7 }
0x1bd6   :  { %v4470_v48 = vpop.eup %4469 }
0x1bd7   :  { %v1519_v50 = vmul.f32 %v4470_v48, %v1427_v15 }
0x1c37   :  { %v1522_v49 = vpop.permute.xlu0 %1521 }
0x1c38   :  { %v1524_v8 = vmul.f32 %v4470_v48, %v1522_v49 }
0x1c3a   :  { %1526 = vrot.lane.b32.xlu1 %v1524_v8, %s4654_s7 }
0x1cac   :  { %v1527_v51 = vpop.permute.xlu1 %1526 }
0x1cad   :  { %v1529_v21 = vadd.f32 %v1527_v51, %v1519_v50 }
0x1caf   :  { %4471 = vtanh.f32 %v1529_v21 }
0x1cbc   :  { %v4472_v52 = vpop.eup %4471 }
0x1cbd   :  { %1532 = vrot.lane.b32.xlu0 %v4472_v52, %s4653_s6 }
0x1d2f   :  { %v1533_v53 = vpop.permute.xlu0 %1532 }
0x1d30   :  { %v1535_v54 = vmul.f32 %v4470_v48, %v1533_v53  ;;  %v287_v53 = vadd.f32 %v5137_v17, %v5007_v22 }
0x1d32   :  { %1539 = vrot.lane.b32.xlu1 %v1535_v54, %s4654_s7 }
0x1da4   :  { %v1540_v55 = vpop.permute.xlu1 %1539 }
0x1da5   :  { %4159 = vmatmul.mubr.msk.f32.vlgmr.msra.gmra.mxu1 %vm417_vm2, %v1540_v55 }
0x1da6   :  { %4173 = vmatpush3.msra.mxu1 %v5090_v56  ;;  %4180 = vmatprep.mubr.msk.f32.mxu1 %vm4652_vm0, %v4651_v0 }
0x1da7   :  { %4174 = vmatprep.subr.mxu1 %v4651_v0 }
0x1da8   :  { %4175 = vmatpush3.msra.mxu1 %v5099_v57 }
0x1da9   :  { %4176 = vmatprep.subr.mxu1 %v4651_v0 }
0x1daa   :  { %4177 = vmatpush3.msra.mxu1 %v5106_v58 }
0x1dab   :  { %4178 = vmatprep.subr.mxu1 %v4651_v0 }
0x1dac   :  { %4179 = vmatpush3.msra.mxu1 %v5113_v59 }
0x1dad   :  { %4194 = vmatprep.subr.mxu1 %v4651_v0 }
0x1e65   :  { %v1609_v47 = vpop.f32.mrf.mxu1 }
0x1e66   :  { %v1613_v61 = vadd.f32 %v1609_v47, %v277_v60 }
0x1e67   :  { %v4160_v62 = vpop.f32.mrf.mxu1 }
0x1e68   :  { %4473 = vtanh.f32 %v1613_v61  ;;  %v3742_v1 = vmul.f32 -1.442695, %v1613_v61 }
0x1e6a   :  { %4475 = vpow2.f32 %v3742_v1 }
0x1e75   :  { %v4474_v63 = vpop.eup %4473 }
0x1e76   :  { %1623 = vrot.lane.b32.xlu0 %v4474_v63, %s4653_s6 }
0x1e77   :  { %v4476_v3 = vpop.eup %4475 }
0x1e78   :  { %v1617_v5 = vadd.f32 1.0, %v4476_v3 }
0x1e7a   :  { %4477 = vrcp.f32 %v1617_v5 }
0x1e87   :  { %v4478_v6 = vpop.eup %4477 }
0x1e88   :  { %v1621_v12 = vmul.f32 %v4478_v6, %v1529_v21 }
0x1ee8   :  { %v1624_v9 = vpop.permute.xlu0 %1623 }
0x1ee9   :  { %v1626_v11 = vmul.f32 %v4478_v6, %v1624_v9 }
0x1eeb   :  { %1628 = vrot.lane.b32.xlu1 %v1626_v11, %s4654_s7 }
0x1f5d   :  { %v1629_v13 = vpop.permute.xlu1 %1628 }
0x1f5e   :  { %v1631_v10 = vadd.f32 %v1629_v13, %v1621_v12 }
0x1f60   :  { %4479 = vtanh.f32 %v1631_v10 }
0x1f6d   :  { %v4480_v20 = vpop.eup %4479 }
0x1f6e   :  { %1634 = vrot.lane.b32.xlu0 %v4480_v20, %s4653_s6  ;;  %v292_v20 = vadd.f32 %v5137_v17, %v5013_v25 }
0x1fe0   :  { %v1635_v14 = vpop.permute.xlu0 %1634 }
0x1fe1   :  { %v1637_v15 = vmul.f32 %v4478_v6, %v1635_v14 }
0x1fe3   :  { %1641 = vrot.lane.b32.xlu1 %v1637_v15, %s4654_s7 }
0x2055   :  { %v1642_v16 = vpop.permute.xlu1 %1641 }
0x2056   :  { %4170 = vmatmul.mubr.msk.f32.vlgmr.msra.gmra.mxu0 %vm417_vm2, %v1642_v16 }
0x2057   :  { %4184 = vmatpush3.msra.mxu0 %v5090_v56  ;;  %4191 = vmatprep.mubr.msk.f32.mxu0 %vm4652_vm0, %v4651_v0 }
0x2058   :  { %4185 = vmatprep.subr.mxu0 %v4651_v0 }
0x2059   :  { %4186 = vmatpush3.msra.mxu0 %v5099_v57 }
0x205a   :  { %4187 = vmatprep.subr.mxu0 %v4651_v0 }
0x205b   :  { %4188 = vmatpush3.msra.mxu0 %v5106_v58 }
0x205c   :  { %4189 = vmatprep.subr.mxu0 %v4651_v0 }
0x205d   :  { %4190 = vmatpush3.msra.mxu0 %v5113_v59 }
0x205e   :  { %4205 = vmatprep.subr.mxu0 %v4651_v0 }
0x2116   :  { %v1711_v19 = vpop.f32.mrf.mxu0 }
0x2117   :  { %v1715_v2 = vadd.f32 %v1711_v19, %v282_v18 }
0x2118   :  { %v4171_v42 = vpop.f32.mrf.mxu0 }
0x2119   :  { %4481 = vtanh.f32 %v1715_v2  ;;  %v3744_v44 = vmul.f32 -1.442695, %v1715_v2 }
0x211b   :  { %4483 = vpow2.f32 %v3744_v44 }
0x2126   :  { %v4482_v43 = vpop.eup %4481 }
0x2127   :  { %1725 = vrot.lane.b32.xlu0 %v4482_v43, %s4653_s6 }
0x2128   :  { %v4484_v45 = vpop.eup %4483 }
0x2129   :  { %v1719_v4 = vadd.f32 1.0, %v4484_v45 }
0x212b   :  { %4485 = vrcp.f32 %v1719_v4 }
0x2138   :  { %v4486_v46 = vpop.eup %4485 }
0x2139   :  { %v1723_v49 = vmul.f32 %v4486_v46, %v1631_v10 }
0x2199   :  { %v1726_v7 = vpop.permute.xlu0 %1725 }
0x219a   :  { %v1728_v48 = vmul.f32 %v4486_v46, %v1726_v7 }
0x219c   :  { %1730 = vrot.lane.b32.xlu1 %v1728_v48, %s4654_s7 }
0x220e   :  { %v1731_v8 = vpop.permute.xlu1 %1730 }
0x220f   :  { %v1733_v23 = vadd.f32 %v1731_v8, %v1723_v49 }
0x2211   :  { %4487 = vtanh.f32 %v1733_v23 }
0x221e   :  { %v4488_v50 = vpop.eup %4487 }
0x221f   :  { %1736 = vrot.lane.b32.xlu0 %v4488_v50, %s4653_s6 }
0x2291   :  { %v1737_v51 = vpop.permute.xlu0 %1736 }
0x2292   :  { %v1739_v21 = vmul.f32 %v4486_v46, %v1737_v51 }
0x2294   :  { %1743 = vrot.lane.b32.xlu1 %v1739_v21, %s4654_s7 }
0x2306   :  { %v1744_v52 = vpop.permute.xlu1 %1743 }
0x2307   :  { %4181 = vmatmul.mubr.msk.f32.vlgmr.msra.gmra.mxu1 %vm417_vm2, %v1744_v52 }
0x2308   :  { %4195 = vmatpush3.msra.mxu1 %v5090_v56  ;;  %4202 = vmatprep.mubr.msk.f32.mxu1 %vm4652_vm0, %v4651_v0 }
0x2309   :  { %4196 = vmatprep.subr.mxu1 %v4651_v0 }
0x230a   :  { %4197 = vmatpush3.msra.mxu1 %v5099_v57 }
0x230b   :  { %4198 = vmatprep.subr.mxu1 %v4651_v0 }
0x230c   :  { %4199 = vmatpush3.msra.mxu1 %v5106_v58 }
0x230d   :  { %4200 = vmatprep.subr.mxu1 %v4651_v0 }
0x230e   :  { %4201 = vmatpush3.msra.mxu1 %v5113_v59 }
0x230f   :  { %4216 = vmatprep.subr.mxu1 %v4651_v0 }
0x23c7   :  { %v1813_v54 = vpop.f32.mrf.mxu1 }
0x23c8   :  { %v1817_v55 = vadd.f32 %v1813_v54, %v287_v53 }
0x23c9   :  { %v4182_v60 = vpop.f32.mrf.mxu1 }
0x23ca   :  { %4489 = vtanh.f32 %v1817_v55  ;;  %v3746_v61 = vmul.f32 -1.442695, %v1817_v55 }
0x23cc   :  { %4491 = vpow2.f32 %v3746_v61 }
0x23d7   :  { %v4490_v47 = vpop.eup %4489 }
0x23d8   :  { %1827 = vrot.lane.b32.xlu0 %v4490_v47, %s4653_s6 }
0x23d9   :  { %v4492_v62 = vpop.eup %4491 }
0x23da   :  { %v1821_v63 = vadd.f32 1.0, %v4492_v62 }
0x23dc   :  { %4493 = vrcp.f32 %v1821_v63 }
0x23e9   :  { %v4494_v1 = vpop.eup %4493 }
0x23ea   :  { %v1825_v6 = vmul.f32 %v4494_v1, %v1733_v23  ;;  %v297_v23 = vadd.f32 %v5137_v17, %v5011_v24 }
0x244a   :  { %v1828_v3 = vpop.permute.xlu0 %1827 }
0x244b   :  { %v1830_v5 = vmul.f32 %v4494_v1, %v1828_v3 }
0x244d   :  { %1832 = vrot.lane.b32.xlu1 %v1830_v5, %s4654_s7 }
0x24bf   :  { %v1833_v9 = vpop.permute.xlu1 %1832 }
0x24c0   :  { %v1835_v22 = vadd.f32 %v1833_v9, %v1825_v6  ;;  %v302_v9 = vadd.f32 %v5137_v17, %v5017_v27 }
0x24c2   :  { %4495 = vtanh.f32 %v1835_v22 }
0x24cf   :  { %v4496_v11 = vpop.eup %4495 }
0x24d0   :  { %1838 = vrot.lane.b32.xlu0 %v4496_v11, %s4653_s6 }
0x2542   :  { %v1839_v12 = vpop.permute.xlu0 %1838 }
0x2543   :  { %v1841_v13 = vmul.f32 %v4494_v1, %v1839_v12 }
0x2545   :  { %1845 = vrot.lane.b32.xlu1 %v1841_v13, %s4654_s7 }
0x25b7   :  { %v1846_v10 = vpop.permute.xlu1 %1845 }
0x25b8   :  { %4192 = vmatmul.mubr.msk.f32.vlgmr.msra.gmra.mxu0 %vm417_vm2, %v1846_v10 }
0x25b9   :  { %4206 = vmatpush3.msra.mxu0 %v5090_v56  ;;  %4213 = vmatprep.mubr.msk.f32.mxu0 %vm4652_vm0, %v4651_v0 }
0x25ba   :  { %4207 = vmatprep.subr.mxu0 %v4651_v0 }
0x25bb   :  { %4208 = vmatpush3.msra.mxu0 %v5099_v57 }
0x25bc   :  { %4209 = vmatprep.subr.mxu0 %v4651_v0 }
0x25bd   :  { %4210 = vmatpush3.msra.mxu0 %v5106_v58 }
0x25be   :  { %4211 = vmatprep.subr.mxu0 %v4651_v0 }
0x25bf   :  { %4212 = vmatpush3.msra.mxu0 %v5113_v59 }
0x25c0   :  { %4227 = vmatprep.subr.mxu0 %v4651_v0 }
0x2678   :  { %v1915_v14 = vpop.f32.mrf.mxu0 }
0x2679   :  { %v1919_v15 = vadd.f32 %v1915_v14, %v292_v20 }
0x267a   :  { %v4193_v16 = vpop.f32.mrf.mxu0 }
0x267b   :  { %4497 = vtanh.f32 %v1919_v15  ;;  %v3748_v19 = vmul.f32 -1.442695, %v1919_v15 }
0x267d   :  { %4499 = vpow2.f32 %v3748_v19 }
0x2688   :  { %v4498_v18 = vpop.eup %4497 }
0x2689   :  { %1929 = vrot.lane.b32.xlu0 %v4498_v18, %s4653_s6 }
0x268a   :  { %v4500_v2 = vpop.eup %4499 }
0x268b   :  { %v1923_v42 = vadd.f32 1.0, %v4500_v2 }
0x268d   :  { %4501 = vrcp.f32 %v1923_v42 }
0x269a   :  { %v4502_v43 = vpop.eup %4501 }
0x269b   :  { %v1927_v4 = vmul.f32 %v4502_v43, %v1835_v22 }
0x26fb   :  { %v1930_v44 = vpop.permute.xlu0 %1929 }
0x26fc   :  { %v1932_v45 = vmul.f32 %v4502_v43, %v1930_v44 }
0x26fe   :  { %1934 = vrot.lane.b32.xlu1 %v1932_v45, %s4654_s7 }
0x2770   :  { %v1935_v46 = vpop.permute.xlu1 %1934 }
0x2771   :  { %v1937_v25 = vadd.f32 %v1935_v46, %v1927_v4  ;;  %v307_v4 = vadd.f32 %v5137_v17, %v5015_v26 }
0x2773   :  { %4503 = vtanh.f32 %v1937_v25 }
0x2780   :  { %v4504_v7 = vpop.eup %4503 }
0x2781   :  { %1940 = vrot.lane.b32.xlu0 %v4504_v7, %s4653_s6 }
0x27f3   :  { %v1941_v48 = vpop.permute.xlu0 %1940 }
0x27f4   :  { %v1943_v49 = vmul.f32 %v4502_v43, %v1941_v48 }
0x27f6   :  { %1947 = vrot.lane.b32.xlu1 %v1943_v49, %s4654_s7 }
0x2868   :  { %v1948_v8 = vpop.permute.xlu1 %1947 }
0x2869   :  { %4203 = vmatmul.mubr.msk.f32.vlgmr.msra.gmra.mxu1 %vm417_vm2, %v1948_v8 }
0x286a   :  { %4217 = vmatpush3.msra.mxu1 %v5090_v56  ;;  %4224 = vmatprep.mubr.msk.f32.mxu1 %vm4652_vm0, %v4651_v0 }
0x286b   :  { %4218 = vmatprep.subr.mxu1 %v4651_v0 }
0x286c   :  { %4219 = vmatpush3.msra.mxu1 %v5099_v57 }
0x286d   :  { %4220 = vmatprep.subr.mxu1 %v4651_v0 }
0x286e   :  { %4221 = vmatpush3.msra.mxu1 %v5106_v58 }
0x286f   :  { %4222 = vmatprep.subr.mxu1 %v4651_v0 }
0x2870   :  { %4223 = vmatpush3.msra.mxu1 %v5113_v59 }
0x2871   :  { %4238 = vmatprep.subr.mxu1 %v4651_v0 }
0x2929   :  { %v2017_v50 = vpop.f32.mrf.mxu1 }
0x292a   :  { %v2021_v51 = vadd.f32 %v2017_v50, %v297_v23 }
0x292b   :  { %v4204_v21 = vpop.f32.mrf.mxu1 }
0x292c   :  { %4505 = vtanh.f32 %v2021_v51  ;;  %v3750_v53 = vmul.f32 -1.442695, %v2021_v51 }
0x292e   :  { %4507 = vpow2.f32 %v3750_v53 }
0x2939   :  { %v4506_v52 = vpop.eup %4505 }
0x293a   :  { %2031 = vrot.lane.b32.xlu0 %v4506_v52, %s4653_s6 }
0x293b   :  { %v4508_v54 = vpop.eup %4507 }
0x293c   :  { %v2025_v55 = vadd.f32 1.0, %v4508_v54 }
0x293e   :  { %4509 = vrcp.f32 %v2025_v55 }
0x294b   :  { %v4510_v60 = vpop.eup %4509 }
0x294c   :  { %v2029_v62 = vmul.f32 %v4510_v60, %v1937_v25 }
0x29ac   :  { %v2032_v47 = vpop.permute.xlu0 %2031 }
0x29ad   :  { %v2034_v61 = vmul.f32 %v4510_v60, %v2032_v47 }
0x29af   :  { %2036 = vrot.lane.b32.xlu1 %v2034_v61, %s4654_s7  ;;  %v312_v61 = vadd.f32 %v5137_v17, %v5021_v29 }
0x2a21   :  { %v2037_v63 = vpop.permute.xlu1 %2036 }
0x2a22   :  { %v2039_v24 = vadd.f32 %v2037_v63, %v2029_v62 }
0x2a24   :  { %4511 = vtanh.f32 %v2039_v24 }
0x2a31   :  { %v4512_v1 = vpop.eup %4511 }
0x2a32   :  { %2042 = vrot.lane.b32.xlu0 %v4512_v1, %s4653_s6 }
0x2aa4   :  { %v2043_v3 = vpop.permute.xlu0 %2042 }
0x2aa5   :  { %v2045_v5 = vmul.f32 %v4510_v60, %v2043_v3 }
0x2aa7   :  { %2049 = vrot.lane.b32.xlu1 %v2045_v5, %s4654_s7 }
0x2b19   :  { %v2050_v6 = vpop.permute.xlu1 %2049 }
0x2b1a   :  { %4214 = vmatmul.mubr.msk.f32.vlgmr.msra.gmra.mxu0 %vm417_vm2, %v2050_v6 }
0x2b1b   :  { %4228 = vmatpush3.msra.mxu0 %v5090_v56  ;;  %4235 = vmatprep.mubr.msk.f32.mxu0 %vm4652_vm0, %v4651_v0 }
0x2b1c   :  { %4229 = vmatprep.subr.mxu0 %v4651_v0 }
0x2b1d   :  { %4230 = vmatpush3.msra.mxu0 %v5099_v57 }
0x2b1e   :  { %4231 = vmatprep.subr.mxu0 %v4651_v0 }
0x2b1f   :  { %4232 = vmatpush3.msra.mxu0 %v5106_v58 }
0x2b20   :  { %4233 = vmatprep.subr.mxu0 %v4651_v0 }
0x2b21   :  { %4234 = vmatpush3.msra.mxu0 %v5113_v59 }
0x2b22   :  { %4249 = vmatprep.subr.mxu0 %v4651_v0 }
0x2bda   :  { %v2119_v22 = vpop.f32.mrf.mxu0 }
0x2bdb   :  { %v2123_v11 = vadd.f32 %v2119_v22, %v302_v9 }
0x2bdc   :  { %v4215_v12 = vpop.f32.mrf.mxu0 }
0x2bdd   :  { %4513 = vtanh.f32 %v2123_v11  ;;  %v3752_v10 = vmul.f32 -1.442695, %v2123_v11 }
0x2bdf   :  { %4515 = vpow2.f32 %v3752_v10 }
0x2bea   :  { %v4514_v13 = vpop.eup %4513 }
0x2beb   :  { %2133 = vrot.lane.b32.xlu0 %v4514_v13, %s4653_s6 }
0x2bec   :  { %v4516_v20 = vpop.eup %4515 }
0x2bed   :  { %v2127_v14 = vadd.f32 1.0, %v4516_v20 }
0x2bef   :  { %4517 = vrcp.f32 %v2127_v14 }
0x2bfc   :  { %v4518_v15 = vpop.eup %4517 }
0x2bfd   :  { %v2131_v19 = vmul.f32 %v4518_v15, %v2039_v24 }
0x2c5d   :  { %v2134_v16 = vpop.permute.xlu0 %2133 }
0x2c5e   :  { %v2136_v18 = vmul.f32 %v4518_v15, %v2134_v16  ;;  %v317_v16 = vadd.f32 %v5137_v17, %v5019_v28 }
0x2c60   :  { %2138 = vrot.lane.b32.xlu1 %v2136_v18, %s4654_s7 }
0x2cd2   :  { %v2139_v2 = vpop.permute.xlu1 %2138 }
0x2cd3   :  { %v2141_v27 = vadd.f32 %v2139_v2, %v2131_v19 }
0x2cd5   :  { %4519 = vtanh.f32 %v2141_v27 }
0x2ce2   :  { %v4520_v42 = vpop.eup %4519 }
0x2ce3   :  { %2144 = vrot.lane.b32.xlu0 %v4520_v42, %s4653_s6 }
0x2d55   :  { %v2145_v43 = vpop.permute.xlu0 %2144 }
0x2d56   :  { %v2147_v44 = vmul.f32 %v4518_v15, %v2145_v43 }
0x2d58   :  { %2151 = vrot.lane.b32.xlu1 %v2147_v44, %s4654_s7 }
0x2dca   :  { %v2152_v45 = vpop.permute.xlu1 %2151 }
0x2dcb   :  { %4225 = vmatmul.mubr.msk.f32.vlgmr.msra.gmra.mxu1 %vm417_vm2, %v2152_v45 }
0x2dcc   :  { %4239 = vmatpush3.msra.mxu1 %v5090_v56  ;;  %4246 = vmatprep.mubr.msk.f32.mxu1 %vm4652_vm0, %v4651_v0 }
0x2dcd   :  { %4240 = vmatprep.subr.mxu1 %v4651_v0 }
0x2dce   :  { %4241 = vmatpush3.msra.mxu1 %v5099_v57 }
0x2dcf   :  { %4242 = vmatprep.subr.mxu1 %v4651_v0 }
0x2dd0   :  { %4243 = vmatpush3.msra.mxu1 %v5106_v58 }
0x2dd1   :  { %4244 = vmatprep.subr.mxu1 %v4651_v0 }
0x2dd2   :  { %4245 = vmatpush3.msra.mxu1 %v5113_v59 }
0x2dd3   :  { %4260 = vmatprep.subr.mxu1 %v4651_v0 }
0x2e8b   :  { %v2221_v46 = vpop.f32.mrf.mxu1 }
0x2e8c   :  { %v2225_v25 = vadd.f32 %v2221_v46, %v307_v4 }
0x2e8d   :  { %v4226_v7 = vpop.f32.mrf.mxu1 }
0x2e8e   :  { %4521 = vtanh.f32 %v2225_v25  ;;  %v3754_v49 = vmul.f32 -1.442695, %v2225_v25 }
0x2e90   :  { %4523 = vpow2.f32 %v3754_v49 }
0x2e9b   :  { %v4522_v48 = vpop.eup %4521 }
0x2e9c   :  { %2235 = vrot.lane.b32.xlu0 %v4522_v48, %s4653_s6 }
0x2e9d   :  { %v4524_v8 = vpop.eup %4523 }
0x2e9e   :  { %v2229_v23 = vadd.f32 1.0, %v4524_v8 }
0x2ea0   :  { %4525 = vrcp.f32 %v2229_v23 }
0x2ead   :  { %v4526_v50 = vpop.eup %4525 }
0x2eae   :  { %v2233_v52 = vmul.f32 %v4526_v50, %v2141_v27 }
0x2f0e   :  { %v2236_v51 = vpop.permute.xlu0 %2235 }
0x2f0f   :  { %v2238_v21 = vmul.f32 %v4526_v50, %v2236_v51 }
0x2f11   :  { %2240 = vrot.lane.b32.xlu1 %v2238_v21, %s4654_s7 }
0x2f83   :  { %v2241_v53 = vpop.permute.xlu1 %2240 }
0x2f84   :  { %v2243_v26 = vadd.f32 %v2241_v53, %v2233_v52 }
0x2f86   :  { %4527 = vtanh.f32 %v2243_v26 }
0x2f93   :  { %v4528_v54 = vpop.eup %4527 }
0x2f94   :  { %2246 = vrot.lane.b32.xlu0 %v4528_v54, %s4653_s6 }
0x3006   :  { %v2247_v55 = vpop.permute.xlu0 %2246 }
0x3007   :  { %v2249_v60 = vmul.f32 %v4526_v50, %v2247_v55  ;;  %v322_v50 = vadd.f32 %v5137_v17, %v5025_v31 }
0x3009   :  { %2253 = vrot.lane.b32.xlu1 %v2249_v60, %s4654_s7 }
0x307b   :  { %v2254_v47 = vpop.permute.xlu1 %2253 }
0x307c   :  { %4236 = vmatmul.mubr.msk.f32.vlgmr.msra.gmra.mxu0 %vm417_vm2, %v2254_v47 }
0x307d   :  { %4250 = vmatpush3.msra.mxu0 %v5090_v56  ;;  %4257 = vmatprep.mubr.msk.f32.mxu0 %vm4652_vm0, %v4651_v0 }
0x307e   :  { %4251 = vmatprep.subr.mxu0 %v4651_v0 }
0x307f   :  { %4252 = vmatpush3.msra.mxu0 %v5099_v57 }
0x3080   :  { %4253 = vmatprep.subr.mxu0 %v4651_v0 }
0x3081   :  { %4254 = vmatpush3.msra.mxu0 %v5106_v58 }
0x3082   :  { %4255 = vmatprep.subr.mxu0 %v4651_v0 }
0x3083   :  { %4256 = vmatpush3.msra.mxu0 %v5113_v59 }
0x3084   :  { %4271 = vmatprep.subr.mxu0 %v4651_v0 }
0x313c   :  { %v2323_v62 = vpop.f32.mrf.mxu0 }
0x313d   :  { %v2327_v63 = vadd.f32 %v2323_v62, %v312_v61 }
0x313e   :  { %v4237_v24 = vpop.f32.mrf.mxu0 }
0x313f   :  { %4529 = vtanh.f32 %v2327_v63  ;;  %v3756_v3 = vmul.f32 -1.442695, %v2327_v63 }
0x3141   :  { %4531 = vpow2.f32 %v3756_v3 }
0x314c   :  { %v4530_v1 = vpop.eup %4529 }
0x314d   :  { %2337 = vrot.lane.b32.xlu0 %v4530_v1, %s4653_s6 }
0x314e   :  { %v4532_v5 = vpop.eup %4531 }
0x314f   :  { %v2331_v6 = vadd.f32 1.0, %v4532_v5 }
0x3151   :  { %4533 = vrcp.f32 %v2331_v6  ;;  %v327_v6 = vadd.f32 %v5137_v17, %v5023_v30 }
0x315e   :  { %v4534_v9 = vpop.eup %4533 }
0x315f   :  { %v2335_v12 = vmul.f32 %v4534_v9, %v2243_v26 }
0x31bf   :  { %v2338_v22 = vpop.permute.xlu0 %2337 }
0x31c0   :  { %v2340_v11 = vmul.f32 %v4534_v9, %v2338_v22 }
0x31c2   :  { %2342 = vrot.lane.b32.xlu1 %v2340_v11, %s4654_s7 }
0x3234   :  { %v2343_v13 = vpop.permute.xlu1 %2342 }
0x3235   :  { %v2345_v29 = vadd.f32 %v2343_v13, %v2335_v12 }
0x3237   :  { %4535 = vtanh.f32 %v2345_v29 }
0x3244   :  { %v4536_v10 = vpop.eup %4535 }
0x3245   :  { %2348 = vrot.lane.b32.xlu0 %v4536_v10, %s4653_s6 }
0x32b7   :  { %v2349_v20 = vpop.permute.xlu0 %2348 }
0x32b8   :  { %v2351_v14 = vmul.f32 %v4534_v9, %v2349_v20 }
0x32ba   :  { %2355 = vrot.lane.b32.xlu1 %v2351_v14, %s4654_s7 }
0x332c   :  { %v2356_v15 = vpop.permute.xlu1 %2355 }
0x332d   :  { %4247 = vmatmul.mubr.msk.f32.vlgmr.msra.gmra.mxu1 %vm417_vm2, %v2356_v15 }
0x332e   :  { %4261 = vmatpush3.msra.mxu1 %v5090_v56  ;;  %4268 = vmatprep.mubr.msk.f32.mxu1 %vm4652_vm0, %v4651_v0 }
0x332f   :  { %4262 = vmatprep.subr.mxu1 %v4651_v0 }
0x3330   :  { %4263 = vmatpush3.msra.mxu1 %v5099_v57 }
0x3331   :  { %4264 = vmatprep.subr.mxu1 %v4651_v0 }
0x3332   :  { %4265 = vmatpush3.msra.mxu1 %v5106_v58 }
0x3333   :  { %4266 = vmatprep.subr.mxu1 %v4651_v0 }
0x3334   :  { %4267 = vmatpush3.msra.mxu1 %v5113_v59 }
0x3335   :  { %4282 = vmatprep.subr.mxu1 %v4651_v0 }
0x33ed   :  { %v2425_v18 = vpop.f32.mrf.mxu1 }
0x33ee   :  { %v2429_v19 = vadd.f32 %v2425_v18, %v317_v16 }
0x33ef   :  { %v4248_v2 = vpop.f32.mrf.mxu1 }
0x33f0   :  { %4537 = vtanh.f32 %v2429_v19  ;;  %v3758_v42 = vmul.f32 -1.442695, %v2429_v19 }
0x33f2   :  { %4539 = vpow2.f32 %v3758_v42 }
0x33fd   :  { %v4538_v27 = vpop.eup %4537 }
0x33fe   :  { %2439 = vrot.lane.b32.xlu0 %v4538_v27, %s4653_s6 }
0x33ff   :  { %v4540_v43 = vpop.eup %4539 }
0x3400   :  { %v2433_v44 = vadd.f32 1.0, %v4540_v43  ;;  %v332_v43 = vadd.f32 %v5137_v17, %v5029_v33 }
0x3402   :  { %4541 = vrcp.f32 %v2433_v44 }
0x340f   :  { %v4542_v45 = vpop.eup %4541 }
0x3410   :  { %v2437_v25 = vmul.f32 %v4542_v45, %v2345_v29 }
0x3470   :  { %v2440_v4 = vpop.permute.xlu0 %2439 }
0x3471   :  { %v2442_v46 = vmul.f32 %v4542_v45, %v2440_v4 }
0x3473   :  { %2444 = vrot.lane.b32.xlu1 %v2442_v46, %s4654_s7 }
0x34e5   :  { %v2445_v7 = vpop.permute.xlu1 %2444 }
0x34e6   :  { %v2447_v28 = vadd.f32 %v2445_v7, %v2437_v25 }
0x34e8   :  { %4543 = vtanh.f32 %v2447_v28 }
0x34f5   :  { %v4544_v48 = vpop.eup %4543 }
0x34f6   :  { %2450 = vrot.lane.b32.xlu0 %v4544_v48, %s4653_s6 }
0x3568   :  { %v2451_v49 = vpop.permute.xlu0 %2450 }
0x3569   :  { %v2453_v8 = vmul.f32 %v4542_v45, %v2451_v49 }
0x356b   :  { %2457 = vrot.lane.b32.xlu1 %v2453_v8, %s4654_s7 }
0x35dd   :  { %v2458_v23 = vpop.permute.xlu1 %2457 }
0x35de   :  { %4258 = vmatmul.mubr.msk.f32.vlgmr.msra.gmra.mxu0 %vm417_vm2, %v2458_v23 }
0x35df   :  { %4272 = vmatpush3.msra.mxu0 %v5090_v56  ;;  %4279 = vmatprep.mubr.msk.f32.mxu0 %vm4652_vm0, %v4651_v0 }
0x35e0   :  { %4273 = vmatprep.subr.mxu0 %v4651_v0 }
0x35e1   :  { %4274 = vmatpush3.msra.mxu0 %v5099_v57 }
0x35e2   :  { %4275 = vmatprep.subr.mxu0 %v4651_v0 }
0x35e3   :  { %4276 = vmatpush3.msra.mxu0 %v5106_v58 }
0x35e4   :  { %4277 = vmatprep.subr.mxu0 %v4651_v0 }
0x35e5   :  { %4278 = vmatpush3.msra.mxu0 %v5113_v59 }
0x35e6   :  { %4293 = vmatprep.subr.mxu0 %v4651_v0 }
0x369e   :  { %v2527_v51 = vpop.f32.mrf.mxu0 }
0x369f   :  { %v2531_v21 = vadd.f32 %v2527_v51, %v322_v50 }
0x36a0   :  { %v4259_v52 = vpop.f32.mrf.mxu0 }
0x36a1   :  { %4545 = vtanh.f32 %v2531_v21  ;;  %v3760_v26 = vmul.f32 -1.442695, %v2531_v21 }
0x36a3   :  { %4547 = vpow2.f32 %v3760_v26  ;;  %v337_v26 = vadd.f32 %v5137_v17, %v5027_v32 }
0x36ae   :  { %v4546_v53 = vpop.eup %4545 }
0x36af   :  { %2541 = vrot.lane.b32.xlu0 %v4546_v53, %s4653_s6 }
0x36b0   :  { %v4548_v54 = vpop.eup %4547 }
0x36b1   :  { %v2535_v55 = vadd.f32 1.0, %v4548_v54 }
0x36b3   :  { %4549 = vrcp.f32 %v2535_v55 }
0x36c0   :  { %v4550_v60 = vpop.eup %4549 }
0x36c1   :  { %v2539_v62 = vmul.f32 %v4550_v60, %v2447_v28 }
0x3721   :  { %v2542_v47 = vpop.permute.xlu0 %2541 }
0x3722   :  { %v2544_v61 = vmul.f32 %v4550_v60, %v2542_v47 }
0x3724   :  { %2546 = vrot.lane.b32.xlu1 %v2544_v61, %s4654_s7 }
0x3796   :  { %v2547_v63 = vpop.permute.xlu1 %2546 }
0x3797   :  { %v2549_v31 = vadd.f32 %v2547_v63, %v2539_v62 }
0x3799   :  { %4551 = vtanh.f32 %v2549_v31 }
0x37a6   :  { %v4552_v24 = vpop.eup %4551 }
0x37a7   :  { %2552 = vrot.lane.b32.xlu0 %v4552_v24, %s4653_s6 }
0x3819   :  { %v2553_v1 = vpop.permute.xlu0 %2552 }
0x381a   :  { %v2555_v3 = vmul.f32 %v4550_v60, %v2553_v1 }
0x381c   :  { %2559 = vrot.lane.b32.xlu1 %v2555_v3, %s4654_s7 }
0x388e   :  { %v2560_v5 = vpop.permute.xlu1 %2559 }
0x388f   :  { %4269 = vmatmul.mubr.msk.f32.vlgmr.msra.gmra.mxu1 %vm417_vm2, %v2560_v5 }
0x3890   :  { %4283 = vmatpush3.msra.mxu1 %v5090_v56  ;;  %4290 = vmatprep.mubr.msk.f32.mxu1 %vm4652_vm0, %v4651_v0 }
0x3891   :  { %4284 = vmatprep.subr.mxu1 %v4651_v0 }
0x3892   :  { %4285 = vmatpush3.msra.mxu1 %v5099_v57 }
0x3893   :  { %4286 = vmatprep.subr.mxu1 %v4651_v0 }
0x3894   :  { %4287 = vmatpush3.msra.mxu1 %v5106_v58 }
0x3895   :  { %4288 = vmatprep.subr.mxu1 %v4651_v0 }
0x3896   :  { %4289 = vmatpush3.msra.mxu1 %v5113_v59 }
0x3897   :  { %4304 = vmatprep.subr.mxu1 %v4651_v0 }
0x394f   :  { %v2629_v9 = vpop.f32.mrf.mxu1 }
0x3950   :  { %v2633_v22 = vadd.f32 %v2629_v9, %v327_v6 }
0x3951   :  { %v4270_v11 = vpop.f32.mrf.mxu1 }
0x3952   :  { %4553 = vtanh.f32 %v2633_v22  ;;  %v3762_v13 = vmul.f32 -1.442695, %v2633_v22 }
0x3954   :  { %4555 = vpow2.f32 %v3762_v13 }
0x395f   :  { %v4554_v12 = vpop.eup %4553 }
0x3960   :  { %2643 = vrot.lane.b32.xlu0 %v4554_v12, %s4653_s6  ;;  %v342_v12 = vadd.f32 %v5137_v17, %v5033_v35 }
0x3961   :  { %v4556_v29 = vpop.eup %4555 }
0x3962   :  { %v2637_v10 = vadd.f32 1.0, %v4556_v29 }
0x3964   :  { %4557 = vrcp.f32 %v2637_v10 }
0x3971   :  { %v4558_v20 = vpop.eup %4557 }
0x3972   :  { %v2641_v16 = vmul.f32 %v4558_v20, %v2549_v31 }
0x39d2   :  { %v2644_v14 = vpop.permute.xlu0 %2643 }
0x39d3   :  { %v2646_v15 = vmul.f32 %v4558_v20, %v2644_v14 }
0x39d5   :  { %2648 = vrot.lane.b32.xlu1 %v2646_v15, %s4654_s7 }
0x3a47   :  { %v2649_v18 = vpop.permute.xlu1 %2648 }
0x3a48   :  { %v2651_v30 = vadd.f32 %v2649_v18, %v2641_v16 }
0x3a4a   :  { %4559 = vtanh.f32 %v2651_v30 }
0x3a57   :  { %v4560_v19 = vpop.eup %4559 }
0x3a58   :  { %2654 = vrot.lane.b32.xlu0 %v4560_v19, %s4653_s6 }
0x3aca   :  { %v2655_v2 = vpop.permute.xlu0 %2654 }
0x3acb   :  { %v2657_v27 = vmul.f32 %v4558_v20, %v2655_v2 }
0x3acd   :  { %2661 = vrot.lane.b32.xlu1 %v2657_v27, %s4654_s7 }
0x3b3f   :  { %v2662_v42 = vpop.permute.xlu1 %2661 }
0x3b40   :  { %4280 = vmatmul.mubr.msk.f32.vlgmr.msra.gmra.mxu0 %vm417_vm2, %v2662_v42 }
0x3b41   :  { %4294 = vmatpush3.msra.mxu0 %v5090_v56  ;;  %4301 = vmatprep.mubr.msk.f32.mxu0 %vm4652_vm0, %v4651_v0 }
0x3b42   :  { %4295 = vmatprep.subr.mxu0 %v4651_v0 }
0x3b43   :  { %4296 = vmatpush3.msra.mxu0 %v5099_v57 }
0x3b44   :  { %4297 = vmatprep.subr.mxu0 %v4651_v0 }
0x3b45   :  { %4298 = vmatpush3.msra.mxu0 %v5106_v58 }
0x3b46   :  { %4299 = vmatprep.subr.mxu0 %v4651_v0 }
0x3b47   :  { %4300 = vmatpush3.msra.mxu0 %v5113_v59 }
0x3b48   :  { %4315 = vmatprep.subr.mxu0 %v4651_v0 }
0x3c00   :  { %v2731_v44 = vpop.f32.mrf.mxu0 }
0x3c01   :  { %v2735_v45 = vadd.f32 %v2731_v44, %v332_v43 }
0x3c02   :  { %v4281_v4 = vpop.f32.mrf.mxu0 }
0x3c03   :  { %4561 = vtanh.f32 %v2735_v45  ;;  %v3764_v25 = vmul.f32 -1.442695, %v2735_v45 }
0x3c05   :  { %4563 = vpow2.f32 %v3764_v25 }
0x3c10   :  { %v4562_v46 = vpop.eup %4561 }
0x3c11   :  { %2745 = vrot.lane.b32.xlu0 %v4562_v46, %s4653_s6 }
0x3c12   :  { %v4564_v7 = vpop.eup %4563 }
0x3c13   :  { %v2739_v28 = vadd.f32 1.0, %v4564_v7 }
0x3c15   :  { %4565 = vrcp.f32 %v2739_v28 }
0x3c22   :  { %v4566_v48 = vpop.eup %4565 }
0x3c23   :  { %v2743_v23 = vmul.f32 %v4566_v48, %v2651_v30 }
0x3c83   :  { %v2746_v49 = vpop.permute.xlu0 %2745 }
0x3c84   :  { %v2748_v8 = vmul.f32 %v4566_v48, %v2746_v49 }
0x3c86   :  { %2750 = vrot.lane.b32.xlu1 %v2748_v8, %s4654_s7 }
0x3cf8   :  { %v2751_v50 = vpop.permute.xlu1 %2750 }
0x3cf9   :  { %v2753_v33 = vadd.f32 %v2751_v50, %v2743_v23 }
0x3cfb   :  { %4567 = vtanh.f32 %v2753_v33 }
0x3d08   :  { %v4568_v51 = vpop.eup %4567 }
0x3d09   :  { %2756 = vrot.lane.b32.xlu0 %v4568_v51, %s4653_s6 }
0x3d7b   :  { %v2757_v21 = vpop.permute.xlu0 %2756 }
0x3d7c   :  { %v2759_v52 = vmul.f32 %v4566_v48, %v2757_v21 }
0x3d7e   :  { %2763 = vrot.lane.b32.xlu1 %v2759_v52, %s4654_s7  ;;  %v5370_v52 = vld [vmem:[%s5476_s2 + $0x18] sm:$0xff] }
0x3df0   :  { %v2764_v53 = vpop.permute.xlu1 %2763 }
0x3df1   :  { %4291 = vmatmul.mubr.msk.f32.vlgmr.msra.gmra.mxu1 %vm417_vm2, %v2764_v53  ;;  %v5379_v53 = vld [vmem:[%s5476_s2 + $0x10] sm:$0xff] }
0x3df2   :  { %4305 = vmatpush3.msra.mxu1 %v5090_v56  ;;  %4312 = vmatprep.mubr.msk.f32.mxu1 %vm4652_vm0, %v4651_v0 }
0x3df3   :  { %4306 = vmatprep.subr.mxu1 %v4651_v0 }
0x3df4   :  { %4307 = vmatpush3.msra.mxu1 %v5099_v57 }
0x3df5   :  { %4308 = vmatprep.subr.mxu1 %v4651_v0 }
0x3df6   :  { %4309 = vmatpush3.msra.mxu1 %v5106_v58 }
0x3df7   :  { %4310 = vmatprep.subr.mxu1 %v4651_v0 }
0x3df8   :  { %4311 = vmatpush3.msra.mxu1 %v5113_v59 }
0x3df9   :  { %4326 = vmatprep.subr.mxu1 %v4651_v0 }
0x3eb1   :  { %v2833_v54 = vpop.f32.mrf.mxu1 }
0x3eb2   :  { %v2837_v55 = vadd.f32 %v2833_v54, %v337_v26  ;;  %v5386_v26 = vld [vmem:[%s5476_s2 + $0x8] sm:$0xff]  ;;  %v5393_v54 = vld [vmem:[%s5476_s2] sm:$0xff] }
0x3eb3   :  { %v4292_v60 = vpop.f32.mrf.mxu1 }
0x3eb4   :  { %4569 = vtanh.f32 %v2837_v55  ;;  %v3766_v61 = vmul.f32 -1.442695, %v2837_v55  ;;  %v352_v55 = vadd.f32 %v5137_v17, %v5037_v37 }
0x3eb6   :  { %4571 = vpow2.f32 %v3766_v61 }
0x3ec1   :  { %v4570_v47 = vpop.eup %4569 }
0x3ec2   :  { %2847 = vrot.lane.b32.xlu0 %v4570_v47, %s4653_s6 }
0x3ec3   :  { %v4572_v62 = vpop.eup %4571 }
0x3ec4   :  { %v2841_v63 = vadd.f32 1.0, %v4572_v62 }
0x3ec6   :  { %4573 = vrcp.f32 %v2841_v63 }
0x3ed3   :  { %v4574_v31 = vpop.eup %4573 }
0x3ed4   :  { %v2845_v3 = vmul.f32 %v4574_v31, %v2753_v33 }
0x3f34   :  { %v2848_v24 = vpop.permute.xlu0 %2847 }
0x3f35   :  { %v2850_v1 = vmul.f32 %v4574_v31, %v2848_v24 }
0x3f37   :  { %2852 = vrot.lane.b32.xlu1 %v2850_v1, %s4654_s7 }
0x3fa9   :  { %v2853_v5 = vpop.permute.xlu1 %2852 }
0x3faa   :  { %v2855_v32 = vadd.f32 %v2853_v5, %v2845_v3 }
0x3fac   :  { %4575 = vtanh.f32 %v2855_v32 }
0x3fb9   :  { %v4576_v6 = vpop.eup %4575 }
0x3fba   :  { %2858 = vrot.lane.b32.xlu0 %v4576_v6, %s4653_s6 }
0x402c   :  { %v2859_v9 = vpop.permute.xlu0 %2858 }
0x402d   :  { %v2861_v22 = vmul.f32 %v4574_v31, %v2859_v9 }
0x402f   :  { %2865 = vrot.lane.b32.xlu1 %v2861_v22, %s4654_s7 }
0x40a1   :  { %v2866_v11 = vpop.permute.xlu1 %2865 }
0x40a2   :  { %4302 = vmatmul.mubr.msk.f32.vlgmr.msra.gmra.mxu0 %vm417_vm2, %v2866_v11 }
0x40a3   :  { %4316 = vmatpush3.msra.mxu0 %v5090_v56  ;;  %4323 = vmatprep.mubr.msk.f32.mxu0 %vm4652_vm0, %v4651_v0 }
0x40a4   :  { %4317 = vmatprep.subr.mxu0 %v4651_v0 }
0x40a5   :  { %4318 = vmatpush3.msra.mxu0 %v5099_v57 }
0x40a6   :  { %4319 = vmatprep.subr.mxu0 %v4651_v0 }
0x40a7   :  { %4320 = vmatpush3.msra.mxu0 %v5106_v58 }
0x40a8   :  { %4321 = vmatprep.subr.mxu0 %v4651_v0 }
0x40a9   :  { %4322 = vmatpush3.msra.mxu0 %v5113_v59 }
0x40aa   :  { %4337 = vmatprep.subr.mxu0 %v4651_v0 }
0x4162   :  { %v2935_v13 = vpop.f32.mrf.mxu0 }
0x4163   :  { %v2939_v29 = vadd.f32 %v2935_v13, %v342_v12  ;;  %v5417_v12 = vld [vmem:[%s5478_s3] ss:$0 sm:$0xff] }
0x4164   :  { %v4303_v10 = vpop.f32.mrf.mxu0  ;;  %v357_v13 = vadd.f32 %v5417_v12, %v5035_v36 }
0x4165   :  { %4577 = vtanh.f32 %v2939_v29  ;;  %v3768_v14 = vmul.f32 -1.442695, %v2939_v29 }
0x4167   :  { %4579 = vpow2.f32 %v3768_v14 }
0x4172   :  { %v4578_v20 = vpop.eup %4577 }
0x4173   :  { %2949 = vrot.lane.b32.xlu0 %v4578_v20, %s4653_s6 }
0x4174   :  { %v4580_v15 = vpop.eup %4579 }
0x4175   :  { %v2943_v16 = vadd.f32 1.0, %v4580_v15 }
0x4177   :  { %4581 = vrcp.f32 %v2943_v16 }
0x4184   :  { %v4582_v18 = vpop.eup %4581 }
0x4185   :  { %v2947_v2 = vmul.f32 %v4582_v18, %v2855_v32 }
0x41e5   :  { %v2950_v30 = vpop.permute.xlu0 %2949 }
0x41e6   :  { %v2952_v19 = vmul.f32 %v4582_v18, %v2950_v30 }
0x41e8   :  { %2954 = vrot.lane.b32.xlu1 %v2952_v19, %s4654_s7 }
0x425a   :  { %v2955_v27 = vpop.permute.xlu1 %2954 }
0x425b   :  { %v2957_v35 = vadd.f32 %v2955_v27, %v2947_v2 }
0x425d   :  { %4583 = vtanh.f32 %v2957_v35 }
0x426a   :  { %v4584_v42 = vpop.eup %4583 }
0x426b   :  { %2960 = vrot.lane.b32.xlu0 %v4584_v42, %s4653_s6 }
0x42dd   :  { %v2961_v43 = vpop.permute.xlu0 %2960 }
0x42de   :  { %v2963_v44 = vmul.f32 %v4582_v18, %v2961_v43 }
0x42e0   :  { %2967 = vrot.lane.b32.xlu1 %v2963_v44, %s4654_s7 }
0x4352   :  { %v2968_v45 = vpop.permute.xlu1 %2967 }
0x4353   :  { %4313 = vmatmul.mubr.msk.f32.vlgmr.msra.gmra.mxu1 %vm417_vm2, %v2968_v45 }
0x4354   :  { %4327 = vmatpush3.msra.mxu1 %v5090_v56  ;;  %4334 = vmatprep.mubr.msk.f32.mxu1 %vm4652_vm0, %v4651_v0  ;;  %v347_v56 = vadd.f32 %v5137_v17, %v5031_v34 }
0x4355   :  { %4328 = vmatprep.subr.mxu1 %v4651_v0 }
0x4356   :  { %4329 = vmatpush3.msra.mxu1 %v5099_v57 }
0x4357   :  { %4330 = vmatprep.subr.mxu1 %v4651_v0 }
0x4358   :  { %4331 = vmatpush3.msra.mxu1 %v5106_v58 }
0x4359   :  { %4332 = vmatprep.subr.mxu1 %v4651_v0 }
0x435a   :  { %4333 = vmatpush3.msra.mxu1 %v5113_v59 }
0x435b   :  { %4348 = vmatprep.subr.mxu1 %v4651_v0 }
0x4413   :  { %v3037_v4 = vpop.f32.mrf.mxu1 }
0x4414   :  { %v3041_v46 = vadd.f32 %v3037_v4, %v347_v56  ;;  %v362_v56 = vadd.f32 %v5417_v12, %v5041_v39 }
0x4415   :  { %v4314_v25 = vpop.f32.mrf.mxu1 }
0x4416   :  { %4585 = vtanh.f32 %v3041_v46  ;;  %v3770_v57 = vmul.f32 -1.442695, %v3041_v46 }
0x4418   :  { %4587 = vpow2.f32 %v3770_v57 }
0x4423   :  { %v4586_v7 = vpop.eup %4585 }
0x4424   :  { %3051 = vrot.lane.b32.xlu0 %v4586_v7, %s4653_s6 }
0x4425   :  { %v4588_v28 = vpop.eup %4587 }
0x4426   :  { %v3045_v58 = vadd.f32 1.0, %v4588_v28 }
0x4428   :  { %4589 = vrcp.f32 %v3045_v58 }
0x4435   :  { %v4590_v48 = vpop.eup %4589 }
0x4436   :  { %v3049_v8 = vmul.f32 %v4590_v48, %v2957_v35 }
0x4496   :  { %v3052_v49 = vpop.permute.xlu0 %3051 }
0x4497   :  { %v3054_v59 = vmul.f32 %v4590_v48, %v3052_v49 }
0x4499   :  { %3056 = vrot.lane.b32.xlu1 %v3054_v59, %s4654_s7 }
0x450b   :  { %v3057_v23 = vpop.permute.xlu1 %3056 }
0x450c   :  { %v3059_v34 = vadd.f32 %v3057_v23, %v3049_v8 }
0x450e   :  { %4591 = vtanh.f32 %v3059_v34 }
0x451b   :  { %v4592_v50 = vpop.eup %4591 }
0x451c   :  { %3062 = vrot.lane.b32.xlu0 %v4592_v50, %s4653_s6 }
0x458e   :  { %v3063_v33 = vpop.permute.xlu0 %3062 }
0x458f   :  { %v3065_v51 = vmul.f32 %v4590_v48, %v3063_v33 }
0x4591   :  { %3069 = vrot.lane.b32.xlu1 %v3065_v51, %s4654_s7 }
0x4603   :  { %v3070_v21 = vpop.permute.xlu1 %3069 }
0x4604   :  { %4324 = vmatmul.mubr.msk.f32.vlgmr.msra.gmra.mxu0 %vm417_vm2, %v3070_v21  ;;  %v367_v21 = vadd.f32 %v5417_v12, %v5039_v38 }
0x4605   :  { %4338 = vmatpush3.msra.mxu0 %v5370_v52  ;;  %4345 = vmatprep.mubr.msk.f32.mxu0 %vm4652_vm0, %v4651_v0 }
0x4606   :  { %4339 = vmatprep.subr.mxu0 %v4651_v0 }
0x4607   :  { %4340 = vmatpush3.msra.mxu0 %v5379_v53 }
0x4608   :  { %4341 = vmatprep.subr.mxu0 %v4651_v0 }
0x4609   :  { %4342 = vmatpush3.msra.mxu0 %v5386_v26 }
0x460a   :  { %4343 = vmatprep.subr.mxu0 %v4651_v0 }
0x460b   :  { %4344 = vmatpush3.msra.mxu0 %v5393_v54 }
0x460c   :  { %4359 = vmatprep.subr.mxu0 %v4651_v0 }
0x46c4   :  { %v3139_v60 = vpop.f32.mrf.mxu0 }
0x46c5   :  { %v3143_v47 = vadd.f32 %v3139_v60, %v352_v55 }
0x46c6   :  { %v4325_v61 = vpop.f32.mrf.mxu0 }
0x46c7   :  { %4593 = vtanh.f32 %v3143_v47  ;;  %v3772_v63 = vmul.f32 -1.442695, %v3143_v47 }
0x46c9   :  { %4595 = vpow2.f32 %v3772_v63 }
0x46d4   :  { %v4594_v62 = vpop.eup %4593 }
0x46d5   :  { %3153 = vrot.lane.b32.xlu0 %v4594_v62, %s4653_s6 }
0x46d6   :  { %v4596_v31 = vpop.eup %4595 }
0x46d7   :  { %v3147_v24 = vadd.f32 1.0, %v4596_v31 }
0x46d9   :  { %4597 = vrcp.f32 %v3147_v24 }
0x46e6   :  { %v4598_v1 = vpop.eup %4597 }
0x46e7   :  { %v3151_v32 = vmul.f32 %v4598_v1, %v3059_v34 }
0x4747   :  { %v3154_v3 = vpop.permute.xlu0 %3153 }
0x4748   :  { %v3156_v5 = vmul.f32 %v4598_v1, %v3154_v3 }
0x474a   :  { %3158 = vrot.lane.b32.xlu1 %v3156_v5, %s4654_s7 }
0x47bc   :  { %v3159_v6 = vpop.permute.xlu1 %3158 }
0x47bd   :  { %v3161_v37 = vadd.f32 %v3159_v6, %v3151_v32  ;;  %v372_v32 = vadd.f32 %v5417_v12, %v5045_v41 }
0x47bf   :  { %4599 = vtanh.f32 %v3161_v37 }
0x47cc   :  { %v4600_v17 = vpop.eup %4599 }
0x47cd   :  { %3164 = vrot.lane.b32.xlu0 %v4600_v17, %s4653_s6 }
0x483f   :  { %v3165_v9 = vpop.permute.xlu0 %3164 }
0x4840   :  { %v3167_v22 = vmul.f32 %v4598_v1, %v3165_v9 }
0x4842   :  { %3171 = vrot.lane.b32.xlu1 %v3167_v22, %s4654_s7 }
0x48b4   :  { %v3172_v11 = vpop.permute.xlu1 %3171 }
0x48b5   :  { %4335 = vmatmul.mubr.msk.f32.vlgmr.msra.gmra.mxu1 %vm417_vm2, %v3172_v11 }
0x48b6   :  { %4349 = vmatpush3.msra.mxu1 %v5370_v52  ;;  %4356 = vmatprep.mubr.msk.f32.mxu1 %vm4652_vm0, %v4651_v0 }
0x48b7   :  { %4350 = vmatprep.subr.mxu1 %v4651_v0 }
0x48b8   :  { %4351 = vmatpush3.msra.mxu1 %v5379_v53 }
0x48b9   :  { %4352 = vmatprep.subr.mxu1 %v4651_v0 }
0x48ba   :  { %4353 = vmatpush3.msra.mxu1 %v5386_v26 }
0x48bb   :  { %4354 = vmatprep.subr.mxu1 %v4651_v0 }
0x48bc   :  { %4355 = vmatpush3.msra.mxu1 %v5393_v54 }
0x48bd   :  { %4370 = vmatprep.subr.mxu1 %v4651_v0 }
0x4975   :  { %v3241_v29 = vpop.f32.mrf.mxu1 }
0x4976   :  { %v3245_v10 = vadd.f32 %v3241_v29, %v357_v13 }
0x4977   :  { %v4336_v20 = vpop.f32.mrf.mxu1 }
0x4978   :  { %4601 = vtanh.f32 %v3245_v10  ;;  %v3774_v15 = vmul.f32 -1.442695, %v3245_v10 }
0x497a   :  { %4603 = vpow2.f32 %v3774_v15 }
0x4985   :  { %v4602_v14 = vpop.eup %4601 }
0x4986   :  { %3255 = vrot.lane.b32.xlu0 %v4602_v14, %s4653_s6 }
0x4987   :  { %v4604_v16 = vpop.eup %4603 }
0x4988   :  { %v3249_v18 = vadd.f32 1.0, %v4604_v16 }
0x498a   :  { %4605 = vrcp.f32 %v3249_v18 }
0x4997   :  { %v4606_v30 = vpop.eup %4605 }
0x4998   :  { %v3253_v27 = vmul.f32 %v4606_v30, %v3161_v37 }
0x49f8   :  { %v3256_v19 = vpop.permute.xlu0 %3255 }
0x49f9   :  { %v3258_v2 = vmul.f32 %v4606_v30, %v3256_v19 }
0x49fb   :  { %3260 = vrot.lane.b32.xlu1 %v3258_v2, %s4654_s7  ;;  %v377_v2 = vadd.f32 %v5417_v12, %v5043_v40 }
0x4a6d   :  { %v3261_v35 = vpop.permute.xlu1 %3260 }
0x4a6e   :  { %v3263_v36 = vadd.f32 %v3261_v35, %v3253_v27 }
0x4a70   :  { %4607 = vtanh.f32 %v3263_v36 }
0x4a7d   :  { %v4608_v42 = vpop.eup %4607 }
0x4a7e   :  { %3266 = vrot.lane.b32.xlu0 %v4608_v42, %s4653_s6 }
0x4af0   :  { %v3267_v43 = vpop.permute.xlu0 %3266 }
0x4af1   :  { %v3269_v44 = vmul.f32 %v4606_v30, %v3267_v43 }
0x4af3   :  { %3273 = vrot.lane.b32.xlu1 %v3269_v44, %s4654_s7 }
0x4b65   :  { %v3274_v45 = vpop.permute.xlu1 %3273 }
0x4b66   :  { %4346 = vmatmul.mubr.msk.f32.vlgmr.msra.gmra.mxu0 %vm417_vm2, %v3274_v45 }
0x4b67   :  { %4360 = vmatpush3.msra.mxu0 %v5370_v52  ;;  %4367 = vmatprep.mubr.msk.f32.mxu0 %vm4652_vm0, %v4651_v0 }
0x4b68   :  { %4361 = vmatprep.subr.mxu0 %v4651_v0 }
0x4b69   :  { %4362 = vmatpush3.msra.mxu0 %v5379_v53 }
0x4b6a   :  { %4363 = vmatprep.subr.mxu0 %v4651_v0 }
0x4b6b   :  { %4364 = vmatpush3.msra.mxu0 %v5386_v26 }
0x4b6c   :  { %4365 = vmatprep.subr.mxu0 %v4651_v0 }
0x4b6d   :  { %4366 = vmatpush3.msra.mxu0 %v5393_v54 }
0x4c26   :  { %v3343_v4 = vpop.f32.mrf.mxu0 }
0x4c27   :  { %v3347_v46 = vadd.f32 %v3343_v4, %v362_v56 }
0x4c28   :  { %v4347_v25 = vpop.f32.mrf.mxu0 }
0x4c29   :  { %4609 = vtanh.f32 %v3347_v46  ;;  %v3776_v57 = vmul.f32 -1.442695, %v3347_v46 }
0x4c2b   :  { %4611 = vpow2.f32 %v3776_v57 }
0x4c36   :  { %v4610_v7 = vpop.eup %4609 }
0x4c37   :  { %3357 = vrot.lane.b32.xlu0 %v4610_v7, %s4653_s6 }
0x4c38   :  { %v4612_v28 = vpop.eup %4611 }
0x4c39   :  { %v3351_v58 = vadd.f32 1.0, %v4612_v28 }
0x4c3b   :  { %4613 = vrcp.f32 %v3351_v58 }
0x4c48   :  { %v4614_v48 = vpop.eup %4613 }
0x4c49   :  { %v3355_v8 = vmul.f32 %v4614_v48, %v3263_v36 }
0x4ca9   :  { %v3358_v49 = vpop.permute.xlu0 %3357 }
0x4caa   :  { %v3360_v59 = vmul.f32 %v4614_v48, %v3358_v49 }
0x4cac   :  { %3362 = vrot.lane.b32.xlu1 %v3360_v59, %s4654_s7 }
0x4d1e   :  { %v3363_v23 = vpop.permute.xlu1 %3362 }
0x4d1f   :  { %v3365_v39 = vadd.f32 %v3363_v23, %v3355_v8 }
0x4d21   :  { %4615 = vtanh.f32 %v3365_v39 }
0x4d2e   :  { %v4616_v34 = vpop.eup %4615 }
0x4d2f   :  { %3368 = vrot.lane.b32.xlu0 %v4616_v34, %s4653_s6 }
0x4da1   :  { %v3369_v50 = vpop.permute.xlu0 %3368 }
0x4da2   :  { %v3371_v33 = vmul.f32 %v4614_v48, %v3369_v50 }
0x4da4   :  { %3375 = vrot.lane.b32.xlu1 %v3371_v33, %s4654_s7 }
0x4e16   :  { %v3376_v51 = vpop.permute.xlu1 %3375 }
0x4e17   :  { %4357 = vmatmul.mubr.msk.f32.vlgmr.msra.gmra.mxu1 %vm417_vm2, %v3376_v51 }
0x4e18   :  { %4371 = vmatpush3.msra.mxu1 %v5370_v52  ;;  %4378 = vmatprep.mubr.msk.f32.mxu1 %vm4652_vm0, %v4651_v0 }
0x4e19   :  { %4372 = vmatprep.subr.mxu1 %v4651_v0 }
0x4e1a   :  { %4373 = vmatpush3.msra.mxu1 %v5379_v53 }
0x4e1b   :  { %4374 = vmatprep.subr.mxu1 %v4651_v0 }
0x4e1c   :  { %4375 = vmatpush3.msra.mxu1 %v5386_v26 }
0x4e1d   :  { %4376 = vmatprep.subr.mxu1 %v4651_v0 }
0x4e1e   :  { %4377 = vmatpush3.msra.mxu1 %v5393_v54 }
0x4ed7   :  { %v3445_v55 = vpop.f32.mrf.mxu1 }
0x4ed8   :  { %v3449_v52 = vadd.f32 %v3445_v55, %v367_v21 }
0x4ed9   :  { %v4358_v60 = vpop.f32.mrf.mxu1 }
0x4eda   :  { %4617 = vtanh.f32 %v3449_v52  ;;  %v3778_v61 = vmul.f32 -1.442695, %v3449_v52 }
0x4edc   :  { %4619 = vpow2.f32 %v3778_v61 }
0x4ee7   :  { %v4618_v47 = vpop.eup %4617 }
0x4ee8   :  { %3459 = vrot.lane.b32.xlu0 %v4618_v47, %s4653_s6 }
0x4ee9   :  { %v4620_v53 = vpop.eup %4619 }
0x4eea   :  { %v3453_v62 = vadd.f32 1.0, %v4620_v53 }
0x4eec   :  { %4621 = vrcp.f32 %v3453_v62 }
0x4ef9   :  { %v4622_v26 = vpop.eup %4621 }
0x4efa   :  { %v3457_v54 = vmul.f32 %v4622_v26, %v3365_v39 }
0x4f5a   :  { %v3460_v63 = vpop.permute.xlu0 %3459 }
0x4f5b   :  { %v3462_v0 = vmul.f32 %v4622_v26, %v3460_v63 }
0x4f5d   :  { %3464 = vrot.lane.b32.xlu1 %v3462_v0, %s4654_s7 }
0x4fcf   :  { %v3465_v31 = vpop.permute.xlu1 %3464 }
0x4fd0   :  { %v3467_v38 = vadd.f32 %v3465_v31, %v3457_v54 }
0x4fd2   :  { %4623 = vtanh.f32 %v3467_v38 }
0x4fdf   :  { %v4624_v24 = vpop.eup %4623 }
0x4fe0   :  { %3470 = vrot.lane.b32.xlu0 %v4624_v24, %s4653_s6 }
0x5052   :  { %v3471_v1 = vpop.permute.xlu0 %3470 }
0x5053   :  { %v3473_v3 = vmul.f32 %v4622_v26, %v3471_v1 }
0x5055   :  { %3477 = vrot.lane.b32.xlu1 %v3473_v3, %s4654_s7 }
0x50c7   :  { %v3478_v5 = vpop.permute.xlu1 %3477 }
0x50c8   :  { %4368 = vmatmul.mubr.msk.f32.vlgmr.msra.gmra.mxu0 %vm417_vm2, %v3478_v5 }
0x5188   :  { %v3547_v6 = vpop.f32.mrf.mxu0 }
0x5189   :  { %v3551_v37 = vadd.f32 %v3547_v6, %v372_v32 }
0x518a   :  { %v4369_v17 = vpop.f32.mrf.mxu0 }
0x518b   :  { %4625 = vtanh.f32 %v3551_v37  ;;  %v3780_v22 = vmul.f32 -1.442695, %v3551_v37 }
0x518d   :  { %4627 = vpow2.f32 %v3780_v22 }
0x5198   :  { %v4626_v9 = vpop.eup %4625 }
0x5199   :  { %3561 = vrot.lane.b32.xlu0 %v4626_v9, %s4653_s6 }
0x519a   :  { %v4628_v11 = vpop.eup %4627 }
0x519b   :  { %v3555_v13 = vadd.f32 1.0, %v4628_v11 }
0x519d   :  { %4629 = vrcp.f32 %v3555_v13 }
0x51aa   :  { %v4630_v29 = vpop.eup %4629 }
0x51ab   :  { %v3559_v14 = vmul.f32 %v4630_v29, %v3467_v38 }
0x520b   :  { %v3562_v10 = vpop.permute.xlu0 %3561 }
0x520c   :  { %v3564_v20 = vmul.f32 %v4630_v29, %v3562_v10 }
0x520e   :  { %3566 = vrot.lane.b32.xlu1 %v3564_v20, %s4654_s7 }
0x5280   :  { %v3567_v15 = vpop.permute.xlu1 %3566 }
0x5281   :  { %v3569_v41 = vadd.f32 %v3567_v15, %v3559_v14 }
0x5283   :  { %4631 = vtanh.f32 %v3569_v41 }
0x5290   :  { %v4632_v16 = vpop.eup %4631 }
0x5291   :  { %3572 = vrot.lane.b32.xlu0 %v4632_v16, %s4653_s6 }
0x5303   :  { %v3573_v18 = vpop.permute.xlu0 %3572 }
0x5304   :  { %v3575_v30 = vmul.f32 %v4630_v29, %v3573_v18 }
0x5306   :  { %3579 = vrot.lane.b32.xlu1 %v3575_v30, %s4654_s7 }
0x5378   :  { %v3580_v19 = vpop.permute.xlu1 %3579 }
0x5379   :  { %4379 = vmatmul.mubr.msk.f32.vlgmr.msra.gmra.mxu1 %vm417_vm2, %v3580_v19 }
0x5439   :  { %v3649_v27 = vpop.f32.mrf.mxu1 }
0x543a   :  { %v3653_v35 = vadd.f32 %v3649_v27, %v377_v2 }
0x543b   :  { %v4380_v36 = vpop.f32.mrf.mxu1 }
0x543c   :  { %4633 = vtanh.f32 %v3653_v35  ;;  %v3782_v43 = vmul.f32 -1.442695, %v3653_v35 }
0x543e   :  { %4635 = vpow2.f32 %v3782_v43 }
0x5449   :  { %v4634_v42 = vpop.eup %4633 }
0x544a   :  { %3663 = vrot.lane.b32.xlu0 %v4634_v42, %s4653_s6 }
0x544b   :  { %v4636_v44 = vpop.eup %4635 }
0x544c   :  { %v3657_v45 = vadd.f32 1.0, %v4636_v44 }
0x544e   :  { %4637 = vrcp.f32 %v3657_v45 }
0x545b   :  { %v4638_v56 = vpop.eup %4637 }
0x545c   :  { %v3661_v25 = vmul.f32 %v4638_v56, %v3569_v41 }
0x54bc   :  { %v3664_v4 = vpop.permute.xlu0 %3663 }
0x54bd   :  { %v3666_v46 = vmul.f32 %v4638_v56, %v3664_v4 }
0x54bf   :  { %3668 = vrot.lane.b32.xlu1 %v3666_v46, %s4654_s7 }
0x5531   :  { %v3669_v7 = vpop.permute.xlu1 %3668 }
0x5532   :  { %v3671_v40 = vadd.f32 %v3669_v7, %v3661_v25 }
0x5534   :  { %4639 = vtanh.f32 %v3671_v40 }
0x5541   :  { %v4640_v12 = vpop.eup %4639 }
0x5542   :  { %3674 = vrot.lane.b32.xlu0 %v4640_v12, %s4653_s6 }
0x55b4   :  { %v3675_v57 = vpop.permute.xlu0 %3674 }
0x55b5   :  { %v3677_v28 = vmul.f32 %v4638_v56, %v3675_v57 }
0x55b7   :  { %3679 = vrot.lane.b32.xlu1 %v3677_v28, %s4654_s7 }
0x5629   :  { %v3680_v58 = vpop.permute.xlu1 %3679 }
0x562a   :  { %3682 = vst.msk [vmem:[%s5479_s4] sm:$0xff] %vm417_vm2, %v3680_v58 }

</bundles_post_ra>
